<compile_context>
chip_gen: v7x
topology: tpu7x:2x2x1
jax: 0.10.0
libtpu: 0.0.40
codegen_flags: <defaults>
</compile_context>

<pallas_src>
import jax
import jax.numpy as jnp
import numpy as np
from jax.experimental import pallas as pl
from jax.experimental.pallas import tpu as pltpu

_EPS = 1e-5  # PyTorch InstanceNorm2d default eps (affine=False, no running stats)


def _instance_norm(y, n_pix):
    """InstanceNorm over rows of a (H*W, C) value (two-pass: mean, centered var)."""
    inv_n = 1.0 / float(n_pix)
    mean = jnp.sum(y, axis=0, keepdims=True) * inv_n
    d = y - mean
    var = jnp.sum(d * d, axis=0, keepdims=True) * inv_n  # biased variance (PyTorch)
    return d * jax.lax.rsqrt(var + _EPS)


def _shifted_columns(a, H, W, C, col_idx):
    """H-reflect-pad + the three reflected W-shifts of an (H, W, C) f32 value.

    Returns bf16 tensors indexed by dw in {0, 1, 2}: variant[dw][i, j, :] equals
    reflect_pad(a)[i, j + dw, :] of the (H+2, W+2) reflection-padded image.
    W-shifts use pltpu.roll (XLU slot) + an iota/where fix for the reflected
    edge column, avoiding sublane-misaligned slices.
    """
    a_hp = jnp.concatenate([a[1:2], a, a[H - 2:H - 1]], axis=0)       # (H+2, W, C)
    # dw == 0: columns shifted right by one; reflected column at j == 0.
    rolled_r = pltpu.roll(a_hp, shift=1, axis=1)                      # out[:, j] = a_hp[:, j-1]
    right = jnp.where(col_idx == 0, a_hp[:, 1:2, :], rolled_r)
    # dw == 2: columns shifted left by one; reflected column at j == W-1.
    rolled_l = pltpu.roll(a_hp, shift=W - 1, axis=1)                  # out[:, j] = a_hp[:, j+1]
    left = jnp.where(col_idx == W - 1, a_hp[:, W - 2:W - 1, :], rolled_l)
    return (right.astype(jnp.bfloat16),
            a_hp.astype(jnp.bfloat16),
            left.astype(jnp.bfloat16))


def _conv3x3(a, w_slab, H, W, C, col_idx):
    """Reflect-padded 3x3 conv as ONE im2col MXU matmul.

    a: (H, W, C) f32; w_slab: (9*C_in, C_out) tap-major bf16 -> (H*W, C_out) f32.
    """
    shifted = _shifted_columns(a, H, W, C, col_idx)
    # Tap order t = dh*3 + dw must match the tap-major weight slab rows.
    pieces = [shifted[dw][dh:dh + H] for dh in range(3) for dw in range(3)]
    patches = jnp.concatenate(pieces, axis=-1).reshape(H * W, 9 * C)  # bf16 im2col
    return jnp.dot(patches, w_slab, preferred_element_type=jnp.float32)


def residual_block_kernel(x_ref, w_ref, o_ref):
    # x_ref/o_ref: (H, W, C) (leading N dim squeezed); w_ref: (2, 9*C, C) bf16
    H, W, C = x_ref.shape
    x = x_ref[...]                    # (H, W, C) f32, resident for the whole body
    col_idx = jax.lax.broadcasted_iota(jnp.int32, (H + 2, W, C), 1)

    # Stage 1: reflect-pad -> conv3x3 -> InstanceNorm -> ReLU
    # (conv bias omitted: per-channel constant cancels exactly in InstanceNorm)
    y = _conv3x3(x, w_ref[0], H, W, C, col_idx)
    y = jnp.maximum(_instance_norm(y, H * W), 0.0).reshape(H, W, C)

    # Stage 2: reflect-pad -> conv3x3 -> InstanceNorm -> residual add
    z = _conv3x3(y, w_ref[1], H, W, C, col_idx)
    z = _instance_norm(z, H * W).reshape(H, W, C)

    o_ref[...] = x + z


def residual_block(x_nchw, w1, b1, w2, b2):
    """x_nchw: (N, C, H, W); w*: (C_out, C_in, 3, 3) PyTorch layout; b*: (C,)."""
    x = jnp.transpose(x_nchw, (0, 2, 3, 1)).astype(jnp.float32)  # -> NHWC
    N, H, W, C = x.shape

    # Lane-dense channel padding (exact for this block: padded channels stay 0).
    Cp = ((C + 127) // 128) * 128
    if Cp != C:
        x = jnp.pad(x, ((0, 0), (0, 0), (0, 0), (0, Cp - C)))

    def slab(w):
        w = jnp.asarray(w, jnp.float32)
        if Cp != C:
            w = jnp.pad(w, ((0, Cp - C), (0, Cp - C), (0, 0), (0, 0)))
        # PyTorch OIHW -> (kh, kw, ci, co) -> tap-major (9*Cp, Cp), bf16 for the MXU.
        return jnp.transpose(w, (2, 3, 1, 0)).reshape(9 * Cp, Cp).astype(jnp.bfloat16)

    w_slab = jnp.stack([slab(w1), slab(w2)], axis=0)  # (2, 9*Cp, Cp) bf16
    # Conv biases are mathematically cancelled by InstanceNorm (affine=False, no
    # running stats). NOTE: this elision is ONLY valid under that assumption —
    # an affine=True / BatchNorm swap must re-introduce the bias.
    del b1, b2

    # Generation-aware VMEM limit (~3/4 of physical), safe fallback of 48 MiB.
    try:
        vmem_cap = int(pltpu.get_tpu_info().vmem_capacity_bytes)
    except Exception:
        vmem_cap = 64 * 1024 * 1024
    vmem_limit = int(vmem_cap) * 3 // 4

    out = pl.pallas_call(
        residual_block_kernel,
        out_shape=jax.ShapeDtypeStruct((N, H, W, Cp), jnp.float32),
        grid=(N,),
        in_specs=[
            pl.BlockSpec((pl.Squeezed(), H, W, Cp), lambda n: (n, 0, 0, 0)),
            pl.BlockSpec((2, 9 * Cp, Cp), lambda n: (0, 0, 0)),
        ],
        out_specs=pl.BlockSpec((pl.Squeezed(), H, W, Cp), lambda n: (n, 0, 0, 0)),
        compiler_params=pltpu.CompilerParams(
            dimension_semantics=("parallel",),
            vmem_limit_bytes=vmem_limit,
        ),
    )(x, w_slab)

    out = out[..., :C]                         # drop lane padding
    return jnp.transpose(out, (0, 3, 1, 2))    # back to NCHW


def _reference(x, w1, b1, w2, b2):
    """Pure-JAX f32 reference of the same math (NCHW), mirrors the PyTorch module."""
    def conv_in(inp, w, b):
        xp = jnp.pad(inp, ((0, 0), (0, 0), (1, 1), (1, 1)), mode="reflect")
        y = jax.lax.conv_general_dilated(
            xp, w, window_strides=(1, 1), padding="VALID",
            dimension_numbers=("NCHW", "OIHW", "NCHW"))
        y = y + b[None, :, None, None]
        mean = y.mean(axis=(2, 3), keepdims=True)
        var = ((y - mean) ** 2).mean(axis=(2, 3), keepdims=True)
        return (y - mean) / jnp.sqrt(var + _EPS)

    y1 = jnp.maximum(conv_in(x, w1, b1), 0.0)
    return x + conv_in(y1, w2, b2)


if __name__ == "__main__":
    N, C, H, W = 2, 4, 16, 16
    key = jax.random.PRNGKey(0)
    k_x, k_w1, k_b1, k_w2, k_b2 = jax.random.split(key, 5)

    x = jax.random.normal(k_x, (N, C, H, W), jnp.float32)

    # Deterministic init mimicking PyTorch Conv2d default (uniform +- 1/sqrt(fan_in))
    fan_in = C * 3 * 3
    bound = 1.0 / float(np.sqrt(fan_in))
    w1 = jax.random.uniform(k_w1, (C, C, 3, 3), jnp.float32, -bound, bound)
    b1 = jax.random.uniform(k_b1, (C,), jnp.float32, -bound, bound)
    w2 = jax.random.uniform(k_w2, (C, C, 3, 3), jnp.float32, -bound, bound)
    b2 = jax.random.uniform(k_b2, (C,), jnp.float32, -bound, bound)

    out = jax.block_until_ready(residual_block(x, w1, b1, w2, b2))
    ref = jax.block_until_ready(_reference(x, w1, b1, w2, b2))

    assert out.shape == (N, C, H, W) and out.dtype == jnp.float32
    # Tolerance accounts for the bf16-input / f32-accumulate MXU path.
    if not np.allclose(np.asarray(out), np.asarray(ref), atol=3e-2, rtol=3e-2):
        raise SystemExit("result mismatch vs pure-JAX reference")
    print("KERNEL_OK")
</pallas_src>

<mosaic_0001>
module attributes {stable_mosaic.version = 11 : i64} {
  func.func @residual_block_kernel(%arg0: i32, %arg1: memref<1x16x16x128xf32, #tpu.memory_space<vmem>>, %arg2: memref<2x1152x128xbf16, #tpu.memory_space<vmem>>, %arg3: memref<1x16x16x128xf32, #tpu.memory_space<vmem>>) attributes {dimension_semantics = [#tpu.dimension_semantics<parallel>], iteration_bounds = array<i64: 2>, scalar_prefetch = 0 : i64, scratch_operands = 0 : i64, tpu.core_type = #tpu.core_type<tc>, window_params = [{transform_indices = @transform_0, window_bounds = array<i64: 1, 16, 16, 128>}, {pipeline_mode = #tpu.pipeline_mode<synchronous>, transform_indices = @transform_1, window_bounds = array<i64: 2, 1152, 128>}, {transform_indices = @transform_2, window_bounds = array<i64: 1, 16, 16, 128>}]} {
    %c0 = arith.constant 0 : index
    %c0_0 = arith.constant 0 : index
    %c0_1 = arith.constant 0 : index
    %c0_2 = arith.constant 0 : index
    %0 = vector.load %arg1[%c0, %c0_0, %c0_1, %c0_2] : memref<1x16x16x128xf32, #tpu.memory_space<vmem>>, vector<1x16x16x128xf32>
    %1 = vector.shape_cast %0 : vector<1x16x16x128xf32> to vector<16x16x128xf32>
    %2 = tpu.iota {dimensions = array<i32: 1>} : vector<18x16x128xi32>
    %c0_3 = arith.constant 0 : index
    %c0_4 = arith.constant 0 : index
    %c0_5 = arith.constant 0 : index
    %3 = vector.load %arg2[%c0_3, %c0_4, %c0_5] : memref<2x1152x128xbf16, #tpu.memory_space<vmem>>, vector<1x1152x128xbf16>
    %4 = vector.shape_cast %3 : vector<1x1152x128xbf16> to vector<1152x128xbf16>
    %5 = vector.extract_strided_slice %1 {offsets = [1, 0, 0], sizes = [1, 16, 128], strides = [1, 1, 1]} : vector<16x16x128xf32> to vector<1x16x128xf32>
    %6 = vector.extract_strided_slice %1 {offsets = [14, 0, 0], sizes = [1, 16, 128], strides = [1, 1, 1]} : vector<16x16x128xf32> to vector<1x16x128xf32>
    %7 = tpu.concatenate %5, %1, %6 in 0 : vector<1x16x128xf32>, vector<16x16x128xf32>, vector<1x16x128xf32> -> vector<18x16x128xf32>
    %c1_i32 = arith.constant 1 : i32
    %8 = tpu.dynamic_rotate %7 by %c1_i32 dim 1 : vector<18x16x128xf32>, i32 -> vector<18x16x128xf32>
    %c0_i32 = arith.constant 0 : i32
    %9 = vector.broadcast %c0_i32 : i32 to vector<18x16x128xi32>
    %10 = arith.cmpi eq, %2, %9 : vector<18x16x128xi32>
    %11 = vector.extract_strided_slice %7 {offsets = [0, 1, 0], sizes = [18, 1, 128], strides = [1, 1, 1]} : vector<18x16x128xf32> to vector<18x1x128xf32>
    %12 = vector.shape_cast %11 : vector<18x1x128xf32> to vector<18x1x128xf32>
    %13 = vector.broadcast %12 : vector<18x1x128xf32> to vector<18x16x128xf32>
    %14 = arith.select %10, %13, %8 : vector<18x16x128xi1>, vector<18x16x128xf32>
    %c15_i32 = arith.constant 15 : i32
    %15 = tpu.dynamic_rotate %7 by %c15_i32 dim 1 : vector<18x16x128xf32>, i32 -> vector<18x16x128xf32>
    %c15_i32_6 = arith.constant 15 : i32
    %16 = vector.broadcast %c15_i32_6 : i32 to vector<18x16x128xi32>
    %17 = arith.cmpi eq, %2, %16 : vector<18x16x128xi32>
    %18 = vector.extract_strided_slice %7 {offsets = [0, 14, 0], sizes = [18, 1, 128], strides = [1, 1, 1]} : vector<18x16x128xf32> to vector<18x1x128xf32>
    %19 = vector.shape_cast %18 : vector<18x1x128xf32> to vector<18x1x128xf32>
    %20 = vector.broadcast %19 : vector<18x1x128xf32> to vector<18x16x128xf32>
    %21 = arith.select %17, %20, %15 : vector<18x16x128xi1>, vector<18x16x128xf32>
    %22 = arith.truncf %14 : vector<18x16x128xf32> to vector<18x16x128xbf16>
    %23 = arith.truncf %7 : vector<18x16x128xf32> to vector<18x16x128xbf16>
    %24 = arith.truncf %21 : vector<18x16x128xf32> to vector<18x16x128xbf16>
    %25 = vector.extract_strided_slice %22 {offsets = [0, 0, 0], sizes = [16, 16, 128], strides = [1, 1, 1]} : vector<18x16x128xbf16> to vector<16x16x128xbf16>
    %26 = vector.extract_strided_slice %23 {offsets = [0, 0, 0], sizes = [16, 16, 128], strides = [1, 1, 1]} : vector<18x16x128xbf16> to vector<16x16x128xbf16>
    %27 = vector.extract_strided_slice %24 {offsets = [0, 0, 0], sizes = [16, 16, 128], strides = [1, 1, 1]} : vector<18x16x128xbf16> to vector<16x16x128xbf16>
    %28 = vector.extract_strided_slice %22 {offsets = [1, 0, 0], sizes = [16, 16, 128], strides = [1, 1, 1]} : vector<18x16x128xbf16> to vector<16x16x128xbf16>
    %29 = vector.extract_strided_slice %23 {offsets = [1, 0, 0], sizes = [16, 16, 128], strides = [1, 1, 1]} : vector<18x16x128xbf16> to vector<16x16x128xbf16>
    %30 = vector.extract_strided_slice %24 {offsets = [1, 0, 0], sizes = [16, 16, 128], strides = [1, 1, 1]} : vector<18x16x128xbf16> to vector<16x16x128xbf16>
    %31 = vector.extract_strided_slice %22 {offsets = [2, 0, 0], sizes = [16, 16, 128], strides = [1, 1, 1]} : vector<18x16x128xbf16> to vector<16x16x128xbf16>
    %32 = vector.extract_strided_slice %23 {offsets = [2, 0, 0], sizes = [16, 16, 128], strides = [1, 1, 1]} : vector<18x16x128xbf16> to vector<16x16x128xbf16>
    %33 = vector.extract_strided_slice %24 {offsets = [2, 0, 0], sizes = [16, 16, 128], strides = [1, 1, 1]} : vector<18x16x128xbf16> to vector<16x16x128xbf16>
    %34 = tpu.concatenate %25, %26, %27, %28, %29, %30, %31, %32, %33 in 2 : vector<16x16x128xbf16>, vector<16x16x128xbf16>, vector<16x16x128xbf16>, vector<16x16x128xbf16>, vector<16x16x128xbf16>, vector<16x16x128xbf16>, vector<16x16x128xbf16>, vector<16x16x128xbf16>, vector<16x16x128xbf16> -> vector<16x16x1152xbf16>
    %35 = vector.shape_cast %34 : vector<16x16x1152xbf16> to vector<256x1152xbf16>
    %cst = arith.constant dense<0.000000e+00> : vector<256x128xf32>
    %36 = tpu.matmul %35, %4, %cst {dimension_numbers = #tpu.dot_dimension_numbers<[1], [0], [0], [1], [0, 0, 1, 1], [], []>} : vector<256x1152xbf16>, vector<1152x128xbf16>, vector<256x128xf32> -> vector<256x128xf32>
    %cst_7 = arith.constant dense<0.000000e+00> : vector<128xf32>
    %37 = vector.multi_reduction <add>, %36, %cst_7 [0] : vector<256x128xf32> to vector<128xf32>
    %38 = vector.shape_cast %37 : vector<128xf32> to vector<1x128xf32>
    %cst_8 = arith.constant 3.906250e-03 : f32
    %39 = vector.broadcast %cst_8 : f32 to vector<1x128xf32>
    %40 = arith.mulf %38, %39 : vector<1x128xf32>
    %41 = vector.broadcast %40 : vector<1x128xf32> to vector<256x128xf32>
    %42 = arith.subf %36, %41 : vector<256x128xf32>
    %43 = arith.mulf %42, %42 : vector<256x128xf32>
    %cst_9 = arith.constant dense<0.000000e+00> : vector<128xf32>
    %44 = vector.multi_reduction <add>, %43, %cst_9 [0] : vector<256x128xf32> to vector<128xf32>
    %45 = vector.shape_cast %44 : vector<128xf32> to vector<1x128xf32>
    %cst_10 = arith.constant 3.906250e-03 : f32
    %46 = vector.broadcast %cst_10 : f32 to vector<1x128xf32>
    %47 = arith.mulf %45, %46 : vector<1x128xf32>
    %cst_11 = arith.constant 9.99999974E-6 : f32
    %48 = vector.broadcast %cst_11 : f32 to vector<1x128xf32>
    %49 = arith.addf %47, %48 : vector<1x128xf32>
    %50 = math.rsqrt %49 : vector<1x128xf32>
    %51 = vector.broadcast %50 : vector<1x128xf32> to vector<256x128xf32>
    %52 = arith.mulf %42, %51 : vector<256x128xf32>
    %cst_12 = arith.constant 0.000000e+00 : f32
    %53 = vector.broadcast %cst_12 : f32 to vector<256x128xf32>
    %54 = arith.maximumf %52, %53 : vector<256x128xf32>
    %55 = vector.shape_cast %54 : vector<256x128xf32> to vector<16x16x128xf32>
    %c1 = arith.constant 1 : index
    %c0_13 = arith.constant 0 : index
    %c0_14 = arith.constant 0 : index
    %56 = vector.load %arg2[%c1, %c0_13, %c0_14] : memref<2x1152x128xbf16, #tpu.memory_space<vmem>>, vector<1x1152x128xbf16>
    %57 = vector.shape_cast %56 : vector<1x1152x128xbf16> to vector<1152x128xbf16>
    %58 = vector.extract_strided_slice %55 {offsets = [1, 0, 0], sizes = [1, 16, 128], strides = [1, 1, 1]} : vector<16x16x128xf32> to vector<1x16x128xf32>
    %59 = vector.extract_strided_slice %55 {offsets = [14, 0, 0], sizes = [1, 16, 128], strides = [1, 1, 1]} : vector<16x16x128xf32> to vector<1x16x128xf32>
    %60 = tpu.concatenate %58, %55, %59 in 0 : vector<1x16x128xf32>, vector<16x16x128xf32>, vector<1x16x128xf32> -> vector<18x16x128xf32>
    %c1_i32_15 = arith.constant 1 : i32
    %61 = tpu.dynamic_rotate %60 by %c1_i32_15 dim 1 : vector<18x16x128xf32>, i32 -> vector<18x16x128xf32>
    %c0_i32_16 = arith.constant 0 : i32
    %62 = vector.broadcast %c0_i32_16 : i32 to vector<18x16x128xi32>
    %63 = arith.cmpi eq, %2, %62 : vector<18x16x128xi32>
    %64 = vector.extract_strided_slice %60 {offsets = [0, 1, 0], sizes = [18, 1, 128], strides = [1, 1, 1]} : vector<18x16x128xf32> to vector<18x1x128xf32>
    %65 = vector.shape_cast %64 : vector<18x1x128xf32> to vector<18x1x128xf32>
    %66 = vector.broadcast %65 : vector<18x1x128xf32> to vector<18x16x128xf32>
    %67 = arith.select %63, %66, %61 : vector<18x16x128xi1>, vector<18x16x128xf32>
    %c15_i32_17 = arith.constant 15 : i32
    %68 = tpu.dynamic_rotate %60 by %c15_i32_17 dim 1 : vector<18x16x128xf32>, i32 -> vector<18x16x128xf32>
    %c15_i32_18 = arith.constant 15 : i32
    %69 = vector.broadcast %c15_i32_18 : i32 to vector<18x16x128xi32>
    %70 = arith.cmpi eq, %2, %69 : vector<18x16x128xi32>
    %71 = vector.extract_strided_slice %60 {offsets = [0, 14, 0], sizes = [18, 1, 128], strides = [1, 1, 1]} : vector<18x16x128xf32> to vector<18x1x128xf32>
    %72 = vector.shape_cast %71 : vector<18x1x128xf32> to vector<18x1x128xf32>
    %73 = vector.broadcast %72 : vector<18x1x128xf32> to vector<18x16x128xf32>
    %74 = arith.select %70, %73, %68 : vector<18x16x128xi1>, vector<18x16x128xf32>
    %75 = arith.truncf %67 : vector<18x16x128xf32> to vector<18x16x128xbf16>
    %76 = arith.truncf %60 : vector<18x16x128xf32> to vector<18x16x128xbf16>
    %77 = arith.truncf %74 : vector<18x16x128xf32> to vector<18x16x128xbf16>
    %78 = vector.extract_strided_slice %75 {offsets = [0, 0, 0], sizes = [16, 16, 128], strides = [1, 1, 1]} : vector<18x16x128xbf16> to vector<16x16x128xbf16>
    %79 = vector.extract_strided_slice %76 {offsets = [0, 0, 0], sizes = [16, 16, 128], strides = [1, 1, 1]} : vector<18x16x128xbf16> to vector<16x16x128xbf16>
    %80 = vector.extract_strided_slice %77 {offsets = [0, 0, 0], sizes = [16, 16, 128], strides = [1, 1, 1]} : vector<18x16x128xbf16> to vector<16x16x128xbf16>
    %81 = vector.extract_strided_slice %75 {offsets = [1, 0, 0], sizes = [16, 16, 128], strides = [1, 1, 1]} : vector<18x16x128xbf16> to vector<16x16x128xbf16>
    %82 = vector.extract_strided_slice %76 {offsets = [1, 0, 0], sizes = [16, 16, 128], strides = [1, 1, 1]} : vector<18x16x128xbf16> to vector<16x16x128xbf16>
    %83 = vector.extract_strided_slice %77 {offsets = [1, 0, 0], sizes = [16, 16, 128], strides = [1, 1, 1]} : vector<18x16x128xbf16> to vector<16x16x128xbf16>
    %84 = vector.extract_strided_slice %75 {offsets = [2, 0, 0], sizes = [16, 16, 128], strides = [1, 1, 1]} : vector<18x16x128xbf16> to vector<16x16x128xbf16>
    %85 = vector.extract_strided_slice %76 {offsets = [2, 0, 0], sizes = [16, 16, 128], strides = [1, 1, 1]} : vector<18x16x128xbf16> to vector<16x16x128xbf16>
    %86 = vector.extract_strided_slice %77 {offsets = [2, 0, 0], sizes = [16, 16, 128], strides = [1, 1, 1]} : vector<18x16x128xbf16> to vector<16x16x128xbf16>
    %87 = tpu.concatenate %78, %79, %80, %81, %82, %83, %84, %85, %86 in 2 : vector<16x16x128xbf16>, vector<16x16x128xbf16>, vector<16x16x128xbf16>, vector<16x16x128xbf16>, vector<16x16x128xbf16>, vector<16x16x128xbf16>, vector<16x16x128xbf16>, vector<16x16x128xbf16>, vector<16x16x128xbf16> -> vector<16x16x1152xbf16>
    %88 = vector.shape_cast %87 : vector<16x16x1152xbf16> to vector<256x1152xbf16>
    %cst_19 = arith.constant dense<0.000000e+00> : vector<256x128xf32>
    %89 = tpu.matmul %88, %57, %cst_19 {dimension_numbers = #tpu.dot_dimension_numbers<[1], [0], [0], [1], [0, 0, 1, 1], [], []>} : vector<256x1152xbf16>, vector<1152x128xbf16>, vector<256x128xf32> -> vector<256x128xf32>
    %cst_20 = arith.constant dense<0.000000e+00> : vector<128xf32>
    %90 = vector.multi_reduction <add>, %89, %cst_20 [0] : vector<256x128xf32> to vector<128xf32>
    %91 = vector.shape_cast %90 : vector<128xf32> to vector<1x128xf32>
    %cst_21 = arith.constant 3.906250e-03 : f32
    %92 = vector.broadcast %cst_21 : f32 to vector<1x128xf32>
    %93 = arith.mulf %91, %92 : vector<1x128xf32>
    %94 = vector.broadcast %93 : vector<1x128xf32> to vector<256x128xf32>
    %95 = arith.subf %89, %94 : vector<256x128xf32>
    %96 = arith.mulf %95, %95 : vector<256x128xf32>
    %cst_22 = arith.constant dense<0.000000e+00> : vector<128xf32>
    %97 = vector.multi_reduction <add>, %96, %cst_22 [0] : vector<256x128xf32> to vector<128xf32>
    %98 = vector.shape_cast %97 : vector<128xf32> to vector<1x128xf32>
    %cst_23 = arith.constant 3.906250e-03 : f32
    %99 = vector.broadcast %cst_23 : f32 to vector<1x128xf32>
    %100 = arith.mulf %98, %99 : vector<1x128xf32>
    %cst_24 = arith.constant 9.99999974E-6 : f32
    %101 = vector.broadcast %cst_24 : f32 to vector<1x128xf32>
    %102 = arith.addf %100, %101 : vector<1x128xf32>
    %103 = math.rsqrt %102 : vector<1x128xf32>
    %104 = vector.broadcast %103 : vector<1x128xf32> to vector<256x128xf32>
    %105 = arith.mulf %95, %104 : vector<256x128xf32>
    %106 = vector.shape_cast %105 : vector<256x128xf32> to vector<16x16x128xf32>
    %107 = arith.addf %1, %106 : vector<16x16x128xf32>
    %c0_25 = arith.constant 0 : index
    %c0_26 = arith.constant 0 : index
    %c0_27 = arith.constant 0 : index
    %c0_28 = arith.constant 0 : index
    %108 = vector.load %arg3[%c0_25, %c0_26, %c0_27, %c0_28] : memref<1x16x16x128xf32, #tpu.memory_space<vmem>>, vector<1x16x16x128xf32>
    %109 = vector.shape_cast %108 : vector<1x16x16x128xf32> to vector<16x16x128xf32>
    %110 = vector.shape_cast %107 : vector<16x16x128xf32> to vector<1x16x16x128xf32>
    tpu.vector_store %arg3[%c0_25, %c0_26, %c0_27, %c0_28], %110 {strides = array<i32>} : memref<1x16x16x128xf32, #tpu.memory_space<vmem>>, vector<1x16x16x128xf32>,
    return
  }
  func.func @transform_0(%arg0: i32) -> (i32, i32, i32, i32) {
    %c0_i32 = arith.constant 0 : i32
    %c0_i32_0 = arith.constant 0 : i32
    %c0_i32_1 = arith.constant 0 : i32
    %c0_i32_2 = arith.constant 0 : i32
    return %arg0, %c0_i32, %c0_i32_0, %c0_i32_1 : i32, i32, i32, i32
  }
  func.func @transform_1(%arg0: i32) -> (i32, i32, i32) {
    %c0_i32 = arith.constant 0 : i32
    %c0_i32_0 = arith.constant 0 : i32
    %c0_i32_1 = arith.constant 0 : i32
    %c0_i32_2 = arith.constant 0 : i32
    return %c0_i32, %c0_i32_0, %c0_i32_1 : i32, i32, i32
  }
  func.func @transform_2(%arg0: i32) -> (i32, i32, i32, i32) {
    %c0_i32 = arith.constant 0 : i32
    %c0_i32_0 = arith.constant 0 : i32
    %c0_i32_1 = arith.constant 0 : i32
    %c0_i32_2 = arith.constant 0 : i32
    return %arg0, %c0_i32, %c0_i32_0, %c0_i32_1 : i32, i32, i32, i32
  }
}

</mosaic_0001>

<bundles_post_ra>
// kernel: tpu_custom_call.1
= control target key start
LH: loop header
LB: loop body
LE: loop exit
PB: predicated region body
PF: predicated region fallthrough
CT: control target
= control target key end

     0   :  { %7 = vsyncpa [#allocation3], 0  ;;  %s8505_s0 = inlined_call_operand.hbm [shape: f32[2,16,16,128], index: 0, kind: input, shape index: {}]   ;;  %s8506_s1 = inlined_call_operand.hbm [shape: bf16[2,1152,128], index: 1, kind: input, shape index: {}]   ;;  %s8507_s2 = inlined_call_operand.hbm [shape: f32[2,16,16,128], index: 2, kind: output, shape index: {}]  }
   0x1   :  { %9 = vsyncpa [#allocation3 + $0x1], 0 }
   0x2   :  { %10 = vsyncpa [#allocation6], 0 }
   0x3   :  { %11 = vsyncpa [#allocation4], 0 }
   0x4   :  { %13 = vsyncpa [#allocation4 + $0x1], 0  ;;  %s5858_s9 = smov 0   ;;  %s5860_s10 = smov 0  }
   0x5   :  { %s5862_s11 = smov 0   ;;  %s5864_s12 = smov 0  }
   0x6 LB: > { %s5879_s13 = sadd.s32 4294967295, %s5832_s12   ;;  %s4259_s14 = sadd.s32 4294967294, %s5832_s12   ;;  %s5832_s12 = sphi %s5864_s12, %s8569_s12   ;;  %s5828_s11 = sphi %s5862_s11, %s8568_s11   ;;  %s5824_s10 = sphi %s5860_s10, %s8567_s10   ;;  %s5820_s9 = sphi %s5858_s9, %s8566_s9  }
   0x7   : > { %p39_p0 = scmp.ne.s32.totalorder %s5824_s10, %s5820_s9  ;;  %p8508_p1 = scmp.eq.s32.totalorder %s5879_s13, 0 }
   0x8   : > { %p90_p3 = scmp.eq.s32.totalorder %s4259_s14, 1  ;;  %p4260_p5 = scmp.ge.s32.totalorder %s5832_s12, 1 }
   0x9   : > { %p5888_p4 = por %p8508_p1, %p39_p0  ;;  %p97_p7 = scmp.lt.s32.totalorder %s5832_s12, 3 }
   0xa   : > { %p5893_p6 = por %p90_p3, %p39_p0  ;;  %s5834_s18 = smov [#allocation5]  }
   0xb   : > { %s8521_s15 = scalar_select %p5888_p4, 1, 0 }
   0xc   : > { %s8522_s16 = scalar_select %p5893_p6, 1, 0 }
   0xd   : > { %p5898_p8 = pnand %p4260_p5, %p97_p7  ;;  %s109_s19 = sshll.u32 %s5834_s18, 4  ;;  %s5902_s19 = int_to_ptr.vmem [resolvable:$true] %s109_s19 }
   0xe   : > { %s5914_s21 = sadd.s32 1, %s5832_s12   ;;  %s26_s22 = sadd.s32 1, %s5828_s11 }
   0xf   : > { %s8523_s17 = scalar_select %p5898_p8, 1, 0 }
  0x10   : > { %p5469_p9 = pneg %p5898_p8  ;;  %s23_s23 = ssub.s32 %s5832_s12, %s5914_s21 }
  0x11   : > { %s5704_s26 = scalar_lea.hbm %s8506_s1, 18432 }
  0x12   : > { %p5909_p11 = pnand %p5469_p9, %p8508_p1  ;;  %p5705_p12 = scmp.ne.s32.totalorder %s8506_s1, %s5704_s26 }
  0x13   : > { %p5711_p5 = scmp.lt.u32.totalorder %s5704_s26, %s8506_s1 }
  0x14   : > { %p5706_p13 = pneg %p5909_p11 }
  0x16   : > { %p5707_p0 = pnand %p5706_p13, %p5705_p12 }
  0x18   : > { %p5708_p3 = pneg %p5707_p0 }
  0x1a   : > { %p5713_p7 = pnand %p5711_p5, %p5708_p3 }
  0x1c   : > { %5716 = shalt.err (!%p5713_p7)
}
  0x1d   : > { %s5717_s3 = scalar_lea.vmem %s5902_s19, 18432  ;;  %p5725_p2 = scmp.lt.s32.totalorder %s5902_s19, %s5902_s19 }
  0x1e   : > { %p5718_p9 = scmp.ne.s32.totalorder %s5902_s19, %s5717_s3  ;;  %p5726_p6 = scmp.lt.s32.totalorder %s5717_s3, %s5717_s3 }
  0x20   : > { %p5720_p10 = pnand %p5718_p9, %p5706_p13  ;;  %p5727_p4 = por %p5726_p6, %p5725_p2 }
  0x22   : > { %p5721_p1 = pneg %p5720_p10 }
  0x24   : > { %p5728_p8 = pnand %p5727_p4, %p5721_p1 }
  0x26   : > { %5731 = shalt.err (!%p5728_p8)
}
  0x27   : > { %s5835_s4 = smov 64   ;;  %s5836_s5 = smov 4  }
  0x28   : > { %5472 = dma.hbm_to_vmem [thread:$0]  (!%p5909_p11), %s8506_s1, 18432, %s5902_s19, [#allocation6], %s5835_s4, %s5835_s4, %s5836_s5  }
  0x29   : > { %p24_p2 = scmp.eq.s32.totalorder %s23_s23, 0  ;;  %p33_p1 = scmp.ne.s32.totalorder %s5828_s11, %s5824_s10 }
  0x2a   : > { %p34_p4 = scmp.eq.s32.totalorder %s5832_s12, 0  ;;  %p5482_p6 = scmp.lt.s32.totalorder %s5832_s12, 2 }
  0x2b   : > { %s5945_s8 = scalar_select %p24_p2, %s5828_s11, %s26_s22  }
  0x2c   : > { %p35_p8 = por %p34_p4, %p33_p1  ;;  %p8525_p10 = scmp.eq.s32.totalorder %s5879_s13, 1 }
  0x2d   : > { %s123_s18 = sand.u32 1, %s5828_s11   ;;  %s4419_s24 = sshll.u32 %s5832_s12, 12 }
  0x2e   : > { %p5949_p12 = por %p8525_p10, %p33_p1  ;;  %s4263_s25 = sshll.u32 %s123_s18, 8 }
  0x2f   : > { %s5958_s27 = scalar_lea.hbm %s8505_s0, %s4419_s24  ;;  %s127_s19 = scalar_lea.vmem [#allocation2], %s4263_s25 }
  0x30   : > { %s134_s22 = sshll.u32 %s127_s19, 4  ;;  %p5960_p11 = pnand %p5482_p6, %p35_p8  ;;  %s5964_s22 = int_to_ptr.vmem [resolvable:$true] %s134_s22 }
  0x31   : > { %s5966_s28 = scalar_lea.sflag [#allocation3], %s123_s18  ;;  %s5732_s29 = scalar_lea.hbm %s5958_s27, 4096 }
  0x32   : > { %p5733_p13 = scmp.ne.s32.totalorder %s5958_s27, %s5732_s29  ;;  %p5734_p0 = pneg %p5960_p11 }
  0x33   : > { %s5737_s4 = scalar_lea.hbm %s8505_s0, 8192  ;;  %p5738_p7 = scmp.lt.u32.totalorder %s5958_s27, %s8505_s0 }
  0x34   : > { %p5735_p3 = pnand %p5734_p0, %p5733_p13  ;;  %p5739_p9 = scmp.lt.u32.totalorder %s5737_s4, %s5732_s29 }
  0x35   : > { %p5741_p1 = scmp.lt.u32.totalorder %s5732_s29, %s5958_s27 }
  0x36   : > { %p5736_p5 = pneg %p5735_p3  ;;  %p5740_p2 = por %p5739_p9, %p5738_p7 }
  0x38   : > { %p5742_p4 = por %p5741_p1, %p5740_p2 }
  0x3a   : > { %p5743_p6 = pnand %p5742_p4, %p5736_p5 }
  0x3c   : > { %5746 = shalt.err (!%p5743_p6)
}
  0x3d   : > { %s5747_s7 = scalar_lea.vmem %s5964_s22, 4096  ;;  %s5837_s18 = smov [#allocation2]  }
  0x3e   : > { %p5748_p8 = scmp.ne.s32.totalorder %s5964_s22, %s5747_s7  ;;  %s5752_s24 = sshll.u32 %s5837_s18, 4  ;;  %s5753_s24 = int_to_ptr.vmem [resolvable:$false] %s5752_s24 }
  0x3f   : > { %s5754_s25 = scalar_lea.vmem %s5753_s24, 8192  ;;  %p5755_p3 = scmp.lt.s32.totalorder %s5964_s22, %s5753_s24 }
  0x40   : > { %p5750_p10 = pnand %p5748_p8, %p5734_p0  ;;  %p5756_p7 = scmp.lt.s32.totalorder %s5754_s25, %s5747_s7 }
  0x42   : > { %p5751_p13 = pneg %p5750_p10  ;;  %p5757_p9 = por %p5756_p7, %p5755_p3 }
  0x44   : > { %p5758_p2 = pnand %p5757_p9, %p5751_p13 }
  0x46   : > { %5761 = shalt.err (!%p5758_p2)
}
  0x47   : > { %s5838_s20 = smov 128   ;;  %s5839_s26 = smov 8  }
  0x48   : > { %5476 = dma.hbm_to_vmem [thread:$0]  (!%p5960_p11), %s5958_s27, 4096, %s5964_s22, %s5966_s28, %s5838_s20, %s5838_s20, %s5839_s26  }
  0x49   : > { %p8528_p0 = scmp.ne.s32.totalorder %s8523_s17, 0 }
  0x4b   : > { %146 = sbr.rel (%p8528_p0) target bundleno = 1469 (0x5bd), region = 28 }
  0x52   : > { %s5997_s19 = sand.u32 1, %s5824_s10   ;;  %p8529_p5 = scmp.ne.s32.totalorder %s8521_s15, 0 }
  0x53   : > { %s4267_s29 = sshll.u32 %s5997_s19, 8  ;;  %s149_s30 = scalar_lea.sflag [#allocation3], %s5997_s19 }
  0x54   : > { %s6003_s3 = scalar_lea.vmem [#allocation2], %s4267_s29 }
  0x55   : > { %5807 = dma.done.wait (%p8529_p5), %s149_s30, 4096  }
  0x56   : > { %5809 = vsyncadd (%p8529_p5), %s149_s30, 4294963200  ;;  %p8530_p11 = scmp.eq.s32.totalorder %s5879_s13, 0 }
  0x58   : > { %5811 = dma.done.wait (%p8530_p11), [#allocation6], 18432   ;;  %p8531_p1 = pmov %p8530_p11 }
  0x59   : > { %v5524_v0 = vld [vmem:[#allocation5 + $0x40] sm:$0xff]   ;;  %v5528_v4 = vld [vmem:[#allocation5 + $0x48] sm:$0xff]   ;;  %v5532_v8 = vld [vmem:[#allocation5 + $0x50] sm:$0xff]   ;;  %v210_v22 = vlaneseq  ;;  %s8332_s15 = scalar_lea.vmem [#allocation7], %s4267_s29  ;;  %s4420_s17 = sshll.u32 %s5879_s13, 12 }
  0x5a   : > { %5813 = vsyncadd (%p8531_p1), [#allocation6], 4294948864  ;;  %v5525_v1 = vld [vmem:[#allocation5 + $0xc0] sm:$0xff]   ;;  %4421 = vmatprep.subr.bf16.mxu0 %v5524_v0  ;;  %v5529_v5 = vld [vmem:[#allocation5 + $0xc8] sm:$0xff]   ;;  %s4176_s27 = sshll.u32 %s8332_s15, 4  ;;  %s8437_s28 = scalar_lea.hbm %s8507_s2, %s4420_s17  ;;  %s8441_s27 = int_to_ptr.vmem [resolvable:$true] %s4176_s27 }
  0x5b   : > { %v5526_v2 = vld [vmem:[#allocation5] sm:$0xff]   ;;  %4533 = vmatprep.subr.bf16.mxu1 %v5525_v1  ;;  %v5530_v6 = vld [vmem:[#allocation5 + $0x8] sm:$0xff]   ;;  %v5533_v9 = vld [vmem:[#allocation5 + $0xd0] sm:$0xff]   ;;  %v6013_v27 = vshrl.u32 %v210_v22, 7  ;;  %s4163_s13 = scalar_lea.sflag [#allocation4], %s5997_s19  ;;  %s5762_s4 = scalar_lea.vmem %s8441_s27, 4096 }
  0x5c   : > { %v5527_v3 = vld [vmem:[#allocation5 + $0x80] sm:$0xff]   ;;  %4422 = vmatpush3.bf16.msra.mxu0 %v5526_v2  ;;  %v5531_v7 = vld [vmem:[#allocation5 + $0x88] sm:$0xff]   ;;  %v5534_v10 = vld [vmem:[#allocation5 + $0x10] sm:$0xff]   ;;  %p5763_p4 = scmp.ne.s32.totalorder %s8441_s27, %s5762_s4  ;;  %s5840_s5 = smov [#allocation7]  }
  0x5d   : > { %4534 = vmatpush3.bf16.msra.mxu1 %v5527_v3  ;;  %4423 = vmatprep.subr.bf16.mxu0 %v5528_v4  ;;  %v5535_v11 = vld [vmem:[#allocation5 + $0x90] sm:$0xff]   ;;  %v5536_v12 = vld [vmem:[#allocation5 + $0x58] sm:$0xff]   ;;  %v5540_v16 = vld [vmem:[#allocation5 + $0x60] sm:$0xff]   ;;  %v6016_v31 = vadd.s32 8, %v6013_v27  ;;  %v6019_v33 = vsub.s32 1, %v6013_v27  ;;  %vm389_vm0 = vcmp.lt.s32.totalorder %v6013_v27, 1 }
  0x5e   : > { %4535 = vmatprep.subr.bf16.mxu1 %v5529_v5  ;;  %v5537_v13 = vld [vmem:[#allocation5 + $0xd8] sm:$0xff]   ;;  %v5541_v17 = vld [vmem:[#allocation5 + $0xe0] sm:$0xff]   ;;  %v5544_v20 = vld [vmem:[#allocation5 + $0x68] sm:$0xff]   ;;  %v6023_v36 = vsub.s32 6, %v6013_v27  ;;  %vm422_vm1 = vcmp.eq.s32.totalorder %v6013_v27, 0  ;;  %vm552_vm2 = vcmp.lt.s32.totalorder %v6013_v27, 7  ;;  %p5764_p6 = pnand %p5763_p4, %p5949_p12 }
  0x5f   : > { %v5538_v14 = vld [vmem:[#allocation5 + $0x18] sm:$0xff]   ;;  %v5542_v18 = vld [vmem:[#allocation5 + $0x20] sm:$0xff]   ;;  %v5545_v21 = vld [vmem:[#allocation5 + $0xe8] sm:$0xff]   ;;  %vm586_vm3 = vcmp.eq.s32.totalorder %v6016_v31, 15  ;;  %s5766_s6 = sshll.u32 %s5840_s5, 4  ;;  %s5767_s6 = int_to_ptr.vmem [resolvable:$false] %s5766_s6 }
  0x60   : > { %4424 = vmatpush3.bf16.msra.mxu0 %v5530_v6  ;;  %v5539_v15 = vld [vmem:[#allocation5 + $0x98] sm:$0xff]   ;;  %v5543_v19 = vld [vmem:[#allocation5 + $0xa0] sm:$0xff]   ;;  %v5546_v23 = vld [vmem:[#allocation5 + $0x28] sm:$0xff]   ;;  %p5765_p8 = pneg %p5764_p6  ;;  %s5768_s7 = scalar_lea.vmem %s5767_s6, 8192 }
  0x61   : > { %4536 = vmatpush3.bf16.msra.mxu1 %v5531_v7  ;;  %4425 = vmatprep.subr.bf16.mxu0 %v5532_v8  ;;  %v5547_v24 = vld [vmem:[#allocation5 + $0xa8] sm:$0xff]   ;;  %v5548_v25 = vld [vmem:[#allocation5 + $0x70] sm:$0xff]   ;;  %v5552_v30 = vld [vmem:[#allocation5 + $0x78] sm:$0xff]   ;;  %p5769_p10 = scmp.lt.s32.totalorder %s8441_s27, %s5767_s6  ;;  %p5770_p13 = scmp.lt.s32.totalorder %s5768_s7, %s5762_s4 }
  0x62   : > { %4537 = vmatprep.subr.bf16.mxu1 %v5533_v9  ;;  %v5549_v26 = vld [vmem:[#allocation5 + $0xf0] sm:$0xff]   ;;  %v5553_v32 = vld [vmem:[#allocation5 + $0xf8] sm:$0xff]   ;;  %v178_v39 = vld [vmem:[%s6003_s3] sm:$0xff] }
  0x63   : > { %v5550_v28 = vld [vmem:[#allocation5 + $0x30] sm:$0xff]   ;;  %v5554_v34 = vld [vmem:[#allocation5 + $0x38] sm:$0xff]   ;;  %v179_v41 = vld [vmem:[%s6003_s3 + $0x8] sm:$0xff]  ;;  %v358_v42 = vrot.slane %v178_v39, 7  ;;  %v431_v43 = vrot.slane %v178_v39, %v6019_v33  ;;  %v521_v53 = vrot.slane %v178_v39, 1  ;;  %p5771_p3 = por %p5770_p13, %p5769_p10 }
  0x64   : > { %4426 = vmatpush3.bf16.msra.mxu0 %v5534_v10  ;;  %v5551_v29 = vld [vmem:[#allocation5 + $0xb0] sm:$0xff]   ;;  %v5555_v35 = vld [vmem:[#allocation5 + $0xb8] sm:$0xff]   ;;  %v5556_v45 = vld [vmem:[#allocation5 + $0x140] sm:$0xff]   ;;  %v374_v46 = vrot.slane %v179_v41, 7  ;;  %v6038_v52 = vpack.c.bf16 %v179_v41, %v178_v39  ;;  %v537_v4 = vrot.slane %v179_v41, 1  ;;  %v594_v6 = vrot.slane %v179_v41, %v6023_v36 }
  0x65   : > { %4538 = vmatpush3.bf16.msra.mxu1 %v5535_v11  ;;  %4427 = vmatprep.subr.bf16.mxu0 %v5536_v12  ;;  %v180_v37 = vld [vmem:[%s6003_s3 + $0x10] sm:$0xff]  ;;  %v181_v38 = vld [vmem:[%s6003_s3 + $0x18] sm:$0xff]  ;;  %v6049_v58 = vld [vmem:[%s6003_s3 + $0x20] sm:$0xff]  ;;  %p5772_p7 = pnand %p5771_p3, %p5765_p8 }
  0x66   : > { %4539 = vmatprep.subr.bf16.mxu1 %v5537_v13  ;;  %v6031_v40 = vpack.c.bf16 %v181_v38, %v180_v37  ;;  %v357_v44 = vrot.slane %v180_v37, 7  ;;  %v373_v47 = vrot.slane %v181_v38, 7  ;;  %v427_v48 = vrot.slane %v180_v37, %v6019_v33  ;;  %v6052_v59 = vld [vmem:[%s6003_s3 + $0x28] sm:$0xff]  ;;  %v5557_v0 = vld [vmem:[#allocation5 + $0x100] sm:$0xff]   ;;  %v6077_v13 = vld [vmem:[%s6003_s3 + $0x30] sm:$0xff] }
  0x67   : > { %v520_v49 = vrot.slane %v180_v37, 1  ;;  %v536_v50 = vrot.slane %v181_v38, 1  ;;  %v590_v51 = vrot.slane %v181_v38, %v6023_v36  ;;  %v391_v54 = vsel %vm389_vm0, %v358_v42, %v374_v46  ;;  %v5558_v9 = vld [vmem:[#allocation5 + $0x148] sm:$0xff]   ;;  %v5567_v37 = vld [vmem:[#allocation5 + $0x180] sm:$0xff]   ;;  %v5662_v27 = vld [vmem:[#allocation5 + $0x450] sm:$0xff]  }
  0x68   : > { %4428 = vmatpush3.bf16.msra.mxu0 %v5538_v14  ;;  %1195 = vmatprep.mubr.bf16.mxu0 %v6031_v40  ;;  %v407_v55 = vsel %vm389_vm0, %v374_v46, %v358_v42  ;;  %v390_v56 = vsel %vm389_vm0, %v357_v44, %v373_v47  ;;  %v406_v57 = vsel %vm389_vm0, %v373_v47, %v357_v44  ;;  %v359_v7 = vrot.slane %v6049_v58, 7  ;;  %v5559_v10 = vld [vmem:[#allocation5 + $0x108] sm:$0xff]   ;;  %v5663_v31 = vld [vmem:[#allocation5 + $0x458] sm:$0xff]  }
  0x69   : > { %4540 = vmatpush3.bf16.msra.mxu1 %v5539_v15  ;;  %4429 = vmatprep.subr.bf16.mxu0 %v5540_v16  ;;  %v490_v60 = vsel %vm422_vm1, %v431_v43, %v407_v55  ;;  %v488_v61 = vsel %vm422_vm1, %v427_v48, %v406_v57  ;;  %v553_v62 = vsel %vm552_vm2, %v520_v49, %v536_v50  ;;  %v375_v8 = vrot.slane %v6052_v59, 7  ;;  %v6083_v15 = vld [vmem:[%s6003_s3 + $0x38] sm:$0xff]  ;;  %v5564_v43 = vld [vmem:[#allocation5 + $0x160] sm:$0xff]   ;;  %v5569_v47 = vld [vmem:[#allocation5 + $0x1c8] sm:$0xff]  }
  0x6a   : > { %4541 = vmatprep.subr.bf16.mxu1 %v5541_v17  ;;  %v569_v63 = vsel %vm552_vm2, %v536_v50, %v520_v49  ;;  %v684_v1 = vpack.c.bf16 %v391_v54, %v490_v60  ;;  %v6062_v2 = vpack.c.bf16 %v390_v56, %v488_v61  ;;  %v570_v11 = vsel %vm552_vm2, %v537_v4, %v521_v53  ;;  %v5566_v50 = vld [vmem:[#allocation5 + $0x120] sm:$0xff]   ;;  %v5568_v54 = vld [vmem:[#allocation5 + $0x168] sm:$0xff]   ;;  %v6138_v56 = vld [vmem:[%s6003_s3 + $0x50] sm:$0xff] }
  0x6b   : > { %v652_v3 = vsel %vm586_vm3, %v590_v51, %v569_v63  ;;  %v435_v12 = vrot.slane %v6049_v58, %v6019_v33  ;;  %v408_v14 = vsel %vm389_vm0, %v375_v8, %v359_v7  ;;  %v554_v16 = vsel %vm552_vm2, %v521_v53, %v537_v4  ;;  %v6141_v57 = vld [vmem:[%s6003_s3 + $0x58] sm:$0xff]  ;;  %v5572_v63 = vld [vmem:[#allocation5 + $0x170] sm:$0xff]  }
  0x6c   : > { %4430 = vmatpush3.bf16.msra.mxu0 %v5542_v18  ;;  %v6066_v5 = vpack.c.bf16 %v652_v3, %v553_v62  ;;  %1356 = vmatprep.mubr.bf16.mxu1 %v684_v1  ;;  %v654_v17 = vsel %vm586_vm3, %v594_v6, %v570_v11  ;;  %v5560_v18 = vld [vmem:[#allocation5 + $0x150] sm:$0xff]   ;;  %v376_v22 = vrot.slane %v6083_v15, 7  ;;  %v522_v41 = vrot.slane %v6049_v58, 1 }
  0x6d   : > { %4542 = vmatpush3.bf16.msra.mxu1 %v5543_v19  ;;  %4431 = vmatprep.subr.bf16.mxu0 %v5544_v20  ;;  %v392_v19 = vsel %vm389_vm0, %v359_v7, %v375_v8  ;;  %v492_v20 = vsel %vm422_vm1, %v435_v12, %v408_v14  ;;  %v538_v42 = vrot.slane %v6052_v59, 1  ;;  %v6124_v46 = vpack.c.bf16 %v6052_v59, %v6049_v58  ;;  %v5571_v58 = vld [vmem:[#allocation5 + $0x188] sm:$0xff]   ;;  %v5573_v4 = vld [vmem:[#allocation5 + $0x1d0] sm:$0xff]   ;;  %v6169_v12 = vld [vmem:[%s6003_s3 + $0x60] sm:$0xff] }
  0x6e   : > { %4543 = vmatprep.subr.bf16.mxu1 %v5545_v21  ;;  %v360_v21 = vrot.slane %v6077_v13, 7  ;;  %v598_v49 = vrot.slane %v6052_v59, %v6023_v36  ;;  %v5570_v59 = vld [vmem:[#allocation5 + $0x128] sm:$0xff]   ;;  %v523_v62 = vrot.slane %v6077_v13, 1  ;;  %v539_v3 = vrot.slane %v6083_v15, 1  ;;  %v5574_v14 = vld [vmem:[#allocation5 + $0x130] sm:$0xff]  }
  0x6f   : > { %v571_v51 = vsel %vm552_vm2, %v538_v42, %v522_v41  ;;  %v555_v60 = vsel %vm552_vm2, %v522_v41, %v538_v42  ;;  %v362_v6 = vrot.slane %v6138_v56, 7  ;;  %v378_v7 = vrot.slane %v6141_v57, 7  ;;  %v5577_v41 = vld [vmem:[#allocation5 + $0x198] sm:$0xff]   ;;  %v5580_v42 = vld [vmem:[#allocation5 + $0x1e0] sm:$0xff]  }
  0x70   : > { %4432 = vmatpush3.bf16.msra.mxu0 %v5546_v23  ;;  %v6097_v23 = vpack.c.bf16 %v654_v17, %v554_v16  ;;  %v393_v38 = vsel %vm389_vm0, %v360_v21, %v376_v22  ;;  %v656_v61 = vsel %vm586_vm3, %v598_v49, %v571_v51  ;;  %v602_v11 = vrot.slane %v6083_v15, %v6023_v36  ;;  %v6214_v49 = vld [vmem:[%s6003_s3 + $0x88] sm:$0xff] }
  0x71   : > { %4544 = vmatpush3.bf16.msra.mxu1 %v5547_v24  ;;  %4433 = vmatprep.subr.bf16.mxu0 %v5548_v25  ;;  %v6099_v24 = vpack.c.bf16 %v392_v19, %v492_v20  ;;  %v5561_v25 = vld [vmem:[#allocation5 + $0x110] sm:$0xff]   ;;  %v6158_v8 = vpack.c.bf16 %v656_v61, %v555_v60  ;;  %v572_v16 = vsel %vm552_vm2, %v539_v3, %v523_v62  ;;  %v5576_v19 = vld [vmem:[#allocation5 + $0x1d8] sm:$0xff]   ;;  %v5581_v60 = vld [vmem:[#allocation5 + $0x1a0] sm:$0xff]  }
  0x72   : > { %4545 = vmatprep.subr.bf16.mxu1 %v5549_v26  ;;  %v439_v26 = vrot.slane %v6077_v13, %v6019_v33  ;;  %v447_v17 = vrot.slane %v6138_v56, %v6019_v33  ;;  %v451_v51 = vrot.slane %v6169_v12, %v6019_v33 }
  0x74   : > { %4434 = vmatpush3.bf16.msra.mxu0 %v5550_v28  ;;  %v6104_v28 = vld [vmem:[%s6003_s3 + $0x40] sm:$0xff] }
  0x75   : > { %4546 = vmatpush3.bf16.msra.mxu1 %v5551_v29  ;;  %4435 = vmatprep.subr.bf16.mxu0 %v5552_v30  ;;  %v5562_v29 = vld [vmem:[#allocation5 + $0x158] sm:$0xff]   ;;  %v409_v30 = vsel %vm389_vm0, %v376_v22, %v360_v21  ;;  %v361_v44 = vrot.slane %v6104_v28, 7  ;;  %v443_v53 = vrot.slane %v6104_v28, %v6019_v33  ;;  %v524_v20 = vrot.slane %v6104_v28, 1 }
  0x76   : > { %4547 = vmatprep.subr.bf16.mxu1 %v5553_v32  ;;  %v5565_v32 = vld [vmem:[#allocation5 + $0x1c0] sm:$0xff]   ;;  %v494_v39 = vsel %vm422_vm1, %v439_v26, %v409_v30  ;;  %v5578_v21 = vld [vmem:[#allocation5 + $0x178] sm:$0xff]   ;;  %v556_v22 = vsel %vm552_vm2, %v523_v62, %v539_v3  ;;  %v381_v3 = vrot.slane %v6214_v49, 7 }
  0x77   : > { %v6126_v48 = vpack.c.bf16 %v393_v38, %v494_v39  ;;  %v6194_v30 = vld [vmem:[%s6003_s3 + $0x78] sm:$0xff]  ;;  %v363_v38 = vrot.slane %v6169_v12, 7 }
  0x78   : > { %4436 = vmatpush3.bf16.msra.mxu0 %v5554_v34  ;;  %v6111_v34 = vld [vmem:[%s6003_s3 + $0x48] sm:$0xff] }
  0x79   : > { %4548 = vmatpush3.bf16.msra.mxu1 %v5555_v35  ;;  %4645 = vmatprep.subr.bf16.mxu0 %v5556_v45  ;;  %v5563_v35 = vld [vmem:[#allocation5 + $0x118] sm:$0xff]   ;;  %v377_v45 = vrot.slane %v6111_v34, 7  ;;  %v540_v26 = vrot.slane %v6111_v34, 1 }
  0x7a   : > { %4757 = vmatprep.subr.bf16.mxu1 %v5565_v32  ;;  %v5579_v32 = vld [vmem:[#allocation5 + $0x138] sm:$0xff]  }
  0x7b   : > { %1196 = vmatmul.mubr.bf16.vlgmr.msra.gmra.mrb[0].mxu0 %v6062_v2  ;;  %v410_v55 = vsel %vm389_vm0, %v377_v45, %v361_v44 }
  0x7c   : > { %1357 = vmatmul.mubr.bf16.vlgmr.msra.gmra.mrb[0].mxu1 %v6066_v5  ;;  %4646 = vmatpush3.bf16.msra.mxu0 %v5557_v0  ;;  %v394_v0 = vsel %vm389_vm0, %v361_v44, %v377_v45  ;;  %v6206_v44 = vpack.c.bf16 %v6111_v34, %v6104_v28  ;;  %v606_v45 = vrot.slane %v6111_v34, %v6023_v36 }
  0x7d   : > { %1203 = vmatprep.mubr.bf16.mxu0 %v6038_v52  ;;  %1364 = vmatprep.mubr.bf16.mxu1 %v6062_v2  ;;  %v573_v28 = vsel %vm552_vm2, %v540_v26, %v524_v20 }
  0x7e   : > { %4647 = vmatprep.subr.bf16.mxu0 %v5558_v9  ;;  %4758 = vmatpush3.bf16.msra.mxu1 %v5567_v37  ;;  %v6162_v9 = vpack.c.bf16 %v6083_v15, %v6077_v13  ;;  %v6176_v13 = vld [vmem:[%s6003_s3 + $0x68] sm:$0xff]  ;;  %v411_v15 = vsel %vm389_vm0, %v378_v7, %v362_v6 }
  0x7f   : > { %4759 = vmatprep.subr.bf16.mxu1 %v5569_v47  ;;  %v498_v37 = vsel %vm422_vm1, %v447_v17, %v411_v15  ;;  %v379_v39 = vrot.slane %v6176_v13, 7  ;;  %v6211_v47 = vld [vmem:[%s6003_s3 + $0x80] sm:$0xff]  ;;  %v542_v62 = vrot.slane %v6176_v13, 1  ;;  %v543_v17 = vrot.slane %v6194_v30, 1 }
  0x80   : > { %4648 = vmatpush3.bf16.msra.mxu0 %v5559_v10  ;;  %v6254_v15 = vld [vmem:[%s6003_s3 + $0xa0] sm:$0xff] }
  0x81   : > { %4649 = vmatprep.subr.bf16.mxu0 %v5560_v18  ;;  %v5575_v18 = vld [vmem:[#allocation5 + $0x190] sm:$0xff]   ;;  %v412_v61 = vsel %vm389_vm0, %v379_v39, %v363_v38 }
  0x82   : > { %4760 = vmatpush3.bf16.msra.mxu1 %v5571_v58  ;;  %v526_v58 = vrot.slane %v6169_v12, 1 }
  0x83   : > { %1204 = vmatmul.mubr.bf16.gmra.mrb[4].mxu0 %v684_v1  ;;  %v496_v1 = vsel %vm422_vm1, %v443_v53, %v410_v55  ;;  %4761 = vmatprep.subr.bf16.mxu1 %v5573_v4  ;;  %v525_v53 = vrot.slane %v6138_v56, 1  ;;  %v380_v55 = vrot.slane %v6194_v30, 7  ;;  %v557_v4 = vsel %vm552_vm2, %v524_v20, %v540_v26  ;;  %v6256_v20 = vld [vmem:[#allocation5 + $0x200] sm:$0xff]   ;;  %v6266_v26 = vld [vmem:[%s6003_s3 + $0xa8] sm:$0xff] }
  0x84   : > { %1365 = vmatmul.mubr.bf16.gmra.mrb[4].mxu1 %v6097_v23  ;;  %1211 = vmatprep.mubr.bf16.mxu0 %v6031_v40  ;;  %v6164_v10 = vpack.c.bf16 %v394_v0, %v496_v1  ;;  %v5582_v0 = vld [vmem:[#allocation5 + $0x1e8] sm:$0xff]   ;;  %v365_v1 = vrot.slane %v6211_v47, 7 }
  0x85   : > { %1372 = vmatprep.mubr.bf16.mxu1 %v6099_v24  ;;  %4650 = vmatpush3.bf16.msra.mxu0 %v5561_v25  ;;  %v658_v25 = vsel %vm586_vm3, %v602_v11, %v572_v16  ;;  %v500_v11 = vsel %vm422_vm1, %v451_v51, %v412_v61  ;;  %v5583_v16 = vld [vmem:[#allocation5 + $0x1a8] sm:$0xff]   ;;  %v544_v51 = vrot.slane %v6214_v49, 1 }
  0x86   : > { %4651 = vmatprep.subr.bf16.mxu0 %v5562_v29  ;;  %v6191_v29 = vld [vmem:[%s6003_s3 + $0x70] sm:$0xff]  ;;  %4762 = vmatpush3.bf16.msra.mxu1 %v5575_v18 }
  0x87   : > { %4763 = vmatprep.subr.bf16.mxu1 %v5576_v19  ;;  %v364_v34 = vrot.slane %v6191_v29, 7  ;;  %v5584_v19 = vld [vmem:[#allocation5 + $0x1f0] sm:$0xff]  }
  0x89   : > { %4652 = vmatpush3.bf16.msra.mxu0 %v5563_v35  ;;  %v395_v35 = vsel %vm389_vm0, %v362_v6, %v378_v7  ;;  %v660_v6 = vsel %vm586_vm3, %v606_v45, %v573_v28  ;;  %v396_v7 = vsel %vm389_vm0, %v363_v38, %v379_v39  ;;  %v528_v38 = vrot.slane %v6211_v47, 1  ;;  %v5586_v39 = vld [vmem:[#allocation5 + $0x1f8] sm:$0xff]  }
  0x8a   : > { %4653 = vmatprep.subr.bf16.mxu0 %v5564_v43  ;;  %v6202_v43 = vpack.c.bf16 %v658_v25, %v556_v22  ;;  %4764 = vmatpush3.bf16.msra.mxu1 %v5577_v41  ;;  %v6262_v22 = vpack.c.bf16 %v6141_v57, %v6138_v56  ;;  %v455_v56 = vrot.slane %v6191_v29, %v6019_v33  ;;  %v6282_v45 = vld [vmem:[%s6003_s3 + $0xb8] sm:$0xff]  ;;  %v367_v28 = vrot.slane %v6254_v15, 7 }
  0x8b   : > { %1212 = vmatmul.mubr.bf16.gmra.mrb[8].mxu0 %v6062_v2  ;;  %4765 = vmatprep.subr.bf16.mxu1 %v5580_v42  ;;  %v6279_v42 = vld [vmem:[%s6003_s3 + $0xb0] sm:$0xff] }
  0x8c   : > { %1373 = vmatmul.mubr.bf16.gmra.mrb[8].mxu1 %v6066_v5  ;;  %1219 = vmatprep.mubr.bf16.mxu0 %v6124_v46 }
  0x8d   : > { %1380 = vmatprep.mubr.bf16.mxu1 %v6126_v48  ;;  %4654 = vmatpush3.bf16.msra.mxu0 %v5566_v50  ;;  %v6216_v50 = vpack.c.bf16 %v395_v35, %v498_v37  ;;  %v6268_v35 = vpack.c.bf16 %v396_v7, %v500_v11  ;;  %v610_v37 = vrot.slane %v6141_v57, %v6023_v36  ;;  %v6302_v7 = vld [vmem:[%s6003_s3 + $0xc8] sm:$0xff] }
  0x8e   : > { %4655 = vmatprep.subr.bf16.mxu0 %v5568_v54  ;;  %v541_v54 = vrot.slane %v6141_v57, 1  ;;  %4766 = vmatpush3.bf16.msra.mxu1 %v5581_v60  ;;  %v413_v57 = vsel %vm389_vm0, %v380_v55, %v364_v34  ;;  %v397_v11 = vsel %vm389_vm0, %v364_v34, %v380_v55  ;;  %v6321_v34 = vpack.c.bf16 %v6176_v13, %v6169_v12 }
  0x8f   : > { %4767 = vmatprep.subr.bf16.mxu1 %v5582_v0  ;;  %v614_v55 = vrot.slane %v6176_v13, %v6023_v36  ;;  %v6373_v12 = vpack.c.bf16 %v6194_v30, %v6191_v29 }
  0x90   : > { %v574_v41 = vsel %vm552_vm2, %v541_v54, %v525_v53  ;;  %v558_v60 = vsel %vm552_vm2, %v525_v53, %v541_v54  ;;  %v6310_v54 = vld [vmem:[%s6003_s3 + $0xd0] sm:$0xff] }
  0x91   : > { %4656 = vmatpush3.bf16.msra.mxu0 %v5570_v59  ;;  %v6228_v59 = vld [vmem:[%s6003_s3 + $0x90] sm:$0xff]  ;;  %v662_v61 = vsel %vm586_vm3, %v610_v37, %v574_v41  ;;  %v6313_v37 = vld [vmem:[%s6003_s3 + $0xd8] sm:$0xff] }
  0x92   : > { %4657 = vmatprep.subr.bf16.mxu0 %v5572_v63  ;;  %v6235_v63 = vld [vmem:[%s6003_s3 + $0x98] sm:$0xff]  ;;  %v366_v18 = vrot.slane %v6228_v59, 7  ;;  %4768 = vmatpush3.bf16.msra.mxu1 %v5583_v16  ;;  %v502_v16 = vsel %vm422_vm1, %v455_v56, %v413_v57 }
  0x93   : > { %1220 = vmatmul.mubr.bf16.gmra.mrb[12].mxu0 %v6099_v24  ;;  %v382_v25 = vrot.slane %v6235_v63, 7  ;;  %4769 = vmatprep.subr.bf16.mxu1 %v5584_v19  ;;  %v545_v53 = vrot.slane %v6235_v63, 1  ;;  %v5587_v41 = vld [vmem:[#allocation5 + $0x1b8] sm:$0xff]   ;;  %v6317_v19 = vpack.c.bf16 %v662_v61, %v558_v60  ;;  %v6325_v56 = vpack.c.bf16 %v397_v11, %v502_v16 }
  0x94   : > { %1381 = vmatmul.mubr.bf16.gmra.mrb[12].mxu1 %v6158_v8  ;;  %1227 = vmatprep.mubr.bf16.mxu0 %v6162_v9  ;;  %v414_v60 = vsel %vm389_vm0, %v381_v3, %v365_v1  ;;  %v459_v61 = vrot.slane %v6211_v47, %v6019_v33  ;;  %v385_v16 = vrot.slane %v6302_v7, 7 }
  0x95   : > { %1388 = vmatprep.mubr.bf16.mxu1 %v6164_v10  ;;  %4658 = vmatpush3.bf16.msra.mxu0 %v5574_v14  ;;  %v527_v14 = vrot.slane %v6191_v29, 1  ;;  %v6417_v29 = vpack.c.bf16 %v6214_v49, %v6211_v47  ;;  %v6463_v47 = vpack.c.bf16 %v6235_v63, %v6228_v59 }
  0x96   : > { %4659 = vmatprep.subr.bf16.mxu0 %v5578_v21  ;;  %v6258_v21 = vpack.c.bf16 %v660_v6, %v557_v4  ;;  %v6299_v6 = vld [vmem:[%s6003_s3 + $0xc0] sm:$0xff]  ;;  %v398_v4 = vsel %vm389_vm0, %v365_v1, %v381_v3  ;;  %v504_v0 = vsel %vm422_vm1, %v459_v61, %v414_v60  ;;  %v463_v1 = vrot.slane %v6228_v59, %v6019_v33 }
  0x97   : > { %v369_v11 = vrot.slane %v6299_v6, 7  ;;  %v6375_v13 = vpack.c.bf16 %v398_v4, %v504_v0  ;;  %v415_v3 = vsel %vm389_vm0, %v382_v25, %v366_v18  ;;  %v560_v0 = vsel %vm552_vm2, %v527_v14, %v543_v17 }
  0x98   : > { %v532_v61 = vrot.slane %v6299_v6, 1 }
  0x99   : > { %4660 = vmatpush3.bf16.msra.mxu0 %v5579_v32  ;;  %v5585_v32 = vld [vmem:[#allocation5 + $0x1b0] sm:$0xff]  }
  0x9a   : > { %5365 = vmatprep.subr.bf16.mxu0 %v6256_v20  ;;  %4770 = vmatpush3.bf16.msra.mxu1 %v5585_v32  ;;  %v575_v32 = vsel %vm552_vm2, %v542_v62, %v526_v58 }
  0x9b   : > { %1228 = vmatmul.mubr.bf16.gmra.mrb[16].mxu0 %v6126_v48  ;;  %4771 = vmatprep.subr.bf16.mxu1 %v5586_v39  ;;  %v664_v57 = vsel %vm586_vm3, %v614_v55, %v575_v32  ;;  %v399_v55 = vsel %vm389_vm0, %v366_v18, %v382_v25  ;;  %v506_v32 = vsel %vm422_vm1, %v463_v1, %v415_v3  ;;  %v8532_v25 = vrot.slane %v6266_v26, 7 }
  0x9c   : > { %1389 = vmatmul.mubr.bf16.gmra.mrb[16].mxu1 %v6202_v43  ;;  %1235 = vmatprep.mubr.bf16.mxu0 %v6206_v44  ;;  %v467_v18 = vrot.slane %v6254_v15, %v6019_v33 }
  0x9d   : > { %1396 = vmatprep.mubr.bf16.mxu1 %v6216_v50  ;;  %v416_v60 = vsel %vm389_vm0, %v8532_v25, %v367_v28  ;;  %v8533_v1 = vmov %v8532_v25 }
  0x9e   : > { %4772 = vmatpush3.bf16.msra.mxu1 %v5587_v41  ;;  %v559_v41 = vsel %vm552_vm2, %v526_v58, %v542_v62  ;;  %v618_v58 = vrot.slane %v6194_v30, %v6023_v36  ;;  %v576_v62 = vsel %vm552_vm2, %v543_v17, %v527_v14  ;;  %v6419_v30 = vpack.c.bf16 %v399_v55, %v506_v32 }
  0x9f   : > { %v6369_v39 = vpack.c.bf16 %v664_v57, %v559_v41  ;;  %v622_v14 = vrot.slane %v6214_v49, %v6023_v36  ;;  %v577_v17 = vsel %vm552_vm2, %v544_v51, %v528_v38  ;;  %v548_v41 = vrot.slane %v6302_v7, 1 }
  0xa0   : > { %v666_v4 = vsel %vm586_vm3, %v618_v58, %v576_v62  ;;  %v561_v58 = vsel %vm552_vm2, %v528_v38, %v544_v51  ;;  %v400_v3 = vsel %vm389_vm0, %v367_v28, %v8533_v1  ;;  %v626_v51 = vrot.slane %v6235_v63, %v6023_v36  ;;  %v6507_v63 = vld [vmem:[%s6003_s3 + $0xe8] sm:$0xff] }
  0xa1   : > { %v6413_v57 = vpack.c.bf16 %v666_v4, %v560_v0  ;;  %v668_v62 = vsel %vm586_vm3, %v622_v14, %v577_v17  ;;  %v508_v0 = vsel %vm422_vm1, %v467_v18, %v416_v60  ;;  %v8534_v4 = vrot.slane %v6228_v59, 1 }
  0xa2   : > { %v6459_v49 = vpack.c.bf16 %v668_v62, %v561_v58  ;;  %v6465_v38 = vpack.c.bf16 %v400_v3, %v508_v0  ;;  %v471_v55 = vrot.slane %v6279_v42, %v6019_v33  ;;  %v8535_v32 = vrot.slane %v6279_v42, 7  ;;  %v6504_v0 = vld [vmem:[%s6003_s3 + $0xe0] sm:$0xff] }
  0xa3   : > { %1236 = vmatmul.mubr.bf16.gmra.mrb[20].mxu0 %v6164_v10  ;;  %v578_v28 = vsel %vm552_vm2, %v545_v53, %v8534_v4  ;;  %v8536_v14 = vrot.slane %v6282_v45, 7  ;;  %v8537_v18 = vmov %v8534_v4  ;;  %v630_v4 = vrot.slane %v6266_v26, %v6023_v36 }
  0xa4   : > { %1397 = vmatmul.mubr.bf16.gmra.mrb[20].mxu1 %v6258_v21  ;;  %1243 = vmatprep.mubr.bf16.mxu0 %v6262_v22  ;;  %v562_v25 = vsel %vm552_vm2, %v8537_v18, %v545_v53  ;;  %v670_v60 = vsel %vm586_vm3, %v626_v51, %v578_v28  ;;  %v8539_v62 = vmov %v8535_v32  ;;  %v6513_v53 = vpack.c.bf16 %v6266_v26, %v6254_v15 }
  0xa5   : > { %1404 = vmatprep.mubr.bf16.mxu1 %v6268_v35  ;;  %v417_v17 = vsel %vm389_vm0, %v8536_v14, %v8535_v32  ;;  %v8538_v58 = vmov %v8536_v14  ;;  %v6509_v59 = vpack.c.bf16 %v670_v60, %v562_v25  ;;  %v8540_v28 = vrot.slane %v6254_v15, 1 }
  0xa6   : > { %v401_v1 = vsel %vm389_vm0, %v8539_v62, %v8538_v58  ;;  %v510_v3 = vsel %vm422_vm1, %v471_v55, %v417_v17  ;;  %v8541_v32 = vrot.slane %v6266_v26, 1  ;;  %v475_v14 = vrot.slane %v6299_v6, %v6019_v33 }
  0xa7   : > { %v6515_v51 = vpack.c.bf16 %v401_v1, %v510_v3  ;;  %v418_v17 = vsel %vm389_vm0, %v385_v16, %v369_v11  ;;  %v371_v18 = vrot.slane %v6504_v0, 7  ;;  %v387_v25 = vrot.slane %v6507_v63, 7 }
  0xa8   : > { %v579_v55 = vsel %vm552_vm2, %v8541_v32, %v8540_v28  ;;  %v8542_v60 = vmov %v8541_v32  ;;  %v8543_v58 = vmov %v8540_v28  ;;  %v402_v3 = vsel %vm389_vm0, %v369_v11, %v385_v16 }
  0xa9   : > { %v563_v62 = vsel %vm552_vm2, %v8543_v58, %v8542_v60  ;;  %v672_v1 = vsel %vm586_vm3, %v630_v4, %v579_v55  ;;  %v512_v28 = vsel %vm422_vm1, %v475_v14, %v418_v17  ;;  %v6559_v15 = vpack.c.bf16 %v6282_v45, %v6279_v42 }
  0xaa   : > { %v6555_v32 = vpack.c.bf16 %v672_v1, %v563_v62  ;;  %v6561_v26 = vpack.c.bf16 %v402_v3, %v512_v28  ;;  %v634_v4 = vrot.slane %v6282_v45, %v6023_v36  ;;  %v8544_v55 = vrot.slane %v6279_v42, 1 }
  0xab   : > { %1244 = vmatmul.mubr.bf16.gmra.mrb[24].mxu0 %v6216_v50  ;;  %v8545_v60 = vrot.slane %v6282_v45, 1  ;;  %v479_v16 = vrot.slane %v6310_v54, %v6019_v33  ;;  %v8546_v14 = vrot.slane %v6310_v54, 7  ;;  %v8547_v17 = vrot.slane %v6313_v37, 7 }
  0xac   : > { %1405 = vmatmul.mubr.bf16.gmra.mrb[24].mxu1 %v6317_v19  ;;  %1251 = vmatprep.mubr.bf16.mxu0 %v6321_v34  ;;  %v8549_v1 = vmov %v8544_v55  ;;  %v6603_v42 = vpack.c.bf16 %v6302_v7, %v6299_v6 }
  0xad   : > { %1412 = vmatprep.mubr.bf16.mxu1 %v6325_v56  ;;  %v580_v11 = vsel %vm552_vm2, %v8545_v60, %v8544_v55  ;;  %v419_v58 = vsel %vm389_vm0, %v8547_v17, %v8546_v14  ;;  %v8548_v62 = vmov %v8545_v60  ;;  %v8550_v55 = vmov %v8547_v17 }
  0xae   : > { %v564_v3 = vsel %vm552_vm2, %v8549_v1, %v8548_v62  ;;  %v674_v28 = vsel %vm586_vm3, %v634_v4, %v580_v11  ;;  %v8551_v60 = vmov %v8546_v14  ;;  %v514_v17 = vsel %vm422_vm1, %v479_v16, %v419_v58  ;;  %8553 = vst [vmem:[#allocation12_spill] sm:$0xff] %v6603_v42  ;;  %v6623_v1 = vld [vmem:[%s6003_s3 + $0xf0] sm:$0xff] }
  0xaf   : > { %v403_v14 = vsel %vm389_vm0, %v8551_v60, %v8550_v55  ;;  %v6599_v45 = vpack.c.bf16 %v674_v28, %v564_v3  ;;  %v638_v4 = vrot.slane %v6302_v7, %v6023_v36  ;;  %v581_v11 = vsel %vm552_vm2, %v548_v41, %v532_v61  ;;  %v6626_v3 = vld [vmem:[%s6003_s3 + $0xf8] sm:$0xff] }
  0xb0   : > { %v6605_v62 = vpack.c.bf16 %v403_v14, %v514_v17  ;;  %v483_v16 = vrot.slane %v6504_v0, %v6019_v33  ;;  %v420_v58 = vsel %vm389_vm0, %v387_v25, %v371_v18  ;;  %v565_v28 = vsel %vm552_vm2, %v532_v61, %v548_v41 }
  0xb1   : > { %8552 = vst [vmem:[#allocation11_spill] sm:$0xff] %v6599_v45  ;;  %v676_v55 = vsel %vm586_vm3, %v638_v4, %v581_v11  ;;  %v404_v60 = vsel %vm389_vm0, %v371_v18, %v387_v25  ;;  %v533_v17 = vrot.slane %v6310_v54, 1  ;;  %v372_v7 = vrot.slane %v6623_v1, 7 }
  0xb2   : > { %v516_v14 = vsel %vm422_vm1, %v483_v16, %v420_v58  ;;  %v388_v6 = vrot.slane %v6626_v3, 7  ;;  %v6649_v61 = vpack.c.bf16 %v6313_v37, %v6310_v54  ;;  %v642_v18 = vrot.slane %v6313_v37, %v6023_v36 }
  0xb3   : > { %1252 = vmatmul.mubr.bf16.gmra.mrb[28].mxu0 %v6268_v35  ;;  %v6651_v41 = vpack.c.bf16 %v404_v60, %v516_v14  ;;  %v487_v4 = vrot.slane %v6623_v1, %v6019_v33  ;;  %v6679_v14 = vpack.c.bf16 %v6507_v63, %v6504_v0 }
  0xb4   : > { %1413 = vmatmul.mubr.bf16.gmra.mrb[28].mxu1 %v6369_v39  ;;  %1259 = vmatprep.mubr.bf16.mxu0 %v6373_v12  ;;  %v421_v11 = vsel %vm389_vm0, %v388_v6, %v372_v7  ;;  %v405_v16 = vsel %vm389_vm0, %v372_v7, %v388_v6 }
  0xb5   : > { %1420 = vmatprep.mubr.bf16.mxu1 %v6375_v13  ;;  %v518_v58 = vsel %vm422_vm1, %v487_v4, %v421_v11  ;;  %v5591_v4 = vld [vmem:[#allocation5 + $0x218] sm:$0xff]  }
  0xbb   : > { %1260 = vmatmul.mubr.bf16.gmra.mrb[32].mxu0 %v6325_v56 }
  0xbc   : > { %1421 = vmatmul.mubr.bf16.gmra.mrb[32].mxu1 %v6413_v57  ;;  %1267 = vmatprep.mubr.bf16.mxu0 %v6417_v29 }
  0xbd   : > { %1428 = vmatprep.mubr.bf16.mxu1 %v6419_v30 }
  0xc3   : > { %1268 = vmatmul.mubr.bf16.gmra.mrb[36].mxu0 %v6375_v13 }
  0xc4   : > { %1429 = vmatmul.mubr.bf16.gmra.mrb[36].mxu1 %v6459_v49  ;;  %1275 = vmatprep.mubr.bf16.mxu0 %v6463_v47 }
  0xc5   : > { %1436 = vmatprep.mubr.bf16.mxu1 %v6465_v38 }
  0xcb   : > { %1276 = vmatmul.mubr.bf16.gmra.mrb[40].mxu0 %v6419_v30 }
  0xcc   : > { %1437 = vmatmul.mubr.bf16.gmra.mrb[40].mxu1 %v6509_v59  ;;  %1283 = vmatprep.mubr.bf16.mxu0 %v6513_v53 }
  0xcd   : > { %1444 = vmatprep.mubr.bf16.mxu1 %v6515_v51 }
  0xd3   : > { %1284 = vmatmul.mubr.bf16.gmra.mrb[44].mxu0 %v6465_v38 }
  0xd4   : > { %1445 = vmatmul.mubr.bf16.gmra.mrb[44].mxu1 %v6555_v32  ;;  %1291 = vmatprep.mubr.bf16.mxu0 %v6559_v15 }
  0xd5   : > { %1452 = vmatprep.mubr.bf16.mxu1 %v6561_v26 }
  0xdb   : > { %1292 = vmatmul.mubr.bf16.gmra.mrb[48].mxu0 %v6515_v51 }
  0xdc   : > { %1453 = vmatmul.mubr.bf16.gmra.mrb[48].mxu1 %v6599_v45  ;;  %1299 = vmatprep.mubr.bf16.mxu0 %v6603_v42  ;;  %v549_v42 = vrot.slane %v6313_v37, 1  ;;  %v6645_v45 = vpack.c.bf16 %v676_v55, %v565_v28  ;;  %v534_v28 = vrot.slane %v6504_v0, 1  ;;  %v550_v55 = vrot.slane %v6507_v63, 1 }
  0xdd   : > { %1460 = vmatprep.mubr.bf16.mxu1 %v6605_v62 }
  0xde   : > { %v582_v25 = vsel %vm552_vm2, %v549_v42, %v533_v17  ;;  %v566_v54 = vsel %vm552_vm2, %v533_v17, %v549_v42  ;;  %v6681_v42 = vpack.c.bf16 %v405_v16, %v518_v58  ;;  %v646_v17 = vrot.slane %v6507_v63, %v6023_v36  ;;  %v5589_v63 = vld [vmem:[#allocation5 + $0x208] sm:$0xff]  }
  0xdf   : > { %v678_v37 = vsel %vm586_vm3, %v642_v18, %v582_v25  ;;  %v583_v7 = vsel %vm552_vm2, %v550_v55, %v534_v28  ;;  %v567_v0 = vsel %vm552_vm2, %v534_v28, %v550_v55  ;;  %v5590_v25 = vld [vmem:[#allocation5 + $0x210] sm:$0xff]  }
  0xe0   : > { %v6675_v60 = vpack.c.bf16 %v678_v37, %v566_v54  ;;  %v680_v6 = vsel %vm586_vm3, %v646_v17, %v583_v7 }
  0xe1   : > { %v6695_v18 = vpack.c.bf16 %v680_v6, %v567_v0  ;;  %v535_v0 = vrot.slane %v6623_v1, 1  ;;  %v551_v6 = vrot.slane %v6626_v3, 1 }
  0xe3   : > { %1300 = vmatmul.mubr.bf16.gmra.mrb[52].mxu0 %v6561_v26 }
  0xe4   : > { %1461 = vmatmul.mubr.bf16.gmra.mrb[52].mxu1 %v6645_v45  ;;  %1307 = vmatprep.mubr.bf16.mxu0 %v6649_v61 }
  0xe5   : > { %1468 = vmatprep.mubr.bf16.mxu1 %v6651_v41 }
  0xeb   : > { %1308 = vmatmul.mubr.bf16.gmra.mrb[56].mxu0 %v6605_v62 }
  0xec   : > { %1469 = vmatmul.mubr.bf16.gmra.mrb[56].mxu1 %v6675_v60  ;;  %1315 = vmatprep.mubr.bf16.mxu0 %v6679_v14 }
  0xed   : > { %1476 = vmatprep.mubr.bf16.mxu1 %v6681_v42 }
  0xf3   : > { %1316 = vmatmul.mubr.bf16.gmra.mrb[60].mxu0 %v6651_v41 }
  0xf4   : > { %1477 = vmatmul.mubr.bf16.gmra.mrb[60].mxu1 %v6695_v18  ;;  %1517 = vmatprep.mubr.bf16.mxu0 %v6097_v23  ;;  %v5595_v23 = vld [vmem:[#allocation5 + $0x238] sm:$0xff]  }
  0xf5   : > { %1678 = vmatprep.mubr.bf16.mxu1 %v6031_v40 }
  0xfb   : > { %1518 = vmatmul.mubr.bf16.vlgmr.msra.gmra.mrb[64].mxu0 %v6038_v52  ;;  %v5592_v52 = vld [vmem:[#allocation5 + $0x220] sm:$0xff]  }
  0xfc   : > { %5366 = vmatpush3.bf16.msra.mxu0 %v6256_v20  ;;  %1679 = vmatmul.mubr.bf16.vlgmr.msra.gmra.mrb[64].mxu1 %v6062_v2  ;;  %v5593_v2 = vld [vmem:[#allocation5 + $0x228] sm:$0xff]  }
  0xfd   : > { %1525 = vmatprep.mubr.bf16.mxu0 %v6066_v5  ;;  %1686 = vmatprep.mubr.bf16.mxu1 %v6124_v46 }
  0xfe   : > { %5367 = vmatprep.subr.bf16.mxu0 %v5589_v63 }
 0x100   : > { %5368 = vmatpush3.bf16.msra.mxu0 %v5589_v63 }
 0x101   : > { %5369 = vmatprep.subr.bf16.mxu0 %v5590_v25 }
 0x103   : > { %1526 = vmatmul.mubr.bf16.gmra.mrb[68].mxu0 %v6031_v40  ;;  %v5594_v40 = vld [vmem:[#allocation5 + $0x230] sm:$0xff]  }
 0x104   : > { %1687 = vmatmul.mubr.bf16.gmra.mrb[68].mxu1 %v6099_v24  ;;  %1533 = vmatprep.mubr.bf16.mxu0 %v6158_v8  ;;  %v8554_v24 = vld [vmem:[#allocation11_spill] sm:$0xff] }
 0x105   : > { %1694 = vmatprep.mubr.bf16.mxu1 %v6162_v9  ;;  %5370 = vmatpush3.bf16.msra.mxu0 %v5590_v25 }
 0x106   : > { %5371 = vmatprep.subr.bf16.mxu0 %v5591_v4 }
 0x109   : > { %5372 = vmatpush3.bf16.msra.mxu0 %v5591_v4 }
 0x10a   : > { %5373 = vmatprep.subr.bf16.mxu0 %v5592_v52 }
 0x10b   : > { %1534 = vmatmul.mubr.bf16.gmra.mrb[72].mxu0 %v6124_v46  ;;  %v8555_v46 = vld [vmem:[#allocation12_spill] sm:$0xff] }
 0x10c   : > { %1695 = vmatmul.mubr.bf16.gmra.mrb[72].mxu1 %v6126_v48  ;;  %1541 = vmatprep.mubr.bf16.mxu0 %v6202_v43 }
 0x10d   : > { %1702 = vmatprep.mubr.bf16.mxu1 %v6206_v44  ;;  %5374 = vmatpush3.bf16.msra.mxu0 %v5592_v52 }
 0x10e   : > { %5375 = vmatprep.subr.bf16.mxu0 %v5593_v2 }
 0x111   : > { %5376 = vmatpush3.bf16.msra.mxu0 %v5593_v2 }
 0x112   : > { %5377 = vmatprep.subr.bf16.mxu0 %v5594_v40 }
 0x113   : > { %1542 = vmatmul.mubr.bf16.gmra.mrb[76].mxu0 %v6162_v9 }
 0x114   : > { %1703 = vmatmul.mubr.bf16.gmra.mrb[76].mxu1 %v6164_v10  ;;  %1549 = vmatprep.mubr.bf16.mxu0 %v6258_v21 }
 0x115   : > { %1710 = vmatprep.mubr.bf16.mxu1 %v6262_v22  ;;  %5378 = vmatpush3.bf16.msra.mxu0 %v5594_v40 }
 0x116   : > { %5379 = vmatprep.subr.bf16.mxu0 %v5595_v23 }
 0x119   : > { %5380 = vmatpush3.bf16.msra.mxu0 %v5595_v23 }
 0x11b   : > { %1550 = vmatmul.mubr.bf16.gmra.mrb[80].mxu0 %v6206_v44 }
 0x11c   : > { %1711 = vmatmul.mubr.bf16.gmra.mrb[80].mxu1 %v6216_v50  ;;  %1557 = vmatprep.mubr.bf16.mxu0 %v6317_v19 }
 0x11d   : > { %1718 = vmatprep.mubr.bf16.mxu1 %v6321_v34 }
 0x123   : > { %1558 = vmatmul.mubr.bf16.gmra.mrb[84].mxu0 %v6262_v22 }
 0x124   : > { %1719 = vmatmul.mubr.bf16.gmra.mrb[84].mxu1 %v6268_v35  ;;  %1565 = vmatprep.mubr.bf16.mxu0 %v6369_v39 }
 0x125   : > { %1726 = vmatprep.mubr.bf16.mxu1 %v6373_v12 }
 0x12b   : > { %1566 = vmatmul.mubr.bf16.gmra.mrb[88].mxu0 %v6321_v34 }
 0x12c   : > { %1727 = vmatmul.mubr.bf16.gmra.mrb[88].mxu1 %v6325_v56  ;;  %1573 = vmatprep.mubr.bf16.mxu0 %v6413_v57 }
 0x12d   : > { %1734 = vmatprep.mubr.bf16.mxu1 %v6417_v29 }
 0x133   : > { %1574 = vmatmul.mubr.bf16.gmra.mrb[92].mxu0 %v6373_v12 }
 0x134   : > { %1735 = vmatmul.mubr.bf16.gmra.mrb[92].mxu1 %v6375_v13  ;;  %1581 = vmatprep.mubr.bf16.mxu0 %v6459_v49 }
 0x135   : > { %1742 = vmatprep.mubr.bf16.mxu1 %v6463_v47 }
 0x13b   : > { %1582 = vmatmul.mubr.bf16.gmra.mrb[96].mxu0 %v6417_v29 }
 0x13c   : > { %1743 = vmatmul.mubr.bf16.gmra.mrb[96].mxu1 %v6419_v30  ;;  %1589 = vmatprep.mubr.bf16.mxu0 %v6509_v59 }
 0x13d   : > { %1750 = vmatprep.mubr.bf16.mxu1 %v6513_v53 }
 0x143   : > { %1590 = vmatmul.mubr.bf16.gmra.mrb[100].mxu0 %v6463_v47 }
 0x144   : > { %1751 = vmatmul.mubr.bf16.gmra.mrb[100].mxu1 %v6465_v38  ;;  %1597 = vmatprep.mubr.bf16.mxu0 %v6555_v32 }
 0x145   : > { %1758 = vmatprep.mubr.bf16.mxu1 %v6559_v15 }
 0x14b   : > { %1598 = vmatmul.mubr.bf16.gmra.mrb[104].mxu0 %v6513_v53 }
 0x14c   : > { %1759 = vmatmul.mubr.bf16.gmra.mrb[104].mxu1 %v6515_v51  ;;  %1605 = vmatprep.mubr.bf16.mxu0 %v8554_v24 }
 0x14d   : > { %1766 = vmatprep.mubr.bf16.mxu1 %v8555_v46 }
 0x14e   : > { %v4437_v48 = vpop.f32.mrb[0].mxu0 }
 0x14f   : > { %v4549_v9 = vpop.f32.mrb[0].mxu1  ;;  %v4438_v10 = vpop.f32.mrb[1].mxu0 }
 0x150   : > { %v4439_v44 = vadd.f32 %v4438_v10, %v4437_v48  ;;  %v4550_v50 = vpop.f32.mrb[1].mxu1  ;;  %v4440_v20 = vpop.f32.mrb[2].mxu0  ;;  %v650_v48 = vrot.slane %v6626_v3, %v6023_v36 }
 0x151   : > { %v4551_v22 = vadd.f32 %v4550_v50, %v4549_v9  ;;  %v4552_v35 = vpop.f32.mrb[2].mxu1  ;;  %v4441_v34 = vpop.f32.mrb[3].mxu0 }
 0x152   : > { %v4442_v56 = vadd.f32 %v4441_v34, %v4440_v20  ;;  %v4553_v12 = vpop.f32.mrb[3].mxu1 }
 0x153   : > { %v4554_v13 = vadd.f32 %v4553_v12, %v4552_v35  ;;  %1606 = vmatmul.mubr.bf16.gmra.mrb[108].mxu0 %v6559_v15  ;;  %v6747_v29 = vadd.f32 %v4551_v22, %v4439_v44  ;;  %v584_v44 = vsel %vm552_vm2, %v551_v6, %v535_v0 }
 0x154   : > { %1767 = vmatmul.mubr.bf16.gmra.mrb[108].mxu1 %v6561_v26  ;;  %1613 = vmatprep.mubr.bf16.mxu0 %v6645_v45 }
 0x155   : > { %1774 = vmatprep.mubr.bf16.mxu1 %v6649_v61  ;;  %v6752_v30 = vadd.f32 %v4554_v13, %v4442_v56 }
 0x156   : > { %v4443_v47 = vpop.f32.mrb[4].mxu0 }
 0x157   : > { %v4555_v38 = vpop.f32.mrb[4].mxu1  ;;  %v4444_v53 = vpop.f32.mrb[5].mxu0 }
 0x158   : > { %v4445_v51 = vadd.f32 %v4444_v53, %v4443_v47  ;;  %v4556_v11 = vpop.f32.mrb[5].mxu1  ;;  %v4446_v54 = vpop.f32.mrb[6].mxu0 }
 0x159   : > { %v4557_v37 = vadd.f32 %v4556_v11, %v4555_v38  ;;  %v4558_v16 = vpop.f32.mrb[6].mxu1  ;;  %v4447_v58 = vpop.f32.mrb[7].mxu0 }
 0x15a   : > { %v4448_v15 = vadd.f32 %v4447_v58, %v4446_v54  ;;  %v4559_v28 = vpop.f32.mrb[7].mxu1 }
 0x15b   : > { %v4560_v55 = vadd.f32 %v4559_v28, %v4558_v16  ;;  %1614 = vmatmul.mubr.bf16.gmra.mrb[112].mxu0 %v8555_v46  ;;  %v6755_v26 = vadd.f32 %v4557_v37, %v4445_v51 }
 0x15c   : > { %1775 = vmatmul.mubr.bf16.gmra.mrb[112].mxu1 %v6605_v62  ;;  %1621 = vmatprep.mubr.bf16.mxu0 %v6675_v60  ;;  %v714_v62 = vpack.c.bf16 %v6626_v3, %v6623_v1  ;;  %v568_v1 = vsel %vm552_vm2, %v535_v0, %v551_v6  ;;  %v682_v3 = vsel %vm586_vm3, %v650_v48, %v584_v44 }
 0x15d   : > { %1782 = vmatprep.mubr.bf16.mxu1 %v6679_v14  ;;  %v6760_v17 = vadd.f32 %v4560_v55, %v4448_v15  ;;  %v6781_v47 = vpack.c.bf16 %v682_v3, %v568_v1 }
 0x15e   : > { %v4449_v7 = vpop.f32.mrb[8].mxu0 }
 0x15f   : > { %v4561_v63 = vpop.f32.mrb[8].mxu1  ;;  %v4450_v25 = vpop.f32.mrb[9].mxu0 }
 0x160   : > { %v4451_v4 = vadd.f32 %v4450_v25, %v4449_v7  ;;  %v4562_v52 = vpop.f32.mrb[9].mxu1  ;;  %v4452_v2 = vpop.f32.mrb[10].mxu0 }
 0x161   : > { %v4563_v40 = vadd.f32 %v4562_v52, %v4561_v63  ;;  %v4564_v23 = vpop.f32.mrb[10].mxu1  ;;  %v4453_v46 = vpop.f32.mrb[11].mxu0 }
 0x162   : > { %v4454_v9 = vadd.f32 %v4453_v46, %v4452_v2  ;;  %v4565_v10 = vpop.f32.mrb[11].mxu1 }
 0x163   : > { %v4566_v50 = vadd.f32 %v4565_v10, %v4564_v23  ;;  %1622 = vmatmul.mubr.bf16.gmra.mrb[116].mxu0 %v6649_v61  ;;  %v6771_v20 = vadd.f32 %v4563_v40, %v4451_v4 }
 0x164   : > { %1783 = vmatmul.mubr.bf16.gmra.mrb[116].mxu1 %v6651_v41  ;;  %1629 = vmatprep.mubr.bf16.mxu0 %v6695_v18 }
 0x165   : > { %1790 = vmatprep.mubr.bf16.mxu1 %v714_v62  ;;  %v6779_v22 = vadd.f32 %v4566_v50, %v4454_v9 }
 0x166   : > { %v4455_v35 = vpop.f32.mrb[12].mxu0 }
 0x167   : > { %v4567_v34 = vpop.f32.mrb[12].mxu1  ;;  %v4456_v56 = vpop.f32.mrb[13].mxu0 }
 0x168   : > { %v4457_v12 = vadd.f32 %v4456_v56, %v4455_v35  ;;  %v4568_v61 = vpop.f32.mrb[13].mxu1  ;;  %v4458_v13 = vpop.f32.mrb[14].mxu0 }
 0x169   : > { %v4569_v38 = vadd.f32 %v4568_v61, %v4567_v34  ;;  %v4570_v53 = vpop.f32.mrb[14].mxu1  ;;  %v4459_v51 = vpop.f32.mrb[15].mxu0 }
 0x16a   : > { %v4460_v11 = vadd.f32 %v4459_v51, %v4458_v13  ;;  %v4571_v54 = vpop.f32.mrb[15].mxu1 }
 0x16b   : > { %v4572_v37 = vadd.f32 %v4571_v54, %v4570_v53  ;;  %1630 = vmatmul.mubr.bf16.gmra.mrb[120].mxu0 %v6679_v14  ;;  %v6784_v16 = vadd.f32 %v4569_v38, %v4457_v12 }
 0x16c   : > { %1791 = vmatmul.mubr.bf16.gmra.mrb[120].mxu1 %v6681_v42  ;;  %1637 = vmatprep.mubr.bf16.mxu0 %v6781_v47 }
 0x16d   : > { %1798 = vmatprep.mubr.bf16.mxu1 %v6679_v14  ;;  %v6789_v58 = vadd.f32 %v4572_v37, %v4460_v11 }
 0x16e   : > { %v4461_v15 = vpop.f32.mrb[16].mxu0 }
 0x16f   : > { %v4573_v28 = vpop.f32.mrb[16].mxu1  ;;  %v4462_v55 = vpop.f32.mrb[17].mxu0 }
 0x170   : > { %v4463_v7 = vadd.f32 %v4462_v55, %v4461_v15  ;;  %v4574_v0 = vpop.f32.mrb[17].mxu1  ;;  %v4464_v6 = vpop.f32.mrb[18].mxu0 }
 0x171   : > { %v4575_v63 = vadd.f32 %v4574_v0, %v4573_v28  ;;  %v4576_v25 = vpop.f32.mrb[18].mxu1  ;;  %v4465_v4 = vpop.f32.mrb[19].mxu0 }
 0x172   : > { %v4466_v52 = vadd.f32 %v4465_v4, %v4464_v6  ;;  %v4577_v2 = vpop.f32.mrb[19].mxu1 }
 0x173   : > { %v4578_v40 = vadd.f32 %v4577_v2, %v4576_v25  ;;  %1638 = vmatmul.mubr.bf16.gmra.mrb[124].mxu0 %v714_v62  ;;  %v6791_v42 = vadd.f32 %v4575_v63, %v4463_v7 }
 0x174   : > { %1799 = vmatmul.mubr.bf16.gmra.mrb[124].mxu1 %v6651_v41  ;;  %5381 = vmatprep.mubr.bf16.mxu0 %v6066_v5 }
 0x175   : > { %v6795_v14 = vadd.f32 %v4578_v40, %v4466_v52 }
 0x176   : > { %v4467_v23 = vpop.f32.mrb[20].mxu0 }
 0x177   : > { %v4579_v46 = vpop.f32.mrb[20].mxu1  ;;  %v4468_v48 = vpop.f32.mrb[21].mxu0 }
 0x178   : > { %v4469_v9 = vadd.f32 %v4468_v48, %v4467_v23  ;;  %v4580_v10 = vpop.f32.mrb[21].mxu1  ;;  %v4470_v44 = vpop.f32.mrb[22].mxu0 }
 0x179   : > { %v4581_v50 = vadd.f32 %v4580_v10, %v4579_v46  ;;  %v4582_v1 = vpop.f32.mrb[22].mxu1  ;;  %v4471_v3 = vpop.f32.mrb[23].mxu0 }
 0x17a   : > { %v4472_v35 = vadd.f32 %v4471_v3, %v4470_v44  ;;  %v4583_v34 = vpop.f32.mrb[23].mxu1 }
 0x17b   : > { %v4584_v62 = vadd.f32 %v4583_v34, %v4582_v1  ;;  %5382 = vmatmul.mubr.bf16.vlgmr.msra.gmra.mrb[128].mxu0 %v6158_v8  ;;  %v6798_v56 = vadd.f32 %v4581_v50, %v4469_v9 }
 0x17c   : > { %5385 = vmatprep.mubr.bf16.mxu0 %v6202_v43 }
 0x17d   : > { %v6801_v5 = vadd.f32 %v4584_v62, %v4472_v35 }
 0x17e   : > { %v4473_v41 = vpop.f32.mrb[24].mxu0 }
 0x17f   : > { %v4585_v12 = vpop.f32.mrb[24].mxu1  ;;  %v4474_v61 = vpop.f32.mrb[25].mxu0 }
 0x180   : > { %v4475_v13 = vadd.f32 %v4474_v61, %v4473_v41  ;;  %v4586_v38 = vpop.f32.mrb[25].mxu1  ;;  %v4476_v53 = vpop.f32.mrb[26].mxu0 }
 0x181   : > { %v4587_v51 = vadd.f32 %v4586_v38, %v4585_v12  ;;  %v4588_v11 = vpop.f32.mrb[26].mxu1  ;;  %v4477_v54 = vpop.f32.mrb[27].mxu0 }
 0x182   : > { %v4478_v37 = vadd.f32 %v4477_v54, %v4476_v53  ;;  %v4589_v15 = vpop.f32.mrb[27].mxu1 }
 0x183   : > { %v4590_v28 = vadd.f32 %v4589_v15, %v4588_v11  ;;  %5386 = vmatmul.mubr.bf16.gmra.mrb[132].mxu0 %v6258_v21  ;;  %v6804_v8 = vadd.f32 %v4587_v51, %v4475_v13 }
 0x184   : > { %5389 = vmatprep.mubr.bf16.mxu0 %v6317_v19 }
 0x185   : > { %v6807_v43 = vadd.f32 %v4590_v28, %v4478_v37 }
 0x186   : > { %v4479_v55 = vpop.f32.mrb[28].mxu0 }
 0x187   : > { %v4591_v7 = vpop.f32.mrb[28].mxu1  ;;  %v4480_v0 = vpop.f32.mrb[29].mxu0 }
 0x188   : > { %v4481_v6 = vadd.f32 %v4480_v0, %v4479_v55  ;;  %v4592_v63 = vpop.f32.mrb[29].mxu1  ;;  %v4482_v25 = vpop.f32.mrb[30].mxu0 }
 0x189   : > { %v4593_v4 = vadd.f32 %v4592_v63, %v4591_v7  ;;  %v4594_v52 = vpop.f32.mrb[30].mxu1  ;;  %v4483_v2 = vpop.f32.mrb[31].mxu0 }
 0x18a   : > { %v4484_v40 = vadd.f32 %v4483_v2, %v4482_v25  ;;  %v4595_v23 = vpop.f32.mrb[31].mxu1 }
 0x18b   : > { %v4596_v46 = vadd.f32 %v4595_v23, %v4594_v52  ;;  %5390 = vmatmul.mubr.bf16.gmra.mrb[136].mxu0 %v6369_v39  ;;  %v6810_v21 = vadd.f32 %v4593_v4, %v4481_v6 }
 0x18c   : > { %5393 = vmatprep.mubr.bf16.mxu0 %v6413_v57 }
 0x18d   : > { %v6813_v19 = vadd.f32 %v4596_v46, %v4484_v40 }
 0x18e   : > { %v4485_v48 = vpop.f32.mrb[32].mxu0 }
 0x18f   : > { %v4597_v9 = vpop.f32.mrb[32].mxu1  ;;  %v4486_v10 = vpop.f32.mrb[33].mxu0 }
 0x190   : > { %v4487_v44 = vadd.f32 %v4486_v10, %v4485_v48  ;;  %v4598_v50 = vpop.f32.mrb[33].mxu1  ;;  %v4488_v1 = vpop.f32.mrb[34].mxu0 }
 0x191   : > { %v4599_v3 = vadd.f32 %v4598_v50, %v4597_v9  ;;  %v4600_v35 = vpop.f32.mrb[34].mxu1  ;;  %v4489_v34 = vpop.f32.mrb[35].mxu0 }
 0x192   : > { %v4490_v62 = vadd.f32 %v4489_v34, %v4488_v1  ;;  %v4601_v41 = vpop.f32.mrb[35].mxu1 }
 0x193   : > { %v6815_v12 = vadd.f32 %v4599_v3, %v4487_v44  ;;  %v4602_v39 = vadd.f32 %v4601_v41, %v4600_v35  ;;  %5394 = vmatmul.mubr.bf16.gmra.mrb[140].mxu0 %v6459_v49 }
 0x194   : > { %5397 = vmatprep.mubr.bf16.mxu0 %v6509_v59 }
 0x195   : > { %v6819_v57 = vadd.f32 %v4602_v39, %v4490_v62 }
 0x196   : > { %v4491_v61 = vpop.f32.mrb[36].mxu0 }
 0x197   : > { %v4603_v13 = vpop.f32.mrb[36].mxu1  ;;  %v4492_v38 = vpop.f32.mrb[37].mxu0 }
 0x198   : > { %v4493_v53 = vadd.f32 %v4492_v38, %v4491_v61  ;;  %v4604_v51 = vpop.f32.mrb[37].mxu1  ;;  %v4494_v11 = vpop.f32.mrb[38].mxu0 }
 0x199   : > { %v4605_v54 = vadd.f32 %v4604_v51, %v4603_v13  ;;  %v4606_v37 = vpop.f32.mrb[38].mxu1  ;;  %v4495_v15 = vpop.f32.mrb[39].mxu0 }
 0x19a   : > { %v4496_v28 = vadd.f32 %v4495_v15, %v4494_v11  ;;  %v4607_v55 = vpop.f32.mrb[39].mxu1 }
 0x19b   : > { %v6821_v7 = vadd.f32 %v4605_v54, %v4493_v53  ;;  %v4608_v0 = vadd.f32 %v4607_v55, %v4606_v37  ;;  %5398 = vmatmul.mubr.bf16.gmra.mrb[144].mxu0 %v6555_v32 }
 0x19c   : > { %5401 = vmatprep.mubr.bf16.mxu0 %v8554_v24 }
 0x19d   : > { %v6825_v49 = vadd.f32 %v4608_v0, %v4496_v28 }
 0x19e   : > { %v4497_v59 = vpop.f32.mrb[40].mxu0 }
 0x19f   : > { %v4609_v6 = vpop.f32.mrb[40].mxu1  ;;  %v4498_v63 = vpop.f32.mrb[41].mxu0 }
 0x1a0   : > { %v4499_v25 = vadd.f32 %v4498_v63, %v4497_v59  ;;  %v4610_v4 = vpop.f32.mrb[41].mxu1  ;;  %v4500_v52 = vpop.f32.mrb[42].mxu0 }
 0x1a1   : > { %v4611_v2 = vadd.f32 %v4610_v4, %v4609_v6  ;;  %v4612_v40 = vpop.f32.mrb[42].mxu1  ;;  %v4501_v23 = vpop.f32.mrb[43].mxu0 }
 0x1a2   : > { %v4502_v46 = vadd.f32 %v4501_v23, %v4500_v52  ;;  %v4613_v48 = vpop.f32.mrb[43].mxu1 }
 0x1a3   : > { %v6827_v9 = vadd.f32 %v4611_v2, %v4499_v25  ;;  %v4614_v10 = vadd.f32 %v4613_v48, %v4612_v40  ;;  %5402 = vmatmul.mubr.bf16.gmra.mrb[148].mxu0 %v6645_v45 }
 0x1a4   : > { %5405 = vmatprep.mubr.bf16.mxu0 %v6675_v60 }
 0x1a5   : > { %v6831_v32 = vadd.f32 %v4614_v10, %v4502_v46 }
 0x1a6   : > { %v4503_v24 = vpop.f32.mrb[44].mxu0 }
 0x1a7   : > { %v4615_v44 = vpop.f32.mrb[44].mxu1  ;;  %v4504_v50 = vpop.f32.mrb[45].mxu0 }
 0x1a8   : > { %v4505_v1 = vadd.f32 %v4504_v50, %v4503_v24  ;;  %v4616_v3 = vpop.f32.mrb[45].mxu1  ;;  %v4506_v35 = vpop.f32.mrb[46].mxu0 }
 0x1a9   : > { %v4617_v34 = vadd.f32 %v4616_v3, %v4615_v44  ;;  %v4618_v62 = vpop.f32.mrb[46].mxu1  ;;  %v4507_v41 = vpop.f32.mrb[47].mxu0 }
 0x1aa   : > { %v4508_v39 = vadd.f32 %v4507_v41, %v4506_v35  ;;  %v4619_v61 = vpop.f32.mrb[47].mxu1 }
 0x1ab   : > { %v6833_v13 = vadd.f32 %v4617_v34, %v4505_v1  ;;  %v4620_v38 = vadd.f32 %v4619_v61, %v4618_v62  ;;  %5406 = vmatmul.mubr.bf16.gmra.mrb[152].mxu0 %v6695_v18 }
 0x1ac   : > { %5409 = vmatprep.mubr.bf16.mxu0 %v6781_v47 }
 0x1ad   : > { %v6837_v45 = vadd.f32 %v4620_v38, %v4508_v39 }
 0x1ae   : > { %v4509_v60 = vpop.f32.mrb[48].mxu0 }
 0x1af   : > { %v4621_v53 = vpop.f32.mrb[48].mxu1  ;;  %v4510_v51 = vpop.f32.mrb[49].mxu0 }
 0x1b0   : > { %v4511_v11 = vadd.f32 %v4510_v51, %v4509_v60  ;;  %v4622_v54 = vpop.f32.mrb[49].mxu1  ;;  %v4512_v37 = vpop.f32.mrb[50].mxu0 }
 0x1b1   : > { %v4623_v15 = vadd.f32 %v4622_v54, %v4621_v53  ;;  %v4624_v28 = vpop.f32.mrb[50].mxu1  ;;  %v4513_v55 = vpop.f32.mrb[51].mxu0 }
 0x1b2   : > { %v4514_v0 = vadd.f32 %v4513_v55, %v4512_v37  ;;  %v4625_v59 = vpop.f32.mrb[51].mxu1 }
 0x1b3   : > { %v6839_v6 = vadd.f32 %v4623_v15, %v4511_v11  ;;  %v4626_v63 = vadd.f32 %v4625_v59, %v4624_v28  ;;  %5410 = vmatmul.mubr.bf16.gmra.mrb[156].mxu0 %v6695_v18 }
 0x1b5   : > { %v6842_v25 = vadd.f32 %v4626_v63, %v4514_v0 }
 0x1b6   : > { %v4515_v47 = vpop.f32.mrb[52].mxu0 }
 0x1b7   : > { %v4627_v4 = vpop.f32.mrb[52].mxu1  ;;  %v4516_v52 = vpop.f32.mrb[53].mxu0 }
 0x1b8   : > { %v4517_v2 = vadd.f32 %v4516_v52, %v4515_v47  ;;  %v4628_v40 = vpop.f32.mrb[53].mxu1  ;;  %v4518_v23 = vpop.f32.mrb[54].mxu0 }
 0x1b9   : > { %v4629_v46 = vadd.f32 %v4628_v40, %v4627_v4  ;;  %v4630_v48 = vpop.f32.mrb[54].mxu1  ;;  %v4519_v10 = vpop.f32.mrb[55].mxu0 }
 0x1ba   : > { %v4520_v24 = vadd.f32 %v4519_v10, %v4518_v23  ;;  %v4631_v44 = vpop.f32.mrb[55].mxu1 }
 0x1bb   : > { %v6844_v50 = vadd.f32 %v4629_v46, %v4517_v2  ;;  %v4632_v1 = vadd.f32 %v4631_v44, %v4630_v48 }
 0x1bd   : > { %v6846_v3 = vadd.f32 %v4632_v1, %v4520_v24 }
 0x1be   : > { %v4521_v35 = vpop.f32.mrb[56].mxu0 }
 0x1bf   : > { %v4633_v18 = vpop.f32.mrb[56].mxu1  ;;  %v4522_v34 = vpop.f32.mrb[57].mxu0 }
 0x1c0   : > { %v4523_v62 = vadd.f32 %v4522_v34, %v4521_v35  ;;  %v4634_v41 = vpop.f32.mrb[57].mxu1  ;;  %v4524_v39 = vpop.f32.mrb[58].mxu0 }
 0x1c1   : > { %v4635_v61 = vadd.f32 %v4634_v41, %v4633_v18  ;;  %v4636_v38 = vpop.f32.mrb[58].mxu1  ;;  %v4525_v60 = vpop.f32.mrb[59].mxu0 }
 0x1c2   : > { %v4526_v53 = vadd.f32 %v4525_v60, %v4524_v39  ;;  %v4637_v51 = vpop.f32.mrb[59].mxu1 }
 0x1c3   : > { %v6848_v11 = vadd.f32 %v4635_v61, %v4523_v62  ;;  %v4638_v54 = vadd.f32 %v4637_v51, %v4636_v38 }
 0x1c5   : > { %v6850_v37 = vadd.f32 %v4638_v54, %v4526_v53 }
 0x1c6   : > { %v4527_v15 = vpop.f32.mrb[60].mxu0 }
 0x1c7   : > { %v4639_v28 = vpop.f32.mrb[60].mxu1  ;;  %v4528_v55 = vpop.f32.mrb[61].mxu0 }
 0x1c8   : > { %v4529_v0 = vadd.f32 %v4528_v55, %v4527_v15  ;;  %v4640_v59 = vpop.f32.mrb[61].mxu1  ;;  %v4530_v63 = vpop.f32.mrb[62].mxu0 }
 0x1c9   : > { %v4641_v47 = vadd.f32 %v4640_v59, %v4639_v28  ;;  %v4642_v4 = vpop.f32.mrb[62].mxu1  ;;  %v4531_v52 = vpop.f32.mrb[63].mxu0 }
 0x1ca   : > { %v4532_v2 = vadd.f32 %v4531_v52, %v4530_v63  ;;  %v4643_v40 = vpop.f32.mrb[63].mxu1 }
 0x1cb   : > { %v6852_v23 = vadd.f32 %v4641_v47, %v4529_v0  ;;  %v4644_v46 = vadd.f32 %v4643_v40, %v4642_v4 }
 0x1cd   : > { %v6854_v48 = vadd.f32 %v4644_v46, %v4532_v2 }
 0x1ce   : > { %v4661_v10 = vpop.f32.mrb[64].mxu0 }
 0x1cf   : > { %v4662_v24 = vpop.f32.mrb[65].mxu0  ;;  %v4773_v44 = vpop.f32.mrb[64].mxu1 }
 0x1d0   : > { %v4663_v1 = vadd.f32 %v4662_v24, %v4661_v10  ;;  %v4664_v35 = vpop.f32.mrb[66].mxu0  ;;  %v4774_v18 = vpop.f32.mrb[65].mxu1 }
 0x1d1   : > { %v4665_v34 = vpop.f32.mrb[67].mxu0  ;;  %v4775_v62 = vadd.f32 %v4774_v18, %v4773_v44  ;;  %v4776_v41 = vpop.f32.mrb[66].mxu1 }
 0x1d2   : > { %v1520_v39 = vadd.f32 %v4663_v1, %v6747_v29  ;;  %v4666_v61 = vadd.f32 %v4665_v34, %v4664_v35  ;;  %v4777_v38 = vpop.f32.mrb[67].mxu1 }
 0x1d3   : > { %v4778_v60 = vadd.f32 %v4777_v38, %v4776_v41 }
 0x1d4   : > { %v1523_v53 = vadd.f32 %v4666_v61, %v6752_v30  ;;  %v6858_v51 = vadd.f32 %v4775_v62, %v1520_v39 }
 0x1d6   : > { %v4667_v54 = vpop.f32.mrb[68].mxu0  ;;  %v6860_v15 = vadd.f32 %v4778_v60, %v1523_v53 }
 0x1d7   : > { %v4668_v28 = vpop.f32.mrb[69].mxu0  ;;  %v4779_v55 = vpop.f32.mrb[68].mxu1 }
 0x1d8   : > { %v4669_v0 = vadd.f32 %v4668_v28, %v4667_v54  ;;  %v4670_v59 = vpop.f32.mrb[70].mxu0  ;;  %v4780_v63 = vpop.f32.mrb[69].mxu1 }
 0x1d9   : > { %v4671_v47 = vpop.f32.mrb[71].mxu0  ;;  %v4781_v4 = vadd.f32 %v4780_v63, %v4779_v55  ;;  %v4782_v52 = vpop.f32.mrb[70].mxu1 }
 0x1da   : > { %v1528_v29 = vadd.f32 %v4669_v0, %v6755_v26  ;;  %v4672_v2 = vadd.f32 %v4671_v47, %v4670_v59  ;;  %v4783_v40 = vpop.f32.mrb[71].mxu1 }
 0x1db   : > { %v4784_v46 = vadd.f32 %v4783_v40, %v4782_v52 }
 0x1dc   : > { %v1531_v30 = vadd.f32 %v4672_v2, %v6760_v17  ;;  %v6864_v10 = vadd.f32 %v4781_v4, %v1528_v29 }
 0x1de   : > { %v4673_v24 = vpop.f32.mrb[72].mxu0  ;;  %v6866_v44 = vadd.f32 %v4784_v46, %v1531_v30 }
 0x1df   : > { %v4674_v1 = vpop.f32.mrb[73].mxu0  ;;  %v4785_v35 = vpop.f32.mrb[72].mxu1 }
 0x1e0   : > { %v4675_v18 = vadd.f32 %v4674_v1, %v4673_v24  ;;  %v4676_v34 = vpop.f32.mrb[74].mxu0  ;;  %v4786_v62 = vpop.f32.mrb[73].mxu1 }
 0x1e1   : > { %v4677_v41 = vpop.f32.mrb[75].mxu0  ;;  %v4787_v39 = vadd.f32 %v4786_v62, %v4785_v35  ;;  %v4788_v61 = vpop.f32.mrb[74].mxu1 }
 0x1e2   : > { %v1536_v26 = vadd.f32 %v4675_v18, %v6771_v20  ;;  %v4678_v38 = vadd.f32 %v4677_v41, %v4676_v34  ;;  %v4789_v60 = vpop.f32.mrb[75].mxu1 }
 0x1e3   : > { %v4790_v53 = vadd.f32 %v4789_v60, %v4788_v61 }
 0x1e4   : > { %v1539_v17 = vadd.f32 %v4678_v38, %v6779_v22  ;;  %v6870_v54 = vadd.f32 %v4787_v39, %v1536_v26 }
 0x1e6   : > { %v4679_v28 = vpop.f32.mrb[76].mxu0  ;;  %v6872_v55 = vadd.f32 %v4790_v53, %v1539_v17 }
 0x1e7   : > { %v4680_v0 = vpop.f32.mrb[77].mxu0  ;;  %v4791_v59 = vpop.f32.mrb[76].mxu1 }
 0x1e8   : > { %v4681_v63 = vadd.f32 %v4680_v0, %v4679_v28  ;;  %v4682_v47 = vpop.f32.mrb[78].mxu0  ;;  %v4792_v4 = vpop.f32.mrb[77].mxu1 }
 0x1e9   : > { %v4683_v52 = vpop.f32.mrb[79].mxu0  ;;  %v4793_v29 = vadd.f32 %v4792_v4, %v4791_v59  ;;  %v4794_v2 = vpop.f32.mrb[78].mxu1 }
 0x1ea   : > { %v1544_v20 = vadd.f32 %v4681_v63, %v6784_v16  ;;  %v4684_v40 = vadd.f32 %v4683_v52, %v4682_v47  ;;  %v4795_v46 = vpop.f32.mrb[79].mxu1 }
 0x1eb   : > { %v4796_v30 = vadd.f32 %v4795_v46, %v4794_v2 }
 0x1ec   : > { %v1547_v22 = vadd.f32 %v4684_v40, %v6789_v58  ;;  %v6876_v24 = vadd.f32 %v4793_v29, %v1544_v20 }
 0x1ee   : > { %v4685_v1 = vpop.f32.mrb[80].mxu0  ;;  %v6878_v35 = vadd.f32 %v4796_v30, %v1547_v22 }
 0x1ef   : > { %v4686_v18 = vpop.f32.mrb[81].mxu0  ;;  %v4797_v34 = vpop.f32.mrb[80].mxu1 }
 0x1f0   : > { %v4687_v62 = vadd.f32 %v4686_v18, %v4685_v1  ;;  %v4688_v41 = vpop.f32.mrb[82].mxu0  ;;  %v4798_v39 = vpop.f32.mrb[81].mxu1 }
 0x1f1   : > { %v4689_v61 = vpop.f32.mrb[83].mxu0  ;;  %v4799_v26 = vadd.f32 %v4798_v39, %v4797_v34  ;;  %v4800_v38 = vpop.f32.mrb[82].mxu1 }
 0x1f2   : > { %v1552_v16 = vadd.f32 %v4687_v62, %v6791_v42  ;;  %v4690_v60 = vadd.f32 %v4689_v61, %v4688_v41  ;;  %v4801_v53 = vpop.f32.mrb[83].mxu1 }
 0x1f3   : > { %v4802_v17 = vadd.f32 %v4801_v53, %v4800_v38 }
 0x1f4   : > { %v1555_v58 = vadd.f32 %v4690_v60, %v6795_v14  ;;  %v6882_v28 = vadd.f32 %v4799_v26, %v1552_v16 }
 0x1f6   : > { %v4691_v0 = vpop.f32.mrb[84].mxu0  ;;  %v6884_v59 = vadd.f32 %v4802_v17, %v1555_v58 }
 0x1f7   : > { %v4692_v63 = vpop.f32.mrb[85].mxu0  ;;  %v4803_v47 = vpop.f32.mrb[84].mxu1 }
 0x1f8   : > { %v4693_v4 = vadd.f32 %v4692_v63, %v4691_v0  ;;  %v4694_v52 = vpop.f32.mrb[86].mxu0  ;;  %v4804_v29 = vpop.f32.mrb[85].mxu1 }
 0x1f9   : > { %v4695_v2 = vpop.f32.mrb[87].mxu0  ;;  %v4805_v20 = vadd.f32 %v4804_v29, %v4803_v47  ;;  %v4806_v40 = vpop.f32.mrb[86].mxu1 }
 0x1fa   : > { %v1560_v42 = vadd.f32 %v4693_v4, %v6798_v56  ;;  %v4696_v46 = vadd.f32 %v4695_v2, %v4694_v52  ;;  %v4807_v30 = vpop.f32.mrb[87].mxu1 }
 0x1fb   : > { %v4808_v22 = vadd.f32 %v4807_v30, %v4806_v40 }
 0x1fc   : > { %v1563_v14 = vadd.f32 %v4696_v46, %v6801_v5  ;;  %v6888_v1 = vadd.f32 %v4805_v20, %v1560_v42 }
 0x1fe   : > { %v4697_v18 = vpop.f32.mrb[88].mxu0  ;;  %v6890_v34 = vadd.f32 %v4808_v22, %v1563_v14  ;;  %v5596_v14 = vld [vmem:[#allocation5 + $0x280] sm:$0xff]  }
 0x1ff   : > { %v4698_v62 = vpop.f32.mrb[89].mxu0  ;;  %v4809_v41 = vpop.f32.mrb[88].mxu1  ;;  %4893 = vmatprep.subr.bf16.mxu1 %v5596_v14 }
 0x200   : > { %v4699_v39 = vadd.f32 %v4698_v62, %v4697_v18  ;;  %v4700_v61 = vpop.f32.mrb[90].mxu0  ;;  %v4810_v26 = vpop.f32.mrb[89].mxu1  ;;  %v5597_v18 = vld [vmem:[#allocation5 + $0x240] sm:$0xff]  }
 0x201   : > { %v4701_v38 = vpop.f32.mrb[91].mxu0  ;;  %v4811_v16 = vadd.f32 %v4810_v26, %v4809_v41  ;;  %v4812_v60 = vpop.f32.mrb[90].mxu1  ;;  %4894 = vmatpush3.bf16.msra.mxu1 %v5597_v18 }
 0x202   : > { %v1568_v56 = vadd.f32 %v4699_v39, %v6804_v8  ;;  %v4702_v53 = vadd.f32 %v4701_v38, %v4700_v61  ;;  %v4813_v17 = vpop.f32.mrb[91].mxu1 }
 0x203   : > { %v4814_v58 = vadd.f32 %v4813_v17, %v4812_v60 }
 0x204   : > { %v1571_v5 = vadd.f32 %v4702_v53, %v6807_v43  ;;  %v6894_v0 = vadd.f32 %v4811_v16, %v1568_v56 }
 0x206   : > { %v4703_v63 = vpop.f32.mrb[92].mxu0  ;;  %v6896_v47 = vadd.f32 %v4814_v58, %v1571_v5 }
 0x207   : > { %v4704_v4 = vpop.f32.mrb[93].mxu0  ;;  %v4815_v52 = vpop.f32.mrb[92].mxu1 }
 0x208   : > { %v4705_v29 = vadd.f32 %v4704_v4, %v4703_v63  ;;  %v4706_v2 = vpop.f32.mrb[94].mxu0  ;;  %v4816_v20 = vpop.f32.mrb[93].mxu1 }
 0x209   : > { %v4707_v40 = vpop.f32.mrb[95].mxu0  ;;  %v4817_v42 = vadd.f32 %v4816_v20, %v4815_v52  ;;  %v4818_v46 = vpop.f32.mrb[94].mxu1 }
 0x20a   : > { %v1576_v8 = vadd.f32 %v4705_v29, %v6810_v21  ;;  %v4708_v30 = vadd.f32 %v4707_v40, %v4706_v2  ;;  %v4819_v22 = vpop.f32.mrb[95].mxu1 }
 0x20b   : > { %v4820_v43 = vadd.f32 %v4819_v22, %v4818_v46 }
 0x20c   : > { %v1579_v62 = vadd.f32 %v4708_v30, %v6813_v19  ;;  %v6900_v41 = vadd.f32 %v4817_v42, %v1576_v8 }
 0x20e   : > { %v4709_v39 = vpop.f32.mrb[96].mxu0  ;;  %v6902_v61 = vadd.f32 %v4820_v43, %v1579_v62 }
 0x20f   : > { %v4710_v26 = vpop.f32.mrb[97].mxu0  ;;  %v4821_v38 = vpop.f32.mrb[96].mxu1 }
 0x210   : > { %v4711_v16 = vadd.f32 %v4710_v26, %v4709_v39  ;;  %v4712_v60 = vpop.f32.mrb[98].mxu0  ;;  %v4822_v56 = vpop.f32.mrb[97].mxu1 }
 0x211   : > { %v4713_v21 = vpop.f32.mrb[99].mxu0  ;;  %v4823_v53 = vadd.f32 %v4822_v56, %v4821_v38  ;;  %v4824_v17 = vpop.f32.mrb[98].mxu1 }
 0x212   : > { %v1584_v58 = vadd.f32 %v4711_v16, %v6815_v12  ;;  %v4714_v5 = vadd.f32 %v4713_v21, %v4712_v60  ;;  %v4825_v63 = vpop.f32.mrb[99].mxu1 }
 0x213   : > { %v4826_v19 = vadd.f32 %v4825_v63, %v4824_v17 }
 0x214   : > { %v1587_v4 = vadd.f32 %v4714_v5, %v6819_v57  ;;  %v6906_v52 = vadd.f32 %v4823_v53, %v1584_v58 }
 0x216   : > { %v4715_v29 = vpop.f32.mrb[100].mxu0  ;;  %v6908_v2 = vadd.f32 %v4826_v19, %v1587_v4 }
 0x217   : > { %v4716_v20 = vpop.f32.mrb[101].mxu0  ;;  %v4827_v40 = vpop.f32.mrb[100].mxu1 }
 0x218   : > { %v4717_v42 = vadd.f32 %v4716_v20, %v4715_v29  ;;  %v4718_v46 = vpop.f32.mrb[102].mxu0  ;;  %v4828_v8 = vpop.f32.mrb[101].mxu1 }
 0x219   : > { %v4719_v30 = vpop.f32.mrb[103].mxu0  ;;  %v4829_v22 = vadd.f32 %v4828_v8, %v4827_v40  ;;  %v4830_v14 = vpop.f32.mrb[102].mxu1 }
 0x21a   : > { %v1592_v12 = vadd.f32 %v4717_v42, %v6821_v7  ;;  %v4720_v18 = vadd.f32 %v4719_v30, %v4718_v46  ;;  %v4831_v43 = vpop.f32.mrb[103].mxu1 }
 0x21b   : > { %v4832_v62 = vadd.f32 %v4831_v43, %v4830_v14 }
 0x21c   : > { %v1595_v57 = vadd.f32 %v4720_v18, %v6825_v49  ;;  %v6912_v39 = vadd.f32 %v4829_v22, %v1592_v12 }
 0x21e   : > { %v4721_v26 = vpop.f32.mrb[104].mxu0  ;;  %v6914_v38 = vadd.f32 %v4832_v62, %v1595_v57 }
 0x21f   : > { %v4722_v16 = vpop.f32.mrb[105].mxu0  ;;  %v4833_v60 = vpop.f32.mrb[104].mxu1 }
 0x220   : > { %v4723_v56 = vadd.f32 %v4722_v16, %v4721_v26  ;;  %v4724_v21 = vpop.f32.mrb[106].mxu0  ;;  %v4834_v53 = vpop.f32.mrb[105].mxu1 }
 0x221   : > { %v4725_v17 = vpop.f32.mrb[107].mxu0  ;;  %v4835_v58 = vadd.f32 %v4834_v53, %v4833_v60  ;;  %v4836_v5 = vpop.f32.mrb[106].mxu1 }
 0x222   : > { %v1600_v7 = vadd.f32 %v4723_v56, %v6827_v9  ;;  %v4726_v63 = vadd.f32 %v4725_v17, %v4724_v21  ;;  %v4837_v19 = vpop.f32.mrb[107].mxu1 }
 0x223   : > { %v4838_v4 = vadd.f32 %v4837_v19, %v4836_v5 }
 0x224   : > { %v1603_v49 = vadd.f32 %v4726_v63, %v6831_v32  ;;  %v6918_v29 = vadd.f32 %v4835_v58, %v1600_v7 }
 0x226   : > { %v4727_v20 = vpop.f32.mrb[108].mxu0  ;;  %v6920_v40 = vadd.f32 %v4838_v4, %v1603_v49 }
 0x227   : > { %v4728_v42 = vpop.f32.mrb[109].mxu0  ;;  %v4839_v46 = vpop.f32.mrb[108].mxu1 }
 0x228   : > { %v4729_v8 = vadd.f32 %v4728_v42, %v4727_v20  ;;  %v4730_v30 = vpop.f32.mrb[110].mxu0  ;;  %v4840_v22 = vpop.f32.mrb[109].mxu1 }
 0x229   : > { %v4731_v14 = vpop.f32.mrb[111].mxu0  ;;  %v4841_v12 = vadd.f32 %v4840_v22, %v4839_v46  ;;  %v4842_v18 = vpop.f32.mrb[110].mxu1 }
 0x22a   : > { %v1608_v9 = vadd.f32 %v4729_v8, %v6833_v13  ;;  %v4732_v43 = vadd.f32 %v4731_v14, %v4730_v30  ;;  %v4843_v62 = vpop.f32.mrb[111].mxu1 }
 0x22b   : > { %v4844_v57 = vadd.f32 %v4843_v62, %v4842_v18 }
 0x22c   : > { %v1611_v32 = vadd.f32 %v4732_v43, %v6837_v45  ;;  %v6924_v26 = vadd.f32 %v4841_v12, %v1608_v9 }
 0x22e   : > { %v4733_v16 = vpop.f32.mrb[112].mxu0  ;;  %v6926_v60 = vadd.f32 %v4844_v57, %v1611_v32 }
 0x22f   : > { %v4734_v56 = vpop.f32.mrb[113].mxu0  ;;  %v4845_v21 = vpop.f32.mrb[112].mxu1 }
 0x230   : > { %v4735_v53 = vadd.f32 %v4734_v56, %v4733_v16  ;;  %v4736_v17 = vpop.f32.mrb[114].mxu0  ;;  %v4846_v58 = vpop.f32.mrb[113].mxu1 }
 0x231   : > { %v4737_v5 = vpop.f32.mrb[115].mxu0  ;;  %v4847_v7 = vadd.f32 %v4846_v58, %v4845_v21  ;;  %v4848_v63 = vpop.f32.mrb[114].mxu1 }
 0x232   : > { %v1616_v13 = vadd.f32 %v4735_v53, %v6839_v6  ;;  %v4738_v19 = vadd.f32 %v4737_v5, %v4736_v17  ;;  %v4849_v4 = vpop.f32.mrb[115].mxu1 }
 0x233   : > { %v4850_v49 = vadd.f32 %v4849_v4, %v4848_v63 }
 0x234   : > { %v1619_v45 = vadd.f32 %v4738_v19, %v6842_v25  ;;  %v6930_v20 = vadd.f32 %v4847_v7, %v1616_v13 }
 0x236   : > { %v4739_v42 = vpop.f32.mrb[116].mxu0  ;;  %v6932_v46 = vadd.f32 %v4850_v49, %v1619_v45 }
 0x237   : > { %v4740_v8 = vpop.f32.mrb[117].mxu0  ;;  %v4851_v30 = vpop.f32.mrb[116].mxu1 }
 0x238   : > { %v4741_v22 = vadd.f32 %v4740_v8, %v4739_v42  ;;  %v4742_v14 = vpop.f32.mrb[118].mxu0  ;;  %v4852_v12 = vpop.f32.mrb[117].mxu1 }
 0x239   : > { %v4743_v18 = vpop.f32.mrb[119].mxu0  ;;  %v4853_v9 = vadd.f32 %v4852_v12, %v4851_v30  ;;  %v4854_v43 = vpop.f32.mrb[118].mxu1 }
 0x23a   : > { %v1624_v6 = vadd.f32 %v4741_v22, %v6844_v50  ;;  %v4744_v62 = vadd.f32 %v4743_v18, %v4742_v14  ;;  %v4855_v57 = vpop.f32.mrb[119].mxu1 }
 0x23b   : > { %v4856_v32 = vadd.f32 %v4855_v57, %v4854_v43 }
 0x23c   : > { %v1627_v25 = vadd.f32 %v4744_v62, %v6846_v3  ;;  %v6936_v16 = vadd.f32 %v4853_v9, %v1624_v6 }
 0x23e   : > { %v4745_v56 = vpop.f32.mrb[120].mxu0  ;;  %v6938_v21 = vadd.f32 %v4856_v32, %v1627_v25 }
 0x23f   : > { %v4746_v53 = vpop.f32.mrb[121].mxu0  ;;  %v4857_v17 = vpop.f32.mrb[120].mxu1 }
 0x240   : > { %v4747_v58 = vadd.f32 %v4746_v53, %v4745_v56  ;;  %v4748_v5 = vpop.f32.mrb[122].mxu0  ;;  %v4858_v7 = vpop.f32.mrb[121].mxu1 }
 0x241   : > { %v4749_v63 = vpop.f32.mrb[123].mxu0  ;;  %v4859_v13 = vadd.f32 %v4858_v7, %v4857_v17  ;;  %v4860_v19 = vpop.f32.mrb[122].mxu1 }
 0x242   : > { %v1632_v50 = vadd.f32 %v4747_v58, %v6848_v11  ;;  %v4750_v4 = vadd.f32 %v4749_v63, %v4748_v5  ;;  %v4861_v49 = vpop.f32.mrb[123].mxu1 }
 0x243   : > { %v4862_v45 = vadd.f32 %v4861_v49, %v4860_v19 }
 0x244   : > { %v1635_v3 = vadd.f32 %v4750_v4, %v6850_v37  ;;  %v6942_v42 = vadd.f32 %v4859_v13, %v1632_v50 }
 0x246   : > { %v4751_v8 = vpop.f32.mrb[124].mxu0  ;;  %v6944_v30 = vadd.f32 %v4862_v45, %v1635_v3 }
 0x247   : > { %v4752_v22 = vpop.f32.mrb[125].mxu0  ;;  %v4863_v14 = vpop.f32.mrb[124].mxu1 }
 0x248   : > { %v4753_v12 = vadd.f32 %v4752_v22, %v4751_v8  ;;  %v4754_v18 = vpop.f32.mrb[126].mxu0  ;;  %v4864_v9 = vpop.f32.mrb[125].mxu1 }
 0x249   : > { %v4755_v43 = vpop.f32.mrb[127].mxu0  ;;  %v4865_v6 = vadd.f32 %v4864_v9, %v4863_v14  ;;  %v4866_v62 = vpop.f32.mrb[126].mxu1 }
 0x24a   : > { %v1640_v11 = vadd.f32 %v4753_v12, %v6852_v23  ;;  %v4756_v57 = vadd.f32 %v4755_v43, %v4754_v18  ;;  %v4867_v32 = vpop.f32.mrb[127].mxu1 }
 0x24b   : > { %v4868_v25 = vadd.f32 %v4867_v32, %v4866_v62 }
 0x24c   : > { %v1643_v37 = vadd.f32 %v4756_v57, %v6854_v48  ;;  %v6948_v56 = vadd.f32 %v4865_v6, %v1640_v11 }
 0x24e   : > { %v5383_v53 = vpop.f32.mrb[128].mxu0  ;;  %v6950_v17 = vadd.f32 %v4868_v25, %v1643_v37 }
 0x24f   : > { %v6953_v58 = vadd.f32 %v5383_v53, %v6864_v10  ;;  %v1841_v5 = vpop.f32.mrb[129].mxu0 }
 0x250   : > { %v6956_v7 = vadd.f32 %v1841_v5, %v6858_v51  ;;  %v5384_v63 = vpop.f32.mrb[130].mxu0 }
 0x251   : > { %v6959_v23 = vadd.f32 %v5384_v63, %v6866_v44  ;;  %v1844_v13 = vpop.f32.mrb[131].mxu0 }
 0x252   : > { %v6962_v19 = vadd.f32 %v1844_v13, %v6860_v15 }
 0x254   : > { %v1968_v48 = vadd.f32 %v6962_v19, %v6956_v7 }
 0x256   : > { %v1969_v50 = vadd.f32 %v1968_v48, %v6953_v58  ;;  %v5387_v4 = vpop.f32.mrb[132].mxu0 }
 0x257   : > { %v6968_v10 = vadd.f32 %v5387_v4, %v6876_v24  ;;  %v1857_v49 = vpop.f32.mrb[133].mxu0 }
 0x258   : > { %v6971_v51 = vadd.f32 %v1857_v49, %v6870_v54  ;;  %v1970_v44 = vadd.f32 %v1969_v50, %v6959_v23  ;;  %v5388_v45 = vpop.f32.mrb[134].mxu0 }
 0x259   : > { %v6975_v3 = vadd.f32 %v5388_v45, %v6878_v35  ;;  %v1860_v15 = vpop.f32.mrb[135].mxu0 }
 0x25a   : > { %v1971_v8 = vadd.f32 %v1970_v44, %v6971_v51  ;;  %v6979_v22 = vadd.f32 %v1860_v15, %v6872_v55 }
 0x25c   : > { %v1972_v14 = vadd.f32 %v1971_v8, %v6979_v22 }
 0x25e   : > { %v1973_v24 = vadd.f32 %v1972_v14, %v6968_v10  ;;  %v5391_v12 = vpop.f32.mrb[136].mxu0 }
 0x25f   : > { %v6984_v54 = vadd.f32 %v5391_v12, %v6888_v1  ;;  %v1873_v18 = vpop.f32.mrb[137].mxu0 }
 0x260   : > { %v6987_v9 = vadd.f32 %v1873_v18, %v6882_v28  ;;  %v1974_v35 = vadd.f32 %v1973_v24, %v6975_v3  ;;  %v5392_v43 = vpop.f32.mrb[138].mxu0 }
 0x261   : > { %v6991_v6 = vadd.f32 %v5392_v43, %v6890_v34  ;;  %v1876_v55 = vpop.f32.mrb[139].mxu0 }
 0x262   : > { %v1975_v62 = vadd.f32 %v1974_v35, %v6987_v9  ;;  %v6995_v11 = vadd.f32 %v1876_v55, %v6884_v59 }
 0x264   : > { %v1976_v57 = vadd.f32 %v1975_v62, %v6995_v11 }
 0x266   : > { %v1977_v1 = vadd.f32 %v1976_v57, %v6984_v54  ;;  %v5395_v32 = vpop.f32.mrb[140].mxu0 }
 0x267   : > { %v7000_v28 = vadd.f32 %v5395_v32, %v6900_v41  ;;  %v1889_v25 = vpop.f32.mrb[141].mxu0 }
 0x268   : > { %v7003_v37 = vadd.f32 %v1889_v25, %v6894_v0  ;;  %v1978_v34 = vadd.f32 %v1977_v1, %v6991_v6  ;;  %v5396_v53 = vpop.f32.mrb[142].mxu0  ;;  %v5610_v25 = vld [vmem:[#allocation5 + $0x300] sm:$0xff]  }
 0x269   : > { %v7007_v5 = vadd.f32 %v5396_v53, %v6902_v61  ;;  %v1892_v59 = vpop.f32.mrb[143].mxu0  ;;  %5005 = vmatprep.subr.bf16.mxu0 %v5610_v25  ;;  %v5617_v25 = vld [vmem:[#allocation5 + $0x2d8] sm:$0xff]  }
 0x26a   : > { %v1979_v63 = vadd.f32 %v1978_v34, %v7003_v37  ;;  %v7011_v13 = vadd.f32 %v1892_v59, %v6896_v47  ;;  %v5611_v59 = vld [vmem:[#allocation5 + $0x2c0] sm:$0xff]  }
 0x26b   : > { %5006 = vmatpush3.bf16.msra.mxu0 %v5611_v59  ;;  %v5620_v59 = vld [vmem:[#allocation5 + $0x320] sm:$0xff]  }
 0x26c   : > { %v1980_v48 = vadd.f32 %v1979_v63, %v7011_v13 }
 0x26e   : > { %v1981_v41 = vadd.f32 %v1980_v48, %v7000_v28  ;;  %v5399_v50 = vpop.f32.mrb[144].mxu0 }
 0x26f   : > { %v7016_v0 = vadd.f32 %v5399_v50, %v6912_v39  ;;  %v1905_v4 = vpop.f32.mrb[145].mxu0  ;;  %v5599_v50 = vld [vmem:[#allocation5 + $0x248] sm:$0xff]  }
 0x270   : > { %v7019_v49 = vadd.f32 %v1905_v4, %v6906_v52  ;;  %v1982_v61 = vadd.f32 %v1981_v41, %v7007_v5  ;;  %v5400_v44 = vpop.f32.mrb[146].mxu0  ;;  %v5612_v4 = vld [vmem:[#allocation5 + $0x308] sm:$0xff]  }
 0x271   : > { %v7023_v45 = vadd.f32 %v5400_v44, %v6914_v38  ;;  %v1908_v47 = vpop.f32.mrb[147].mxu0  ;;  %5007 = vmatprep.subr.bf16.mxu0 %v5612_v4  ;;  %v5622_v4 = vld [vmem:[#allocation5 + $0x328] sm:$0xff]  }
 0x272   : > { %v1983_v15 = vadd.f32 %v1982_v61, %v7019_v49  ;;  %v7027_v8 = vadd.f32 %v1908_v47, %v6908_v2  ;;  %v5613_v61 = vld [vmem:[#allocation5 + $0x2c8] sm:$0xff]   ;;  %v5600_v47 = vld [vmem:[#allocation5 + $0x290] sm:$0xff]  }
 0x273   : > { %5008 = vmatpush3.bf16.msra.mxu0 %v5613_v61  ;;  %v5623_v61 = vld [vmem:[#allocation5 + $0x2e8] sm:$0xff]  }
 0x274   : > { %v1984_v14 = vadd.f32 %v1983_v15, %v7027_v8 }
 0x276   : > { %v1985_v39 = vadd.f32 %v1984_v14, %v7016_v0  ;;  %v5403_v24 = vpop.f32.mrb[148].mxu0  ;;  %v5601_v14 = vld [vmem:[#allocation5 + $0x250] sm:$0xff]  }
 0x277   : > { %v7032_v52 = vadd.f32 %v5403_v24, %v6924_v26  ;;  %v1921_v12 = vpop.f32.mrb[149].mxu0 }
 0x278   : > { %v7035_v18 = vadd.f32 %v1921_v12, %v6918_v29  ;;  %v1986_v38 = vadd.f32 %v1985_v39, %v7023_v45  ;;  %v5404_v35 = vpop.f32.mrb[150].mxu0  ;;  %v5614_v39 = vld [vmem:[#allocation5 + $0x310] sm:$0xff]  }
 0x279   : > { %v7039_v43 = vadd.f32 %v5404_v35, %v6926_v60  ;;  %v1924_v2 = vpop.f32.mrb[151].mxu0  ;;  %v5615_v35 = vld [vmem:[#allocation5 + $0x2d0] sm:$0xff]   ;;  %5009 = vmatprep.subr.bf16.mxu0 %v5614_v39 }
 0x27a   : > { %v1987_v55 = vadd.f32 %v1986_v38, %v7035_v18  ;;  %v7043_v62 = vadd.f32 %v1924_v2, %v6920_v40  ;;  %5010 = vmatpush3.bf16.msra.mxu0 %v5615_v35  ;;  %v5625_v39 = vld [vmem:[#allocation5 + $0x2f0] sm:$0xff]   ;;  %v5619_v35 = vld [vmem:[#allocation5 + $0x278] sm:$0xff]  }
 0x27c   : > { %v1988_v57 = vadd.f32 %v1987_v55, %v7043_v62 }
 0x27e   : > { %v1989_v26 = vadd.f32 %v1988_v57, %v7032_v52  ;;  %v5407_v1 = vpop.f32.mrb[152].mxu0 }
 0x27f   : > { %v7048_v29 = vadd.f32 %v5407_v1, %v6936_v16  ;;  %v1937_v32 = vpop.f32.mrb[153].mxu0  ;;  %v5598_v16 = vld [vmem:[#allocation5 + $0x288] sm:$0xff]   ;;  %v5616_v1 = vld [vmem:[#allocation5 + $0x318] sm:$0xff]  }
 0x280   : > { %v7051_v34 = vadd.f32 %v1937_v32, %v6930_v20  ;;  %v1990_v60 = vadd.f32 %v1989_v26, %v7039_v43  ;;  %v5408_v53 = vpop.f32.mrb[154].mxu0  ;;  %4895 = vmatprep.subr.bf16.mxu1 %v5598_v16  ;;  %v5602_v26 = vld [vmem:[#allocation5 + $0x298] sm:$0xff]   ;;  %5011 = vmatprep.subr.bf16.mxu0 %v5616_v1  ;;  %v5606_v16 = vld [vmem:[#allocation5 + $0x2a8] sm:$0xff]   ;;  %v5628_v1 = vld [vmem:[#allocation5 + $0x380] sm:$0xff]  }
 0x281   : > { %v7055_v40 = vadd.f32 %v5408_v53, %v6938_v21  ;;  %v1940_v63 = vpop.f32.mrb[155].mxu0  ;;  %4896 = vmatpush3.bf16.msra.mxu1 %v5599_v50  ;;  %5012 = vmatpush3.bf16.msra.mxu0 %v5617_v25  ;;  %v5605_v53 = vld [vmem:[#allocation5 + $0x260] sm:$0xff]   ;;  %v5607_v50 = vld [vmem:[#allocation5 + $0x268] sm:$0xff]  }
 0x282   : > { %v1991_v48 = vadd.f32 %v1990_v60, %v7051_v34  ;;  %v7059_v41 = vadd.f32 %v1940_v63, %v6932_v46  ;;  %4897 = vmatprep.subr.bf16.mxu1 %v5600_v47  ;;  %v5604_v60 = vld [vmem:[#allocation5 + $0x2a0] sm:$0xff]   ;;  %5013 = vmatprep.subr.bf16.mxu0 %v5620_v59  ;;  %v5609_v47 = vld [vmem:[#allocation5 + $0x270] sm:$0xff]  }
 0x284   : > { %v1992_v20 = vadd.f32 %v1991_v48, %v7059_v41 }
 0x285   : > { %4898 = vmatpush3.bf16.msra.mxu1 %v5601_v14 }
 0x286   : > { %v1993_v21 = vadd.f32 %v1992_v20, %v7048_v29  ;;  %v5411_v44 = vpop.f32.mrb[156].mxu0  ;;  %4899 = vmatprep.subr.bf16.mxu1 %v5602_v26  ;;  %v5627_v26 = vld [vmem:[#allocation5 + $0x2f8] sm:$0xff]  }
 0x287   : > { %v7064_v15 = vadd.f32 %v5411_v44, %v6948_v56  ;;  %v1953_v46 = vpop.f32.mrb[157].mxu0  ;;  %v5608_v44 = vld [vmem:[#allocation5 + $0x2b0] sm:$0xff]  }
 0x288   : > { %v7067_v24 = vadd.f32 %v1953_v46, %v6942_v42  ;;  %v1994_v12 = vadd.f32 %v1993_v21, %v7055_v40  ;;  %v5412_v38 = vpop.f32.mrb[158].mxu0  ;;  %v5603_v42 = vld [vmem:[#allocation5 + $0x258] sm:$0xff]   ;;  %v5624_v46 = vld [vmem:[#allocation5 + $0x330] sm:$0xff]  }
 0x289   : > { %v7071_v2 = vadd.f32 %v5412_v38, %v6950_v17  ;;  %v1956_v55 = vpop.f32.mrb[159].mxu0  ;;  %4900 = vmatpush3.bf16.msra.mxu1 %v5603_v42  ;;  %v5618_v38 = vld [vmem:[#allocation5 + $0x2b8] sm:$0xff]  }
 0x28a   : > { %v1995_v56 = vadd.f32 %v1994_v12, %v7067_v24  ;;  %v7075_v57 = vadd.f32 %v1956_v55, %v6944_v30  ;;  %4901 = vmatprep.subr.bf16.mxu1 %v5604_v60  ;;  %v5621_v30 = vld [vmem:[#allocation5 + $0x2e0] sm:$0xff]   ;;  %v5626_v55 = vld [vmem:[#allocation5 + $0x338] sm:$0xff]  }
 0x28b   : > { %5014 = vmatpush3.bf16.msra.mxu0 %v5621_v30 }
 0x28c   : > { %v1996_v32 = vadd.f32 %v1995_v56, %v7075_v57  ;;  %5015 = vmatprep.subr.bf16.mxu0 %v5622_v4 }
 0x28d   : > { %4902 = vmatpush3.bf16.msra.mxu1 %v5605_v53 }
 0x28e   : > { %v1997_v17 = vadd.f32 %v1996_v32, %v7064_v15  ;;  %4903 = vmatprep.subr.bf16.mxu1 %v5606_v16 }
 0x28f   : > { %5016 = vmatpush3.bf16.msra.mxu0 %v5623_v61 }
 0x290   : > { %v1998_v63 = vadd.f32 %v1997_v17, %v7071_v2  ;;  %5017 = vmatprep.subr.bf16.mxu0 %v5624_v46 }
 0x291   : > { %4904 = vmatpush3.bf16.msra.mxu1 %v5607_v50 }
 0x292   : > { %v1999_v48 = vrot.slane %v1998_v63, 4  ;;  %4905 = vmatprep.subr.bf16.mxu1 %v5608_v44 }
 0x293   : > { %5018 = vmatpush3.bf16.msra.mxu0 %v5625_v39 }
 0x294   : > { %v2000_v20 = vadd.f32 %v1999_v48, %v1998_v63  ;;  %5019 = vmatprep.subr.bf16.mxu0 %v5626_v55 }
 0x295   : > { %4906 = vmatpush3.bf16.msra.mxu1 %v5609_v47 }
 0x296   : > { %v2001_v21 = vrot.slane %v2000_v20, 2  ;;  %4907 = vmatprep.subr.bf16.mxu1 %v5618_v38 }
 0x297   : > { %5020 = vmatpush3.bf16.msra.mxu0 %v5627_v26 }
 0x298   : > { %v2002_v14 = vadd.f32 %v2001_v21, %v2000_v20 }
 0x299   : > { %4908 = vmatpush3.bf16.msra.mxu1 %v5619_v35 }
 0x29a   : > { %v2003_v12 = vrot.slane %v2002_v14, 1  ;;  %5117 = vmatprep.subr.bf16.mxu1 %v5628_v1 }
 0x29c   : > { %v2004_v56 = vadd.f32 %v2003_v12, %v2002_v14 }
 0x29e   : > { %v2005_v42 = vmul.f32 0.00390625, %v2004_v56 }
 0x2a0   : > { %v7081_v32 = vsub.f32 %v6987_v9, %v2005_v42  ;;  %v7084_v25 = vsub.f32 %v6995_v11, %v2005_v42  ;;  %v7087_v17 = vsub.f32 %v6984_v54, %v2005_v42  ;;  %v7090_v60 = vsub.f32 %v6991_v6, %v2005_v42 }
 0x2a1   : > { %v7093_v53 = vsub.f32 %v7003_v37, %v2005_v42  ;;  %v7096_v59 = vsub.f32 %v7011_v13, %v2005_v42  ;;  %v7099_v63 = vsub.f32 %v7000_v28, %v2005_v42  ;;  %v7102_v9 = vsub.f32 %v7007_v5, %v2005_v42 }
 0x2a2   : > { %v7105_v11 = vsub.f32 %v7019_v49, %v2005_v42  ;;  %v7108_v54 = vsub.f32 %v7027_v8, %v2005_v42  ;;  %v7111_v6 = vsub.f32 %v7016_v0, %v2005_v42  ;;  %v7114_v37 = vsub.f32 %v7023_v45, %v2005_v42 }
 0x2a3   : > { %v7117_v13 = vsub.f32 %v7035_v18, %v2005_v42  ;;  %v7120_v28 = vsub.f32 %v7043_v62, %v2005_v42  ;;  %v7123_v5 = vsub.f32 %v7032_v52, %v2005_v42  ;;  %v7126_v49 = vsub.f32 %v7039_v43, %v2005_v42 }
 0x2a4   : > { %v7129_v8 = vsub.f32 %v7051_v34, %v2005_v42  ;;  %v7132_v0 = vsub.f32 %v7059_v41, %v2005_v42  ;;  %v7135_v45 = vsub.f32 %v7048_v29, %v2005_v42  ;;  %v7138_v18 = vsub.f32 %v7055_v40, %v2005_v42 }
 0x2a5   : > { %v7141_v62 = vsub.f32 %v7067_v24, %v2005_v42  ;;  %v7144_v52 = vsub.f32 %v7075_v57, %v2005_v42  ;;  %v7147_v43 = vsub.f32 %v7064_v15, %v2005_v42  ;;  %v7150_v34 = vsub.f32 %v7071_v2, %v2005_v42 }
 0x2a6   : > { %v7153_v41 = vsub.f32 %v6956_v7, %v2005_v42  ;;  %v7156_v29 = vsub.f32 %v6962_v19, %v2005_v42  ;;  %v7159_v40 = vsub.f32 %v6953_v58, %v2005_v42  ;;  %v7166_v15 = vsub.f32 %v6959_v23, %v2005_v42 }
 0x2a7   : > { %v7169_v2 = vsub.f32 %v6971_v51, %v2005_v42  ;;  %v7174_v30 = vsub.f32 %v6979_v22, %v2005_v42  ;;  %v7179_v16 = vsub.f32 %v6968_v10, %v2005_v42  ;;  %v7184_v51 = vsub.f32 %v6975_v3, %v2005_v42 }
 0x2a8   : > { %v2038_v24 = vmul.f32 %v7153_v41, %v7153_v41  ;;  %v2039_v57 = vmul.f32 %v7156_v29, %v7156_v29  ;;  %v2040_v7 = vmul.f32 %v7159_v40, %v7159_v40  ;;  %v2041_v58 = vmul.f32 %v7166_v15, %v7166_v15 }
 0x2a9   : > { %v2042_v23 = vmul.f32 %v7169_v2, %v7169_v2  ;;  %v2043_v4 = vmul.f32 %v7174_v30, %v7174_v30  ;;  %v2044_v22 = vmul.f32 %v7179_v16, %v7179_v16  ;;  %v2045_v21 = vmul.f32 %v7184_v51, %v7184_v51 }
 0x2aa   : > { %v2070_v19 = vadd.f32 %v2039_v57, %v2038_v24  ;;  %v2046_v44 = vmul.f32 %v7081_v32, %v7081_v32  ;;  %v2047_v3 = vmul.f32 %v7084_v25, %v7084_v25  ;;  %v2048_v14 = vmul.f32 %v7087_v17, %v7087_v17 }
 0x2ab   : > { %v2049_v12 = vmul.f32 %v7090_v60, %v7090_v60  ;;  %v2050_v35 = vmul.f32 %v7093_v53, %v7093_v53  ;;  %v2051_v56 = vmul.f32 %v7096_v59, %v7096_v59  ;;  %v2052_v42 = vmul.f32 %v7099_v63, %v7099_v63 }
 0x2ac   : > { %v2071_v48 = vadd.f32 %v2070_v19, %v2040_v7  ;;  %v2053_v24 = vmul.f32 %v7102_v9, %v7102_v9  ;;  %v2054_v7 = vmul.f32 %v7105_v11, %v7105_v11 }
 0x2ae   : > { %v2072_v50 = vadd.f32 %v2071_v48, %v2041_v58  ;;  %v2055_v58 = vmul.f32 %v7108_v54, %v7108_v54 }
 0x2b0   : > { %v2073_v20 = vadd.f32 %v2072_v50, %v2042_v23  ;;  %v2056_v23 = vmul.f32 %v7111_v6, %v7111_v6 }
 0x2b2   : > { %v2074_v61 = vadd.f32 %v2073_v20, %v2043_v4  ;;  %v2057_v4 = vmul.f32 %v7114_v37, %v7114_v37 }
 0x2b4   : > { %v2075_v10 = vadd.f32 %v2074_v61, %v2044_v22  ;;  %v2058_v22 = vmul.f32 %v7117_v13, %v7117_v13 }
 0x2b6   : > { %v2076_v47 = vadd.f32 %v2075_v10, %v2045_v21  ;;  %v2059_v21 = vmul.f32 %v7120_v28, %v7120_v28 }
 0x2b8   : > { %v2077_v46 = vadd.f32 %v2076_v47, %v2046_v44  ;;  %v2060_v44 = vmul.f32 %v7123_v5, %v7123_v5 }
 0x2ba   : > { %v2078_v39 = vadd.f32 %v2077_v46, %v2047_v3  ;;  %v2061_v3 = vmul.f32 %v7126_v49, %v7126_v49 }
 0x2bc   : > { %v2079_v38 = vadd.f32 %v2078_v39, %v2048_v14  ;;  %v2062_v14 = vmul.f32 %v7129_v8, %v7129_v8 }
 0x2be   : > { %v2080_v55 = vadd.f32 %v2079_v38, %v2049_v12  ;;  %v2063_v12 = vmul.f32 %v7132_v0, %v7132_v0 }
 0x2c0   : > { %v2081_v26 = vadd.f32 %v2080_v55, %v2050_v35  ;;  %v5637_v35 = vld [vmem:[#allocation5 + $0x400] sm:$0xff]   ;;  %v2064_v55 = vmul.f32 %v7135_v45, %v7135_v45 }
 0x2c1   : > { %5229 = vmatprep.subr.bf16.mxu0 %v5637_v35 }
 0x2c2   : > { %v2082_v1 = vadd.f32 %v2081_v26, %v2051_v56  ;;  %v2065_v26 = vmul.f32 %v7138_v18, %v7138_v18 }
 0x2c4   : > { %v2083_v57 = vadd.f32 %v2082_v1, %v2052_v42  ;;  %v2066_v1 = vmul.f32 %v7141_v62, %v7141_v62 }
 0x2c6   : > { %v2084_v19 = vadd.f32 %v2083_v57, %v2053_v24  ;;  %v2067_v57 = vmul.f32 %v7144_v52, %v7144_v52 }
 0x2c8   : > { %v2085_v48 = vadd.f32 %v2084_v19, %v2054_v7  ;;  %v2068_v19 = vmul.f32 %v7147_v43, %v7147_v43 }
 0x2ca   : > { %v2086_v50 = vadd.f32 %v2085_v48, %v2055_v58  ;;  %v2069_v48 = vmul.f32 %v7150_v34, %v7150_v34 }
 0x2cc   : > { %v2087_v20 = vadd.f32 %v2086_v50, %v2056_v23 }
 0x2ce   : > { %v2088_v61 = vadd.f32 %v2087_v20, %v2057_v4 }
 0x2d0   : > { %v2089_v10 = vadd.f32 %v2088_v61, %v2058_v22 }
 0x2d2   : > { %v2090_v47 = vadd.f32 %v2089_v10, %v2059_v21 }
 0x2d4   : > { %v2091_v46 = vadd.f32 %v2090_v47, %v2060_v44 }
 0x2d6   : > { %v2092_v39 = vadd.f32 %v2091_v46, %v2061_v3 }
 0x2d8   : > { %v2093_v38 = vadd.f32 %v2092_v39, %v2062_v14 }
 0x2da   : > { %v2094_v56 = vadd.f32 %v2093_v38, %v2063_v12 }
 0x2dc   : > { %v2095_v42 = vadd.f32 %v2094_v56, %v2064_v55 }
 0x2de   : > { %v2096_v24 = vadd.f32 %v2095_v42, %v2065_v26 }
 0x2e0   : > { %v2097_v7 = vadd.f32 %v2096_v24, %v2066_v1 }
 0x2e2   : > { %v2098_v58 = vadd.f32 %v2097_v7, %v2067_v57 }
 0x2e4   : > { %v2099_v23 = vadd.f32 %v2098_v58, %v2068_v19 }
 0x2e6   : > { %v2100_v50 = vadd.f32 %v2099_v23, %v2069_v48 }
 0x2e8   : > { %v2101_v4 = vrot.slane %v2100_v50, 4 }
 0x2ea   : > { %v2102_v20 = vadd.f32 %v2101_v4, %v2100_v50 }
 0x2ec   : > { %v2103_v22 = vrot.slane %v2102_v20, 2 }
 0x2ee   : > { %v2104_v61 = vadd.f32 %v2103_v22, %v2102_v20 }
 0x2f0   : > { %v2105_v21 = vrot.slane %v2104_v61, 1 }
 0x2f2   : > { %v2106_v10 = vadd.f32 %v2105_v21, %v2104_v61  ;;  %v5629_v61 = vld [vmem:[#allocation5 + $0x340] sm:$0xff]  }
 0x2f4   : > { %v2107_v44 = vmul.f32 0.00390625, %v2106_v10 }
 0x2f6   : > { %v2108_v47 = vadd.f32 1e-05, %v2107_v44 }
 0x2f8   : > { %5668 = vrsqrt.f32 %v2108_v47 }
 0x302   : > { %v7240_v3 = vpop.eup %5668 }
 0x303   : > { %v2112_v46 = vmul.f32 %v7240_v3, %v7159_v40  ;;  %v2113_v14 = vmul.f32 %v7240_v3, %v7166_v15  ;;  %v2110_v39 = vmul.f32 %v7240_v3, %v7153_v41  ;;  %v2111_v12 = vmul.f32 %v7240_v3, %v7156_v29 }
 0x304   : > { %v2114_v38 = vmul.f32 %v7240_v3, %v7169_v2  ;;  %v2115_v35 = vmul.f32 %v7240_v3, %v7174_v30  ;;  %v2116_v40 = vmul.f32 %v7240_v3, %v7179_v16 }
 0x305   : > { %v2144_v55 = vmax.f32 %v2112_v46, 0.0  ;;  %v2145_v56 = vmax.f32 %v2113_v14, 0.0  ;;  %v2142_v26 = vmax.f32 %v2110_v39, 0.0  ;;  %v2143_v42 = vmax.f32 %v2111_v12, 0.0  ;;  %v5630_v46 = vld [vmem:[#allocation5 + $0x388] sm:$0xff]  }
 0x306   : > { %v7256_v15 = vmax.f32 %v2114_v38, 0.0  ;;  %v7258_v1 = vmax.f32 %v2115_v35, 0.0  ;;  %v2117_v35 = vmul.f32 %v7240_v3, %v7184_v51 }
 0x307   : > { %v2319_v41 = vrot.slane %v2144_v55, 7  ;;  %v2335_v24 = vrot.slane %v2145_v56, 7  ;;  %v2386_v29 = vrot.slane %v2144_v55, %v6019_v33  ;;  %v2479_v57 = vrot.slane %v2144_v55, 1 }
 0x308   : > { %v2495_v2 = vrot.slane %v2145_v56, 1  ;;  %v2546_v7 = vrot.slane %v2145_v56, %v6023_v36  ;;  %v7262_v30 = vpack.c.bf16 %v2145_v56, %v2144_v55  ;;  %v2320_v19 = vrot.slane %v2142_v26, 7 }
 0x309   : > { %v2351_v58 = vsel %vm389_vm0, %v2319_v41, %v2335_v24  ;;  %v2367_v16 = vsel %vm389_vm0, %v2335_v24, %v2319_v41  ;;  %v2336_v48 = vrot.slane %v2143_v42, 7  ;;  %v2390_v23 = vrot.slane %v2142_v26, %v6019_v33  ;;  %v5631_v24 = vld [vmem:[#allocation5 + $0x348] sm:$0xff]  }
 0x30a   : > { %3151 = vmatprep.mubr.bf16.mxu1 %v7262_v30  ;;  %v2447_v50 = vsel %vm422_vm1, %v2386_v29, %v2367_v16  ;;  %v7272_v4 = vpack.c.bf16 %v2143_v42, %v2142_v26  ;;  %v2511_v20 = vsel %vm552_vm2, %v2479_v57, %v2495_v2  ;;  %v2527_v22 = vsel %vm552_vm2, %v2495_v2, %v2479_v57  ;;  %v5639_v29 = vld [vmem:[#allocation5 + $0x3c0] sm:$0xff]   ;;  %v5641_v2 = vld [vmem:[#allocation5 + $0x408] sm:$0xff]   ;;  %v5633_v16 = vld [vmem:[#allocation5 + $0x350] sm:$0xff]  }
 0x30b   : > { %v7278_v21 = vpack.c.bf16 %v2351_v58, %v2447_v50  ;;  %v2352_v10 = vsel %vm389_vm0, %v2320_v19, %v2336_v48  ;;  %v2368_v44 = vsel %vm389_vm0, %v2336_v48, %v2320_v19  ;;  %v2608_v47 = vsel %vm586_vm3, %v2546_v7, %v2527_v22  ;;  %v5634_v50 = vld [vmem:[#allocation5 + $0x398] sm:$0xff]  }
 0x30c   : > { %v2449_v14 = vsel %vm422_vm1, %v2390_v23, %v2368_v44  ;;  %v7288_v39 = vpack.c.bf16 %v2608_v47, %v2511_v20  ;;  %v2480_v12 = vrot.slane %v2142_v26, 1  ;;  %v2496_v38 = vrot.slane %v2143_v42, 1  ;;  %v5632_v26 = vld [vmem:[#allocation5 + $0x390] sm:$0xff]  }
 0x30d   : > { %3152 = vmatmul.mubr.bf16.vlgmr.msra.gmra.mrb[128].mxu1 %v7278_v21  ;;  %v2640_v55 = vpack.c.bf16 %v2352_v10, %v2449_v14  ;;  %v2321_v56 = vrot.slane %v7256_v15, 7  ;;  %v2337_v41 = vrot.slane %v7258_v1, 7  ;;  %v2550_v57 = vrot.slane %v2143_v42, %v6023_v36 }
 0x30e   : > { %3159 = vmatprep.mubr.bf16.mxu1 %v7272_v4  ;;  %5118 = vmatpush3.bf16.msra.mxu1 %v5629_v61  ;;  %v2528_v51 = vsel %vm552_vm2, %v2496_v38, %v2480_v12  ;;  %v2394_v7 = vrot.slane %v7256_v15, %v6019_v33  ;;  %v7302_v19 = vmax.f32 %v2116_v40, 0.0  ;;  %v7304_v58 = vmax.f32 %v2117_v35, 0.0  ;;  %v5643_v40 = vld [vmem:[#allocation5 + $0x3c8] sm:$0xff]   ;;  %v5645_v61 = vld [vmem:[#allocation5 + $0x410] sm:$0xff]   ;;  %v5636_v35 = vld [vmem:[#allocation5 + $0x3a0] sm:$0xff]  }
 0x30f   : > { %3312 = vmatprep.mubr.bf16.mxu0 %v2640_v55  ;;  %5119 = vmatprep.subr.bf16.mxu1 %v5630_v46  ;;  %v2369_v42 = vsel %vm389_vm0, %v2337_v41, %v2321_v56  ;;  %v2512_v48 = vsel %vm552_vm2, %v2480_v12, %v2496_v38  ;;  %v2610_v23 = vsel %vm586_vm3, %v2550_v57, %v2528_v51  ;;  %v5635_v12 = vld [vmem:[#allocation5 + $0x358] sm:$0xff]  }
 0x310   : > { %3313 = vmatmul.mubr.bf16.vlgmr.msra.gmra.mrb[160].mxu0 %v7288_v39  ;;  %v2353_v20 = vsel %vm389_vm0, %v2321_v56, %v2337_v41  ;;  %v2451_v22 = vsel %vm422_vm1, %v2394_v7, %v2369_v42  ;;  %v2118_v10 = vmul.f32 %v7240_v3, %v7081_v32  ;;  %v2119_v44 = vmul.f32 %v7240_v3, %v7084_v25  ;;  %v5647_v25 = vld [vmem:[#allocation5 + $0x3d0] sm:$0xff]  }
 0x311   : > { %3320 = vmatprep.mubr.bf16.mxu0 %v7278_v21  ;;  %5230 = vmatpush3.bf16.msra.mxu0 %v5639_v29  ;;  %v2322_v47 = vrot.slane %v7302_v19, 7  ;;  %v2338_v46 = vrot.slane %v7304_v58, 7  ;;  %v7324_v14 = vpack.c.bf16 %v2610_v23, %v2512_v48  ;;  %v7326_v38 = vpack.c.bf16 %v2353_v20, %v2451_v22  ;;  %v5638_v29 = vld [vmem:[#allocation5 + $0x360] sm:$0xff]  }
 0x312   : > { %5120 = vmatpush3.bf16.msra.mxu1 %v5631_v24  ;;  %5231 = vmatprep.subr.bf16.mxu0 %v5641_v2  ;;  %v2398_v32 = vrot.slane %v7302_v19, %v6019_v33  ;;  %v7333_v56 = vmax.f32 %v2119_v44, 0.0  ;;  %v5648_v24 = vld [vmem:[#allocation5 + $0x418] sm:$0xff]   ;;  %v7340_v57 = vpack.c.bf16 %v7258_v1, %v7256_v15  ;;  %v2481_v7 = vrot.slane %v7256_v15, 1  ;;  %v5642_v15 = vld [vmem:[#allocation5 + $0x368] sm:$0xff]   ;;  %v5652_v20 = vld [vmem:[#allocation5 + $0x420] sm:$0xff]  }
 0x313   : > { %5121 = vmatprep.subr.bf16.mxu1 %v5632_v26  ;;  %v2370_v41 = vsel %vm389_vm0, %v2338_v46, %v2322_v47  ;;  %v5640_v26 = vld [vmem:[#allocation5 + $0x3a8] sm:$0xff]   ;;  %v2354_v2 = vsel %vm389_vm0, %v2322_v47, %v2338_v46  ;;  %v2497_v42 = vrot.slane %v7258_v1, 1  ;;  %v2121_v48 = vmul.f32 %v7240_v3, %v7090_v60  ;;  %v5644_v60 = vld [vmem:[#allocation5 + $0x3b0] sm:$0xff]  }
 0x314   : > { %v2453_v51 = vsel %vm422_vm1, %v2398_v32, %v2370_v41  ;;  %v5650_v41 = vld [vmem:[#allocation5 + $0x3b8] sm:$0xff]  }
 0x315   : > { %3160 = vmatmul.mubr.bf16.gmra.mrb[132].mxu1 %v2640_v55  ;;  %5232 = vmatpush3.bf16.msra.mxu0 %v5643_v40  ;;  %v7331_v55 = vmax.f32 %v2118_v10, 0.0  ;;  %v5649_v40 = vld [vmem:[#allocation5 + $0x3d8] sm:$0xff]   ;;  %v7356_v22 = vpack.c.bf16 %v2354_v2, %v2453_v51  ;;  %v7367_v47 = vmax.f32 %v2121_v48, 0.0  ;;  %v2513_v32 = vsel %vm552_vm2, %v2481_v7, %v2497_v42 }
 0x316   : > { %3167 = vmatprep.mubr.bf16.mxu1 %v7262_v30  ;;  %5122 = vmatpush3.bf16.msra.mxu1 %v5633_v16  ;;  %v2120_v16 = vmul.f32 %v7240_v3, %v7087_v17  ;;  %v2554_v17 = vrot.slane %v7258_v1, %v6023_v36  ;;  %v5653_v1 = vld [vmem:[#allocation5 + $0x3e0] sm:$0xff]   ;;  %v2482_v2 = vrot.slane %v7302_v19, 1  ;;  %v2498_v51 = vrot.slane %v7304_v58, 1 }
 0x317   : > { %5123 = vmatprep.subr.bf16.mxu1 %v5634_v50  ;;  %5233 = vmatprep.subr.bf16.mxu0 %v5645_v61  ;;  %v2323_v23 = vrot.slane %v7331_v55, 7  ;;  %v2339_v50 = vrot.slane %v7333_v56, 7  ;;  %v2529_v61 = vsel %vm552_vm2, %v2497_v42, %v2481_v7  ;;  %v2402_v10 = vrot.slane %v7331_v55, %v6019_v33 }
 0x318   : > { %3321 = vmatmul.mubr.bf16.gmra.mrb[164].mxu0 %v7324_v14  ;;  %v7365_v44 = vmax.f32 %v2120_v16, 0.0  ;;  %v2122_v16 = vmul.f32 %v7240_v3, %v7093_v53  ;;  %v2123_v7 = vmul.f32 %v7240_v3, %v7096_v59  ;;  %v2340_v48 = vrot.slane %v7367_v47, 7  ;;  %v5656_v59 = vld [vmem:[#allocation5 + $0x430] sm:$0xff]  }
 0x319   : > { %3328 = vmatprep.mubr.bf16.mxu0 %v7326_v38  ;;  %5234 = vmatpush3.bf16.msra.mxu0 %v5647_v25  ;;  %v2371_v46 = vsel %vm389_vm0, %v2339_v50, %v2323_v23  ;;  %v2612_v25 = vsel %vm586_vm3, %v2554_v17, %v2529_v61  ;;  %v2558_v53 = vrot.slane %v7304_v58, %v6023_v36  ;;  %v7405_v17 = vld [vmem:[#allocation5 + $0x440] sm:$0xff]  }
 0x31a   : > { %5124 = vmatpush3.bf16.msra.mxu1 %v5635_v12  ;;  %5235 = vmatprep.subr.bf16.mxu0 %v5648_v24  ;;  %v5646_v12 = vld [vmem:[#allocation5 + $0x370] sm:$0xff]   ;;  %v5654_v24 = vld [vmem:[#allocation5 + $0x428] sm:$0xff]   ;;  %v2324_v42 = vrot.slane %v7365_v44, 7  ;;  %v7409_v61 = vmax.f32 %v2123_v7, 0.0  ;;  %v5659_v7 = vld [vmem:[#allocation5 + $0x3f8] sm:$0xff]  }
 0x31b   : > { %5125 = vmatprep.subr.bf16.mxu1 %v5636_v35  ;;  %v7374_v35 = vpack.c.bf16 %v7304_v58, %v7302_v19  ;;  %v5651_v19 = vld [vmem:[#allocation5 + $0x378] sm:$0xff]  }
 0x31c   : > { %v2372_v58 = vsel %vm389_vm0, %v2340_v48, %v2324_v42 }
 0x31d   : > { %3168 = vmatmul.mubr.bf16.gmra.mrb[136].mxu1 %v7278_v21  ;;  %5236 = vmatpush3.bf16.msra.mxu0 %v5649_v40 }
 0x31e   : > { %3175 = vmatprep.mubr.bf16.mxu1 %v7340_v57  ;;  %5126 = vmatpush3.bf16.msra.mxu1 %v5638_v29  ;;  %v2355_v29 = vsel %vm389_vm0, %v2323_v23, %v2339_v50  ;;  %v5655_v23 = vld [vmem:[#allocation5 + $0x3e8] sm:$0xff]   ;;  %v7394_v50 = vpack.c.bf16 %v2612_v25, %v2513_v32  ;;  %v5658_v32 = vld [vmem:[#allocation5 + $0x438] sm:$0xff]   ;;  %v2356_v25 = vsel %vm389_vm0, %v2324_v42, %v2340_v48 }
 0x31f   : > { %5127 = vmatprep.subr.bf16.mxu1 %v5640_v26  ;;  %5237 = vmatprep.subr.bf16.mxu0 %v5652_v20  ;;  %v2455_v26 = vsel %vm422_vm1, %v2402_v10, %v2371_v46  ;;  %v2406_v20 = vrot.slane %v7365_v44, %v6019_v33  ;;  %v5657_v10 = vld [vmem:[#allocation5 + $0x3f0] sm:$0xff]   ;;  %v7416_v46 = vpack.c.bf16 %v7333_v56, %v7331_v55 }
 0x320   : > { %3329 = vmatmul.mubr.bf16.gmra.mrb[168].mxu0 %v7288_v39  ;;  %v7396_v40 = vpack.c.bf16 %v2355_v29, %v2455_v26  ;;  %v2499_v29 = vrot.slane %v7333_v56, 1  ;;  %v2124_v26 = vmul.f32 %v7240_v3, %v7099_v63  ;;  %v2562_v63 = vrot.slane %v7333_v56, %v6023_v36 }
 0x321   : > { %3336 = vmatprep.mubr.bf16.mxu0 %v7356_v22  ;;  %5238 = vmatpush3.bf16.msra.mxu0 %v5653_v1  ;;  %v2514_v1 = vsel %vm552_vm2, %v2482_v2, %v2498_v51  ;;  %v7457_v56 = vpack.c.bf16 %v7367_v47, %v7365_v44 }
 0x322   : > { %5128 = vmatpush3.bf16.msra.mxu1 %v5642_v15  ;;  %5239 = vmatprep.subr.bf16.mxu0 %v5654_v24  ;;  %v2530_v15 = vsel %vm552_vm2, %v2498_v51, %v2482_v2  ;;  %v2483_v24 = vrot.slane %v7331_v55, 1  ;;  %v2125_v2 = vmul.f32 %v7240_v3, %v7102_v9 }
 0x323   : > { %5129 = vmatprep.subr.bf16.mxu1 %v5644_v60  ;;  %v7407_v60 = vmax.f32 %v2122_v16, 0.0  ;;  %v2341_v16 = vrot.slane %v7409_v61, 7 }
 0x324   : > { %v2531_v9 = vsel %vm552_vm2, %v2499_v29, %v2483_v24 }
 0x325   : > { %3176 = vmatmul.mubr.bf16.gmra.mrb[140].mxu1 %v7326_v38  ;;  %5240 = vmatpush3.bf16.msra.mxu0 %v5655_v23  ;;  %v2325_v51 = vrot.slane %v7407_v60, 7  ;;  %v2410_v48 = vrot.slane %v7407_v60, %v6019_v33  ;;  %v7448_v23 = vmax.f32 %v2124_v26, 0.0 }
 0x326   : > { %3183 = vmatprep.mubr.bf16.mxu1 %v7374_v35  ;;  %5130 = vmatpush3.bf16.msra.mxu1 %v5646_v12  ;;  %v2614_v12 = vsel %vm586_vm3, %v2558_v53, %v2530_v15  ;;  %v2616_v15 = vsel %vm586_vm3, %v2562_v63, %v2531_v9  ;;  %v7507_v63 = vpack.c.bf16 %v7409_v61, %v7407_v60 }
 0x327   : > { %5131 = vmatprep.subr.bf16.mxu1 %v5650_v41  ;;  %5241 = vmatprep.subr.bf16.mxu0 %v5656_v59  ;;  %v2457_v41 = vsel %vm422_vm1, %v2406_v20, %v2372_v58  ;;  %v7437_v55 = vpack.c.bf16 %v2614_v12, %v2514_v1  ;;  %v2373_v53 = vsel %vm389_vm0, %v2341_v16, %v2325_v51  ;;  %v2500_v1 = vrot.slane %v7367_v47, 1 }
 0x328   : > { %3337 = vmatmul.mubr.bf16.gmra.mrb[172].mxu0 %v7394_v50  ;;  %v7439_v42 = vpack.c.bf16 %v2356_v25, %v2457_v41  ;;  %v2515_v59 = vsel %vm552_vm2, %v2483_v24, %v2499_v29  ;;  %v2357_v20 = vsel %vm389_vm0, %v2325_v51, %v2341_v16  ;;  %v2459_v58 = vsel %vm422_vm1, %v2410_v48, %v2373_v53 }
 0x329   : > { %3344 = vmatprep.mubr.bf16.mxu0 %v7396_v40  ;;  %5242 = vmatpush3.bf16.msra.mxu0 %v5657_v10  ;;  %v2484_v10 = vrot.slane %v7365_v44, 1  ;;  %v2126_v12 = vmul.f32 %v7240_v3, %v7105_v11  ;;  %v2326_v25 = vrot.slane %v7448_v23, 7  ;;  %v2140_v24 = vmul.f32 %v7240_v3, %v7147_v43 }
 0x32a   : > { %5132 = vmatpush3.bf16.msra.mxu1 %v5651_v19  ;;  %5243 = vmatprep.subr.bf16.mxu0 %v5658_v32  ;;  %v7450_v19 = vmax.f32 %v2125_v2, 0.0  ;;  %v2127_v32 = vmul.f32 %v7240_v3, %v7108_v54  ;;  %v7479_v44 = vpack.c.bf16 %v2616_v15, %v2515_v59  ;;  %v2141_v29 = vmul.f32 %v7240_v3, %v7150_v34 }
 0x32b   : > { %5413 = vmatprep.subr.bf16.mxu1 %v7405_v17  ;;  %v7483_v11 = vpack.c.bf16 %v2357_v20, %v2459_v58  ;;  %v2566_v54 = vrot.slane %v7367_v47, %v6023_v36  ;;  %v2532_v26 = vsel %vm552_vm2, %v2500_v1, %v2484_v10  ;;  %v2414_v43 = vrot.slane %v7448_v23, %v6019_v33 }
 0x32c   : > { %v2342_v41 = vrot.slane %v7450_v19, 7  ;;  %v7492_v2 = vmax.f32 %v2126_v12, 0.0  ;;  %v7494_v51 = vmax.f32 %v2127_v32, 0.0  ;;  %v2128_v47 = vmul.f32 %v7240_v3, %v7111_v6 }
 0x32d   : > { %3184 = vmatmul.mubr.bf16.gmra.mrb[144].mxu1 %v7356_v22  ;;  %5244 = vmatpush3.bf16.msra.mxu0 %v5659_v7  ;;  %v7501_v16 = vmax.f32 %v2140_v24, 0.0  ;;  %v7503_v7 = vmax.f32 %v2141_v29, 0.0  ;;  %v2516_v9 = vsel %vm552_vm2, %v2484_v10, %v2500_v1  ;;  %v2618_v48 = vsel %vm586_vm3, %v2566_v54, %v2532_v26 }
 0x32e   : > { %3191 = vmatprep.mubr.bf16.mxu1 %v7416_v46  ;;  %v2374_v34 = vsel %vm389_vm0, %v2342_v41, %v2326_v25  ;;  %v2358_v53 = vsel %vm389_vm0, %v2326_v25, %v2342_v41  ;;  %v2485_v59 = vrot.slane %v7407_v60, 1  ;;  %v2501_v15 = vrot.slane %v7409_v61, 1 }
 0x32f   : > { %v2461_v6 = vsel %vm422_vm1, %v2414_v43, %v2374_v34  ;;  %v2129_v20 = vmul.f32 %v7240_v3, %v7114_v37  ;;  %v2327_v58 = vrot.slane %v7492_v2, 7  ;;  %v2343_v10 = vrot.slane %v7494_v51, 7 }
 0x330   : > { %3345 = vmatmul.mubr.bf16.gmra.mrb[176].mxu0 %v7437_v55  ;;  %v7525_v1 = vpack.c.bf16 %v2618_v48, %v2516_v9  ;;  %v7527_v12 = vpack.c.bf16 %v2358_v53, %v2461_v6  ;;  %v2570_v60 = vrot.slane %v7409_v61, %v6023_v36  ;;  %v7533_v32 = vpack.c.bf16 %v7503_v7, %v7501_v16 }
 0x331   : > { %3352 = vmatprep.mubr.bf16.mxu0 %v7439_v42  ;;  %v7535_v37 = vmax.f32 %v2128_v47, 0.0  ;;  %v2533_v25 = vsel %vm552_vm2, %v2501_v15, %v2485_v59  ;;  %v2418_v41 = vrot.slane %v7492_v2, %v6019_v33  ;;  %v2494_v24 = vrot.slane %v7501_v16, 1 }
 0x332   : > { %8556 = vst [vmem:[#allocation11_spill] sm:$0xff] %v7533_v32  ;;  %v7543_v29 = vmax.f32 %v2129_v20, 0.0  ;;  %v2375_v61 = vsel %vm389_vm0, %v2343_v10, %v2327_v58  ;;  %v2510_v54 = vrot.slane %v7503_v7, 1  ;;  %v2606_v26 = vrot.slane %v7503_v7, %v6023_v36 }
 0x333   : > { %v2130_v43 = vmul.f32 %v7240_v3, %v7117_v13  ;;  %v7555_v34 = vpack.c.bf16 %v7450_v19, %v7448_v23  ;;  %v2517_v47 = vsel %vm552_vm2, %v2485_v59, %v2501_v15  ;;  %v2620_v9 = vsel %vm586_vm3, %v2570_v60, %v2533_v25 }
 0x334   : > { %v2486_v48 = vrot.slane %v7448_v23, 1  ;;  %v2526_v53 = vsel %vm552_vm2, %v2494_v24, %v2510_v54  ;;  %v2542_v6 = vsel %vm552_vm2, %v2510_v54, %v2494_v24  ;;  %v2359_v13 = vsel %vm389_vm0, %v2327_v58, %v2343_v10 }
 0x335   : > { %3192 = vmatmul.mubr.bf16.gmra.mrb[148].mxu1 %v7396_v40  ;;  %v2463_v20 = vsel %vm422_vm1, %v2418_v41, %v2375_v61  ;;  %v2502_v32 = vrot.slane %v7450_v19, 1  ;;  %v2638_v59 = vsel %vm586_vm3, %v2606_v26, %v2542_v6  ;;  %v2131_v23 = vmul.f32 %v7240_v3, %v7120_v28 }
 0x336   : > { %3199 = vmatprep.mubr.bf16.mxu1 %v7457_v56  ;;  %v2328_v15 = vrot.slane %v7535_v37, 7  ;;  %v2344_v60 = vrot.slane %v7543_v29, 7  ;;  %v7578_v25 = vpack.c.bf16 %v2638_v59, %v2526_v53  ;;  %v7581_v58 = vpack.c.bf16 %v2620_v9, %v2517_v47 }
 0x337   : > { %v7583_v10 = vpack.c.bf16 %v2359_v13, %v2463_v20  ;;  %v2574_v41 = vrot.slane %v7450_v19, %v6023_v36  ;;  %v2534_v28 = vsel %vm552_vm2, %v2502_v32, %v2486_v48  ;;  %v2422_v24 = vrot.slane %v7535_v37, %v6019_v33 }
 0x338   : > { %3353 = vmatmul.mubr.bf16.gmra.mrb[180].mxu0 %v7479_v44  ;;  %8557 = vst [vmem:[#allocation12_spill] sm:$0xff] %v7578_v25  ;;  %v7592_v61 = vmax.f32 %v2130_v43, 0.0  ;;  %v7594_v54 = vmax.f32 %v2131_v23, 0.0  ;;  %v2376_v26 = vsel %vm389_vm0, %v2344_v60, %v2328_v15  ;;  %v7601_v19 = vpack.c.bf16 %v7494_v51, %v7492_v2 }
 0x339   : > { %3360 = vmatprep.mubr.bf16.mxu0 %v7483_v11  ;;  %v2518_v47 = vsel %vm552_vm2, %v2486_v48, %v2502_v32  ;;  %v2622_v9 = vsel %vm586_vm3, %v2574_v41, %v2534_v28  ;;  %v2360_v43 = vsel %vm389_vm0, %v2328_v15, %v2344_v60  ;;  %v2465_v53 = vsel %vm422_vm1, %v2422_v24, %v2376_v26 }
 0x33a   : > { %v2487_v6 = vrot.slane %v7492_v2, 1  ;;  %v2503_v13 = vrot.slane %v7494_v51, 1  ;;  %v2132_v20 = vmul.f32 %v7240_v3, %v7123_v5  ;;  %v2133_v59 = vmul.f32 %v7240_v3, %v7126_v49 }
 0x33b   : > { %v2329_v32 = vrot.slane %v7592_v61, 7  ;;  %v2345_v48 = vrot.slane %v7594_v54, 7  ;;  %v7621_v23 = vpack.c.bf16 %v2622_v9, %v2518_v47  ;;  %v7623_v15 = vpack.c.bf16 %v2360_v43, %v2465_v53 }
 0x33c   : > { %v2578_v2 = vrot.slane %v7494_v51, %v6023_v36  ;;  %v2535_v5 = vsel %vm552_vm2, %v2503_v13, %v2487_v6  ;;  %v2426_v49 = vrot.slane %v7592_v61, %v6019_v33  ;;  %v7632_v60 = vmax.f32 %v2132_v20, 0.0 }
 0x33d   : > { %3200 = vmatmul.mubr.bf16.gmra.mrb[152].mxu1 %v7439_v42  ;;  %v7634_v41 = vmax.f32 %v2133_v59, 0.0  ;;  %v2377_v28 = vsel %vm389_vm0, %v2345_v48, %v2329_v32  ;;  %v7641_v51 = vpack.c.bf16 %v7543_v29, %v7535_v37  ;;  %v2519_v24 = vsel %vm552_vm2, %v2487_v6, %v2503_v13 }
 0x33e   : > { %3207 = vmatprep.mubr.bf16.mxu1 %v7507_v63  ;;  %v2624_v26 = vsel %vm586_vm3, %v2578_v2, %v2535_v5  ;;  %v2361_v47 = vsel %vm389_vm0, %v2329_v32, %v2345_v48  ;;  %v2467_v9 = vsel %vm422_vm1, %v2426_v49, %v2377_v28  ;;  %v2488_v43 = vrot.slane %v7535_v37, 1 }
 0x33f   : > { %v2504_v53 = vrot.slane %v7543_v29, 1  ;;  %v2134_v20 = vmul.f32 %v7240_v3, %v7129_v8  ;;  %v2135_v59 = vmul.f32 %v7240_v3, %v7132_v0  ;;  %v2330_v6 = vrot.slane %v7632_v60, 7 }
 0x340   : > { %3361 = vmatmul.mubr.bf16.gmra.mrb[184].mxu0 %v7525_v1  ;;  %v2346_v13 = vrot.slane %v7634_v41, 7  ;;  %v7661_v32 = vpack.c.bf16 %v2624_v26, %v2519_v24  ;;  %v7663_v48 = vpack.c.bf16 %v2361_v47, %v2467_v9  ;;  %v2582_v37 = vrot.slane %v7543_v29, %v6023_v36 }
 0x341   : > { %3368 = vmatprep.mubr.bf16.mxu0 %v7527_v12  ;;  %v2536_v8 = vsel %vm552_vm2, %v2504_v53, %v2488_v43  ;;  %v2430_v0 = vrot.slane %v7632_v60, %v6019_v33  ;;  %v7672_v2 = vmax.f32 %v2134_v20, 0.0  ;;  %v7674_v5 = vmax.f32 %v2135_v59, 0.0 }
 0x342   : > { %v2378_v49 = vsel %vm389_vm0, %v2346_v13, %v2330_v6  ;;  %v7681_v29 = vpack.c.bf16 %v7594_v54, %v7592_v61  ;;  %v2520_v28 = vsel %vm552_vm2, %v2488_v43, %v2504_v53  ;;  %v2626_v24 = vsel %vm586_vm3, %v2582_v37, %v2536_v8 }
 0x343   : > { %v2362_v26 = vsel %vm389_vm0, %v2330_v6, %v2346_v13  ;;  %v2469_v47 = vsel %vm422_vm1, %v2430_v0, %v2378_v49  ;;  %v2489_v9 = vrot.slane %v7592_v61, 1  ;;  %v2505_v20 = vrot.slane %v7594_v54, 1 }
 0x344   : > { %8558 = vst [vmem:[#allocation13_spill] sm:$0xff] %v7681_v29  ;;  %v2136_v59 = vmul.f32 %v7240_v3, %v7135_v45  ;;  %v2137_v25 = vmul.f32 %v7240_v3, %v7138_v18  ;;  %v2331_v43 = vrot.slane %v7672_v2, 7  ;;  %v2347_v53 = vrot.slane %v7674_v5, 7 }
 0x345   : > { %3208 = vmatmul.mubr.bf16.gmra.mrb[156].mxu1 %v7483_v11  ;;  %v7701_v6 = vpack.c.bf16 %v2626_v24, %v2520_v28  ;;  %v7703_v13 = vpack.c.bf16 %v2362_v26, %v2469_v47  ;;  %v2586_v61 = vrot.slane %v7594_v54, %v6023_v36  ;;  %v2537_v45 = vsel %vm552_vm2, %v2505_v20, %v2489_v9 }
 0x346   : > { %3215 = vmatprep.mubr.bf16.mxu1 %v7555_v34  ;;  %v2434_v18 = vrot.slane %v7672_v2, %v6019_v33  ;;  %v7712_v37 = vmax.f32 %v2136_v59, 0.0  ;;  %v7714_v8 = vmax.f32 %v2137_v25, 0.0  ;;  %v2379_v0 = vsel %vm389_vm0, %v2347_v53, %v2331_v43 }
 0x347   : > { %v7721_v54 = vpack.c.bf16 %v7634_v41, %v7632_v60  ;;  %v2521_v49 = vsel %vm552_vm2, %v2489_v9, %v2505_v20  ;;  %v2628_v28 = vsel %vm586_vm3, %v2586_v61, %v2537_v45  ;;  %v2363_v24 = vsel %vm389_vm0, %v2331_v43, %v2347_v53 }
 0x348   : > { %3369 = vmatmul.mubr.bf16.gmra.mrb[188].mxu0 %v7581_v58  ;;  %v2471_v25 = vsel %vm422_vm1, %v2434_v18, %v2379_v0  ;;  %v2490_v26 = vrot.slane %v7632_v60, 1  ;;  %v2506_v47 = vrot.slane %v7634_v41, 1  ;;  %v2139_v59 = vmul.f32 %v7240_v3, %v7144_v52 }
 0x349   : > { %3376 = vmatprep.mubr.bf16.mxu0 %v7583_v10  ;;  %v2332_v9 = vrot.slane %v7712_v37, 7  ;;  %v2348_v20 = vrot.slane %v7714_v8, 7  ;;  %v7741_v43 = vpack.c.bf16 %v2628_v28, %v2521_v49  ;;  %v7743_v53 = vpack.c.bf16 %v2363_v24, %v2471_v25 }
 0x34a   : > { %v2590_v60 = vrot.slane %v7634_v41, %v6023_v36  ;;  %v2438_v52 = vrot.slane %v7712_v37, %v6019_v33  ;;  %v7757_v18 = vpack.c.bf16 %v7674_v5, %v7672_v2  ;;  %v2522_v41 = vsel %vm552_vm2, %v2490_v26, %v2506_v47 }
 0x34b   : > { %v2380_v45 = vsel %vm389_vm0, %v2348_v20, %v2332_v9  ;;  %v2364_v49 = vsel %vm389_vm0, %v2332_v9, %v2348_v20  ;;  %v2491_v28 = vrot.slane %v7672_v2, 1  ;;  %v2507_v24 = vrot.slane %v7674_v5, 1 }
 0x34c   : > { %8559 = vst [vmem:[#allocation14_spill] sm:$0xff] %v7757_v18  ;;  %v2594_v9 = vrot.slane %v7674_v5, %v6023_v36 }
 0x34d   : > { %3216 = vmatmul.mubr.bf16.gmra.mrb[160].mxu1 %v7527_v12  ;;  %v2539_v2 = vsel %vm552_vm2, %v2507_v24, %v2491_v28 }
 0x34e   : > { %3223 = vmatprep.mubr.bf16.mxu1 %v7601_v19  ;;  %v2632_v5 = vsel %vm586_vm3, %v2594_v9, %v2539_v2 }
 0x350   : > { %3377 = vmatmul.mubr.bf16.gmra.mrb[192].mxu0 %v7621_v23 }
 0x351   : > { %3384 = vmatprep.mubr.bf16.mxu0 %v7623_v15 }
 0x355   : > { %3224 = vmatmul.mubr.bf16.gmra.mrb[164].mxu1 %v7583_v10 }
 0x356   : > { %3231 = vmatprep.mubr.bf16.mxu1 %v7641_v51 }
 0x358   : > { %3385 = vmatmul.mubr.bf16.gmra.mrb[196].mxu0 %v7661_v32 }
 0x359   : > { %3392 = vmatprep.mubr.bf16.mxu0 %v7663_v48 }
 0x35d   : > { %3232 = vmatmul.mubr.bf16.gmra.mrb[168].mxu1 %v7623_v15 }
 0x35e   : > { %3239 = vmatprep.mubr.bf16.mxu1 %v7681_v29  ;;  %v2138_v29 = vmul.f32 %v7240_v3, %v7141_v62  ;;  %v2538_v62 = vsel %vm552_vm2, %v2506_v47, %v2490_v26  ;;  %v2171_v3 = vmax.f32 %v2139_v59, 0.0 }
 0x35f   : > { %v2630_v0 = vsel %vm586_vm3, %v2590_v60, %v2538_v62  ;;  %v7786_v62 = vpack.c.bf16 %v7714_v8, %v7712_v37 }
 0x360   : > { %3393 = vmatmul.mubr.bf16.gmra.mrb[200].mxu0 %v7701_v6  ;;  %v2170_v61 = vmax.f32 %v2138_v29, 0.0  ;;  %v2473_v29 = vsel %vm422_vm1, %v2438_v52, %v2380_v45  ;;  %v2349_v59 = vrot.slane %v2171_v3, 7  ;;  %v7771_v26 = vpack.c.bf16 %v2630_v0, %v2522_v41 }
 0x361   : > { %3400 = vmatprep.mubr.bf16.mxu0 %v7703_v13  ;;  %v7773_v47 = vpack.c.bf16 %v2364_v49, %v2473_v29  ;;  %v2523_v52 = vsel %vm552_vm2, %v2491_v28, %v2507_v24  ;;  %v2492_v0 = vrot.slane %v7712_v37, 1  ;;  %v2508_v49 = vrot.slane %v7714_v8, 1 }
 0x362   : > { %v2333_v25 = vrot.slane %v2170_v61, 7  ;;  %v2442_v20 = vrot.slane %v2170_v61, %v6019_v33  ;;  %v2334_v29 = vrot.slane %v7501_v16, 7  ;;  %v7802_v28 = vpack.c.bf16 %v2632_v5, %v2523_v52 }
 0x363   : > { %v2540_v37 = vsel %vm552_vm2, %v2508_v49, %v2492_v0  ;;  %v7816_v9 = vpack.c.bf16 %v2171_v3, %v2170_v61  ;;  %v2524_v2 = vsel %vm552_vm2, %v2492_v0, %v2508_v49 }
 0x364   : > { %v2381_v60 = vsel %vm389_vm0, %v2349_v59, %v2333_v25  ;;  %v2365_v45 = vsel %vm389_vm0, %v2333_v25, %v2349_v59  ;;  %v2598_v25 = vrot.slane %v7714_v8, %v6023_v36  ;;  %v2446_v59 = vrot.slane %v7501_v16, %v6019_v33 }
 0x365   : > { %3240 = vmatmul.mubr.bf16.gmra.mrb[172].mxu1 %v7663_v48  ;;  %v2475_v41 = vsel %vm422_vm1, %v2442_v20, %v2381_v60  ;;  %v2493_v33 = vrot.slane %v2170_v61, 1  ;;  %v2509_v16 = vrot.slane %v2171_v3, 1 }
 0x366   : > { %3247 = vmatprep.mubr.bf16.mxu1 %v7721_v54  ;;  %v7804_v24 = vpack.c.bf16 %v2365_v45, %v2475_v41  ;;  %v2634_v8 = vsel %vm586_vm3, %v2598_v25, %v2540_v37  ;;  %v2602_v45 = vrot.slane %v2171_v3, %v6023_v36  ;;  %v5661_v36 = vld [vmem:[#allocation5 + $0x448] sm:$0xff]  }
 0x367   : > { %v7828_v52 = vpack.c.bf16 %v2634_v8, %v2524_v2  ;;  %v2525_v61 = vsel %vm552_vm2, %v2493_v33, %v2509_v16 }
 0x368   : > { %3401 = vmatmul.mubr.bf16.gmra.mrb[204].mxu0 %v7741_v43 }
 0x369   : > { %3408 = vmatprep.mubr.bf16.mxu0 %v7743_v53 }
 0x36d   : > { %3248 = vmatmul.mubr.bf16.gmra.mrb[176].mxu1 %v7703_v13 }
 0x36e   : > { %3255 = vmatprep.mubr.bf16.mxu1 %v7757_v18  ;;  %v2350_v18 = vrot.slane %v7503_v7, 7 }
 0x370   : > { %3409 = vmatmul.mubr.bf16.gmra.mrb[208].mxu0 %v7771_v26  ;;  %v2382_v7 = vsel %vm389_vm0, %v2350_v18, %v2334_v29  ;;  %v2366_v20 = vsel %vm389_vm0, %v2334_v29, %v2350_v18  ;;  %v2541_v18 = vsel %vm552_vm2, %v2509_v16, %v2493_v33 }
 0x371   : > { %3416 = vmatprep.mubr.bf16.mxu0 %v7773_v47  ;;  %v2477_v60 = vsel %vm422_vm1, %v2446_v59, %v2382_v7  ;;  %v2636_v41 = vsel %vm586_vm3, %v2602_v45, %v2541_v18 }
 0x372   : > { %v7830_v5 = vpack.c.bf16 %v2366_v20, %v2477_v60  ;;  %v7842_v0 = vpack.c.bf16 %v2636_v41, %v2525_v61 }
 0x375   : > { %3256 = vmatmul.mubr.bf16.gmra.mrb[180].mxu1 %v7743_v53 }
 0x376   : > { %3263 = vmatprep.mubr.bf16.mxu1 %v7786_v62 }
 0x378   : > { %3417 = vmatmul.mubr.bf16.gmra.mrb[212].mxu0 %v7802_v28 }
 0x379   : > { %3424 = vmatprep.mubr.bf16.mxu0 %v7804_v24 }
 0x37d   : > { %3264 = vmatmul.mubr.bf16.gmra.mrb[184].mxu1 %v7773_v47 }
 0x37e   : > { %3271 = vmatprep.mubr.bf16.mxu1 %v7816_v9 }
 0x380   : > { %3425 = vmatmul.mubr.bf16.gmra.mrb[216].mxu0 %v7828_v52 }
 0x381   : > { %3432 = vmatprep.mubr.bf16.mxu0 %v7830_v5 }
 0x385   : > { %3272 = vmatmul.mubr.bf16.gmra.mrb[188].mxu1 %v7804_v24 }
 0x386   : > { %3473 = vmatprep.mubr.bf16.mxu1 %v7324_v14  ;;  %v5665_v14 = vld [vmem:[#allocation5 + $0x468] sm:$0xff]  }
 0x388   : > { %3433 = vmatmul.mubr.bf16.gmra.mrb[220].mxu0 %v7842_v0 }
 0x389   : > { %3634 = vmatprep.mubr.bf16.mxu0 %v7262_v30 }
 0x38d   : > { %3474 = vmatmul.mubr.bf16.vlgmr.msra.gmra.mrb[192].mxu1 %v7272_v4  ;;  %v5664_v4 = vld [vmem:[#allocation5 + $0x460] sm:$0xff]  }
 0x38e   : > { %3481 = vmatprep.mubr.bf16.mxu1 %v7288_v39  ;;  %5414 = vmatpush3.bf16.msra.mxu1 %v7405_v17 }
 0x38f   : > { %5415 = vmatprep.subr.bf16.mxu1 %v5661_v36 }
 0x390   : > { %3635 = vmatmul.mubr.bf16.vlgmr.msra.gmra.mrb[224].mxu0 %v7278_v21  ;;  %v5666_v21 = vld [vmem:[#allocation5 + $0x470] sm:$0xff]  }
 0x391   : > { %3642 = vmatprep.mubr.bf16.mxu0 %v7340_v57 }
 0x392   : > { %5416 = vmatpush3.bf16.msra.mxu1 %v5661_v36 }
 0x393   : > { %5417 = vmatprep.subr.bf16.mxu1 %v5662_v27 }
 0x395   : > { %3482 = vmatmul.mubr.bf16.gmra.mrb[196].mxu1 %v7262_v30  ;;  %v5667_v30 = vld [vmem:[#allocation5 + $0x478] sm:$0xff]  }
 0x396   : > { %3489 = vmatprep.mubr.bf16.mxu1 %v7394_v50  ;;  %5418 = vmatpush3.bf16.msra.mxu1 %v5662_v27 }
 0x397   : > { %5419 = vmatprep.subr.bf16.mxu1 %v5663_v31 }
 0x398   : > { %3643 = vmatmul.mubr.bf16.gmra.mrb[228].mxu0 %v7326_v38  ;;  %v8560_v38 = vld [vmem:[#allocation13_spill] sm:$0xff] }
 0x399   : > { %3650 = vmatprep.mubr.bf16.mxu0 %v7374_v35 }
 0x39a   : > { %5420 = vmatpush3.bf16.msra.mxu1 %v5663_v31 }
 0x39b   : > { %5421 = vmatprep.subr.bf16.mxu1 %v5664_v4 }
 0x39d   : > { %3490 = vmatmul.mubr.bf16.gmra.mrb[200].mxu1 %v7340_v57 }
 0x39e   : > { %3497 = vmatprep.mubr.bf16.mxu1 %v7437_v55  ;;  %5422 = vmatpush3.bf16.msra.mxu1 %v5664_v4 }
 0x39f   : > { %5423 = vmatprep.subr.bf16.mxu1 %v5665_v14 }
 0x3a0   : > { %3651 = vmatmul.mubr.bf16.gmra.mrb[232].mxu0 %v7356_v22  ;;  %v8561_v22 = vld [vmem:[#allocation14_spill] sm:$0xff] }
 0x3a1   : > { %3658 = vmatprep.mubr.bf16.mxu0 %v7416_v46 }
 0x3a2   : > { %5424 = vmatpush3.bf16.msra.mxu1 %v5665_v14 }
 0x3a3   : > { %5425 = vmatprep.subr.bf16.mxu1 %v5666_v21 }
 0x3a5   : > { %3498 = vmatmul.mubr.bf16.gmra.mrb[204].mxu1 %v7374_v35 }
 0x3a6   : > { %3505 = vmatprep.mubr.bf16.mxu1 %v7479_v44  ;;  %5426 = vmatpush3.bf16.msra.mxu1 %v5666_v21 }
 0x3a7   : > { %5427 = vmatprep.subr.bf16.mxu1 %v5667_v30 }
 0x3a8   : > { %3659 = vmatmul.mubr.bf16.gmra.mrb[236].mxu0 %v7396_v40 }
 0x3a9   : > { %3666 = vmatprep.mubr.bf16.mxu0 %v7457_v56 }
 0x3aa   : > { %5428 = vmatpush3.bf16.msra.mxu1 %v5667_v30  ;;  %v8562_v30 = vld [vmem:[#allocation11_spill] sm:$0xff] }
 0x3ad   : > { %3506 = vmatmul.mubr.bf16.gmra.mrb[208].mxu1 %v7416_v46 }
 0x3ae   : > { %3513 = vmatprep.mubr.bf16.mxu1 %v7525_v1 }
 0x3b0   : > { %3667 = vmatmul.mubr.bf16.gmra.mrb[240].mxu0 %v7439_v42 }
 0x3b1   : > { %3674 = vmatprep.mubr.bf16.mxu0 %v7507_v63 }
 0x3b5   : > { %3514 = vmatmul.mubr.bf16.gmra.mrb[212].mxu1 %v7457_v56 }
 0x3b6   : > { %3521 = vmatprep.mubr.bf16.mxu1 %v7581_v58 }
 0x3b8   : > { %3675 = vmatmul.mubr.bf16.gmra.mrb[244].mxu0 %v7483_v11 }
 0x3b9   : > { %3682 = vmatprep.mubr.bf16.mxu0 %v7555_v34 }
 0x3bd   : > { %3522 = vmatmul.mubr.bf16.gmra.mrb[216].mxu1 %v7507_v63 }
 0x3be   : > { %3529 = vmatprep.mubr.bf16.mxu1 %v7621_v23 }
 0x3c0   : > { %3683 = vmatmul.mubr.bf16.gmra.mrb[248].mxu0 %v7527_v12 }
 0x3c1   : > { %3690 = vmatprep.mubr.bf16.mxu0 %v7601_v19 }
 0x3c5   : > { %3530 = vmatmul.mubr.bf16.gmra.mrb[220].mxu1 %v7555_v34 }
 0x3c6   : > { %3537 = vmatprep.mubr.bf16.mxu1 %v7661_v32 }
 0x3c8   : > { %3691 = vmatmul.mubr.bf16.gmra.mrb[252].mxu0 %v7583_v10 }
 0x3c9   : > { %3698 = vmatprep.mubr.bf16.mxu0 %v7641_v51 }
 0x3cd   : > { %3538 = vmatmul.mubr.bf16.gmra.mrb[224].mxu1 %v7601_v19 }
 0x3ce   : > { %3545 = vmatprep.mubr.bf16.mxu1 %v7701_v6 }
 0x3d0   : > { %3699 = vmatmul.mubr.bf16.gmra.mrb[0].mxu0 %v7623_v15 }
 0x3d1   : > { %3706 = vmatprep.mubr.bf16.mxu0 %v8560_v38 }
 0x3d5   : > { %3546 = vmatmul.mubr.bf16.gmra.mrb[228].mxu1 %v7641_v51 }
 0x3d6   : > { %3553 = vmatprep.mubr.bf16.mxu1 %v7741_v43 }
 0x3d8   : > { %3707 = vmatmul.mubr.bf16.gmra.mrb[4].mxu0 %v7663_v48 }
 0x3d9   : > { %3714 = vmatprep.mubr.bf16.mxu0 %v7721_v54 }
 0x3dd   : > { %3554 = vmatmul.mubr.bf16.gmra.mrb[232].mxu1 %v8560_v38 }
 0x3de   : > { %3561 = vmatprep.mubr.bf16.mxu1 %v7771_v26 }
 0x3e0   : > { %3715 = vmatmul.mubr.bf16.gmra.mrb[8].mxu0 %v7703_v13  ;;  %v4909_v57 = vpop.f32.mrb[128].mxu1 }
 0x3e1   : > { %3722 = vmatprep.mubr.bf16.mxu0 %v8561_v22  ;;  %v4910_v35 = vpop.f32.mrb[129].mxu1 }
 0x3e2   : > { %v4911_v40 = vadd.f32 %v4910_v35, %v4909_v57  ;;  %v4912_v17 = vpop.f32.mrb[130].mxu1 }
 0x3e3   : > { %v5021_v46 = vpop.f32.mrb[160].mxu0  ;;  %v4913_v42 = vpop.f32.mrb[131].mxu1 }
 0x3e4   : > { %v5022_v56 = vpop.f32.mrb[161].mxu0  ;;  %v4914_v11 = vadd.f32 %v4913_v42, %v4912_v17 }
 0x3e5   : > { %v5023_v63 = vadd.f32 %v5022_v56, %v5021_v46  ;;  %v5024_v12 = vpop.f32.mrb[162].mxu0  ;;  %3562 = vmatmul.mubr.bf16.gmra.mrb[236].mxu1 %v7721_v54 }
 0x3e6   : > { %v5025_v34 = vpop.f32.mrb[163].mxu0  ;;  %3569 = vmatprep.mubr.bf16.mxu1 %v7802_v28 }
 0x3e7   : > { %v7894_v10 = vadd.f32 %v5023_v63, %v4911_v40  ;;  %v5026_v19 = vadd.f32 %v5025_v34, %v5024_v12 }
 0x3e8   : > { %3723 = vmatmul.mubr.bf16.gmra.mrb[12].mxu0 %v7743_v53  ;;  %v4915_v15 = vpop.f32.mrb[132].mxu1 }
 0x3e9   : > { %v7897_v51 = vadd.f32 %v5026_v19, %v4914_v11  ;;  %3730 = vmatprep.mubr.bf16.mxu0 %v7786_v62  ;;  %v4916_v48 = vpop.f32.mrb[133].mxu1  ;;  %v8563_v11 = vld [vmem:[#allocation12_spill] sm:$0xff] }
 0x3ea   : > { %v4917_v13 = vadd.f32 %v4916_v48, %v4915_v15  ;;  %v4918_v3 = vpop.f32.mrb[134].mxu1 }
 0x3eb   : > { %v5027_v49 = vpop.f32.mrb[164].mxu0  ;;  %v4919_v29 = vpop.f32.mrb[135].mxu1 }
 0x3ec   : > { %v5028_v25 = vpop.f32.mrb[165].mxu0  ;;  %v4920_v54 = vadd.f32 %v4919_v29, %v4918_v3 }
 0x3ed   : > { %v5029_v37 = vadd.f32 %v5028_v25, %v5027_v49  ;;  %v5030_v59 = vpop.f32.mrb[166].mxu0  ;;  %3570 = vmatmul.mubr.bf16.gmra.mrb[240].mxu1 %v8561_v22 }
 0x3ee   : > { %v5031_v7 = vpop.f32.mrb[167].mxu0  ;;  %3577 = vmatprep.mubr.bf16.mxu1 %v7828_v52 }
 0x3ef   : > { %v7902_v53 = vadd.f32 %v5029_v37, %v4917_v13  ;;  %v5032_v2 = vadd.f32 %v5031_v7, %v5030_v59 }
 0x3f0   : > { %3731 = vmatmul.mubr.bf16.gmra.mrb[16].mxu0 %v7773_v47  ;;  %v4921_v8 = vpop.f32.mrb[136].mxu1 }
 0x3f1   : > { %v7905_v20 = vadd.f32 %v5032_v2, %v4920_v54  ;;  %3738 = vmatprep.mubr.bf16.mxu0 %v7816_v9  ;;  %v4922_v60 = vpop.f32.mrb[137].mxu1 }
 0x3f2   : > { %v4923_v33 = vadd.f32 %v4922_v60, %v4921_v8  ;;  %v4924_v16 = vpop.f32.mrb[138].mxu1 }
 0x3f3   : > { %v5033_v45 = vpop.f32.mrb[168].mxu0  ;;  %v4925_v18 = vpop.f32.mrb[139].mxu1 }
 0x3f4   : > { %v5034_v61 = vpop.f32.mrb[169].mxu0  ;;  %v4926_v41 = vadd.f32 %v4925_v18, %v4924_v16 }
 0x3f5   : > { %v5035_v36 = vadd.f32 %v5034_v61, %v5033_v45  ;;  %v5036_v27 = vpop.f32.mrb[170].mxu0  ;;  %3578 = vmatmul.mubr.bf16.gmra.mrb[244].mxu1 %v7786_v62 }
 0x3f6   : > { %v5037_v31 = vpop.f32.mrb[171].mxu0  ;;  %3585 = vmatprep.mubr.bf16.mxu1 %v7842_v0 }
 0x3f7   : > { %v7910_v47 = vadd.f32 %v5035_v36, %v4923_v33  ;;  %v5038_v4 = vadd.f32 %v5037_v31, %v5036_v27 }
 0x3f8   : > { %3739 = vmatmul.mubr.bf16.gmra.mrb[20].mxu0 %v7804_v24  ;;  %v4927_v14 = vpop.f32.mrb[140].mxu1 }
 0x3f9   : > { %v7913_v21 = vadd.f32 %v5038_v4, %v4926_v41  ;;  %3746 = vmatprep.mubr.bf16.mxu0 %v8562_v30  ;;  %v4928_v38 = vpop.f32.mrb[141].mxu1 }
 0x3fa   : > { %v4929_v57 = vadd.f32 %v4928_v38, %v4927_v14  ;;  %v4930_v22 = vpop.f32.mrb[142].mxu1 }
 0x3fb   : > { %v5039_v35 = vpop.f32.mrb[172].mxu0  ;;  %v4931_v40 = vpop.f32.mrb[143].mxu1 }
 0x3fc   : > { %v5040_v17 = vpop.f32.mrb[173].mxu0  ;;  %v4932_v62 = vadd.f32 %v4931_v40, %v4930_v22 }
 0x3fd   : > { %v5041_v46 = vadd.f32 %v5040_v17, %v5039_v35  ;;  %v5042_v42 = vpop.f32.mrb[174].mxu0  ;;  %3586 = vmatmul.mubr.bf16.gmra.mrb[248].mxu1 %v7816_v9 }
 0x3fe   : > { %v5043_v56 = vpop.f32.mrb[175].mxu0  ;;  %3593 = vmatprep.mubr.bf16.mxu1 %v8563_v11 }
 0x3ff   : > { %v7918_v63 = vadd.f32 %v5041_v46, %v4929_v57  ;;  %v5044_v12 = vadd.f32 %v5043_v56, %v5042_v42 }
 0x400   : > { %3747 = vmatmul.mubr.bf16.gmra.mrb[24].mxu0 %v7830_v5  ;;  %v4933_v34 = vpop.f32.mrb[144].mxu1 }
 0x401   : > { %v7921_v19 = vadd.f32 %v5044_v12, %v4932_v62  ;;  %3754 = vmatprep.mubr.bf16.mxu0 %v7816_v9  ;;  %v4934_v15 = vpop.f32.mrb[145].mxu1 }
 0x402   : > { %v4935_v48 = vadd.f32 %v4934_v15, %v4933_v34  ;;  %v4936_v13 = vpop.f32.mrb[146].mxu1 }
 0x403   : > { %v5045_v3 = vpop.f32.mrb[176].mxu0  ;;  %v4937_v49 = vpop.f32.mrb[147].mxu1 }
 0x404   : > { %v5046_v29 = vpop.f32.mrb[177].mxu0  ;;  %v4938_v25 = vadd.f32 %v4937_v49, %v4936_v13 }
 0x405   : > { %v5047_v54 = vadd.f32 %v5046_v29, %v5045_v3  ;;  %v5048_v37 = vpop.f32.mrb[178].mxu0  ;;  %3594 = vmatmul.mubr.bf16.gmra.mrb[252].mxu1 %v8562_v30 }
 0x406   : > { %v5049_v59 = vpop.f32.mrb[179].mxu0  ;;  %5429 = vmatprep.mubr.bf16.mxu1 %v7288_v39 }
 0x407   : > { %v7926_v5 = vadd.f32 %v5047_v54, %v4935_v48  ;;  %v5050_v7 = vadd.f32 %v5049_v59, %v5048_v37 }
 0x408   : > { %3755 = vmatmul.mubr.bf16.gmra.mrb[28].mxu0 %v7804_v24  ;;  %v4939_v9 = vpop.f32.mrb[148].mxu1 }
 0x409   : > { %v7929_v2 = vadd.f32 %v5050_v7, %v4938_v25  ;;  %v4940_v8 = vpop.f32.mrb[149].mxu1 }
 0x40a   : > { %v4941_v60 = vadd.f32 %v4940_v8, %v4939_v9  ;;  %v4942_v33 = vpop.f32.mrb[150].mxu1 }
 0x40b   : > { %v5051_v16 = vpop.f32.mrb[180].mxu0  ;;  %v4943_v45 = vpop.f32.mrb[151].mxu1 }
 0x40c   : > { %v5052_v18 = vpop.f32.mrb[181].mxu0  ;;  %v4944_v61 = vadd.f32 %v4943_v45, %v4942_v33 }
 0x40d   : > { %v5053_v41 = vadd.f32 %v5052_v18, %v5051_v16  ;;  %v5054_v36 = vpop.f32.mrb[182].mxu0  ;;  %5430 = vmatmul.mubr.bf16.vlgmr.msra.gmra.mrb[0].mxu1 %v7394_v50 }
 0x40e   : > { %v5055_v39 = vpop.f32.mrb[183].mxu0  ;;  %5433 = vmatprep.mubr.bf16.mxu1 %v7437_v55 }
 0x40f   : > { %v7933_v27 = vadd.f32 %v5053_v41, %v4941_v60  ;;  %v5056_v24 = vadd.f32 %v5055_v39, %v5054_v36 }
 0x410   : > { %v4945_v31 = vpop.f32.mrb[152].mxu1 }
 0x411   : > { %v7935_v4 = vadd.f32 %v5056_v24, %v4944_v61  ;;  %v4946_v14 = vpop.f32.mrb[153].mxu1 }
 0x412   : > { %v4947_v30 = vadd.f32 %v4946_v14, %v4945_v31  ;;  %v4948_v38 = vpop.f32.mrb[154].mxu1 }
 0x413   : > { %v5057_v57 = vpop.f32.mrb[184].mxu0  ;;  %v4949_v22 = vpop.f32.mrb[155].mxu1 }
 0x414   : > { %v5058_v35 = vpop.f32.mrb[185].mxu0  ;;  %v4950_v40 = vadd.f32 %v4949_v22, %v4948_v38 }
 0x415   : > { %v5059_v17 = vadd.f32 %v5058_v35, %v5057_v57  ;;  %v5060_v62 = vpop.f32.mrb[186].mxu0  ;;  %5434 = vmatmul.mubr.bf16.gmra.mrb[4].mxu1 %v7479_v44 }
 0x416   : > { %v5061_v50 = vpop.f32.mrb[187].mxu0  ;;  %5437 = vmatprep.mubr.bf16.mxu1 %v7525_v1 }
 0x417   : > { %v7939_v55 = vadd.f32 %v5059_v17, %v4947_v30  ;;  %v5062_v46 = vadd.f32 %v5061_v50, %v5060_v62 }
 0x418   : > { %v4951_v42 = vpop.f32.mrb[156].mxu1 }
 0x419   : > { %v7941_v56 = vadd.f32 %v5062_v46, %v4950_v40  ;;  %v4952_v12 = vpop.f32.mrb[157].mxu1 }
 0x41a   : > { %v4953_v34 = vadd.f32 %v4952_v12, %v4951_v42  ;;  %v4954_v15 = vpop.f32.mrb[158].mxu1 }
 0x41b   : > { %v5063_v48 = vpop.f32.mrb[188].mxu0  ;;  %v4955_v13 = vpop.f32.mrb[159].mxu1 }
 0x41c   : > { %v5064_v3 = vpop.f32.mrb[189].mxu0  ;;  %v4956_v49 = vadd.f32 %v4955_v13, %v4954_v15 }
 0x41d   : > { %v5065_v29 = vadd.f32 %v5064_v3, %v5063_v48  ;;  %v5066_v25 = vpop.f32.mrb[190].mxu0  ;;  %5438 = vmatmul.mubr.bf16.gmra.mrb[8].mxu1 %v7581_v58 }
 0x41e   : > { %v5067_v44 = vpop.f32.mrb[191].mxu0  ;;  %5441 = vmatprep.mubr.bf16.mxu1 %v7621_v23 }
 0x41f   : > { %v7945_v1 = vadd.f32 %v5065_v29, %v4953_v34  ;;  %v5068_v54 = vadd.f32 %v5067_v44, %v5066_v25 }
 0x420   : > { %v4957_v37 = vpop.f32.mrb[160].mxu1 }
 0x421   : > { %v7947_v59 = vadd.f32 %v5068_v54, %v4956_v49  ;;  %v4958_v7 = vpop.f32.mrb[161].mxu1 }
 0x422   : > { %v4959_v9 = vadd.f32 %v4958_v7, %v4957_v37  ;;  %v4960_v8 = vpop.f32.mrb[162].mxu1 }
 0x423   : > { %v5069_v60 = vpop.f32.mrb[192].mxu0  ;;  %v4961_v33 = vpop.f32.mrb[163].mxu1 }
 0x424   : > { %v5070_v16 = vpop.f32.mrb[193].mxu0  ;;  %v4962_v45 = vadd.f32 %v4961_v33, %v4960_v8 }
 0x425   : > { %v5071_v18 = vadd.f32 %v5070_v16, %v5069_v60  ;;  %v5072_v61 = vpop.f32.mrb[194].mxu0  ;;  %5442 = vmatmul.mubr.bf16.gmra.mrb[12].mxu1 %v7661_v32 }
 0x426   : > { %v5073_v58 = vpop.f32.mrb[195].mxu0  ;;  %5445 = vmatprep.mubr.bf16.mxu1 %v7701_v6 }
 0x427   : > { %v7951_v23 = vadd.f32 %v5071_v18, %v4959_v9  ;;  %v5074_v41 = vadd.f32 %v5073_v58, %v5072_v61 }
 0x428   : > { %v4963_v36 = vpop.f32.mrb[164].mxu1 }
 0x429   : > { %v7953_v39 = vadd.f32 %v5074_v41, %v4962_v45  ;;  %v4964_v24 = vpop.f32.mrb[165].mxu1 }
 0x42a   : > { %v4965_v31 = vadd.f32 %v4964_v24, %v4963_v36  ;;  %v4966_v14 = vpop.f32.mrb[166].mxu1 }
 0x42b   : > { %v5075_v30 = vpop.f32.mrb[196].mxu0  ;;  %v4967_v38 = vpop.f32.mrb[167].mxu1 }
 0x42c   : > { %v5076_v57 = vpop.f32.mrb[197].mxu0  ;;  %v4968_v22 = vadd.f32 %v4967_v38, %v4966_v14 }
 0x42d   : > { %v5077_v35 = vadd.f32 %v5076_v57, %v5075_v30  ;;  %v5078_v40 = vpop.f32.mrb[198].mxu0  ;;  %5446 = vmatmul.mubr.bf16.gmra.mrb[16].mxu1 %v7741_v43 }
 0x42e   : > { %v5079_v32 = vpop.f32.mrb[199].mxu0  ;;  %5449 = vmatprep.mubr.bf16.mxu1 %v7771_v26 }
 0x42f   : > { %v7957_v6 = vadd.f32 %v5077_v35, %v4965_v31  ;;  %v5080_v17 = vadd.f32 %v5079_v32, %v5078_v40 }
 0x430   : > { %v4969_v62 = vpop.f32.mrb[168].mxu1 }
 0x431   : > { %v7959_v50 = vadd.f32 %v5080_v17, %v4968_v22  ;;  %v4970_v46 = vpop.f32.mrb[169].mxu1 }
 0x432   : > { %v4971_v42 = vadd.f32 %v4970_v46, %v4969_v62  ;;  %v4972_v12 = vpop.f32.mrb[170].mxu1 }
 0x433   : > { %v5081_v34 = vpop.f32.mrb[200].mxu0  ;;  %v4973_v15 = vpop.f32.mrb[171].mxu1 }
 0x434   : > { %v5082_v48 = vpop.f32.mrb[201].mxu0  ;;  %v4974_v13 = vadd.f32 %v4973_v15, %v4972_v12 }
 0x435   : > { %v5083_v3 = vadd.f32 %v5082_v48, %v5081_v34  ;;  %v5084_v49 = vpop.f32.mrb[202].mxu0  ;;  %5450 = vmatmul.mubr.bf16.gmra.mrb[20].mxu1 %v7802_v28 }
 0x436   : > { %v5085_v43 = vpop.f32.mrb[203].mxu0  ;;  %5453 = vmatprep.mubr.bf16.mxu1 %v7828_v52 }
 0x437   : > { %v7963_v26 = vadd.f32 %v5083_v3, %v4971_v42  ;;  %v5086_v29 = vadd.f32 %v5085_v43, %v5084_v49 }
 0x438   : > { %v4975_v25 = vpop.f32.mrb[172].mxu1 }
 0x439   : > { %v7965_v44 = vadd.f32 %v5086_v29, %v4974_v13  ;;  %v4976_v54 = vpop.f32.mrb[173].mxu1 }
 0x43a   : > { %v4977_v37 = vadd.f32 %v4976_v54, %v4975_v25  ;;  %v4978_v7 = vpop.f32.mrb[174].mxu1 }
 0x43b   : > { %v5087_v9 = vpop.f32.mrb[204].mxu0  ;;  %v4979_v8 = vpop.f32.mrb[175].mxu1 }
 0x43c   : > { %v5088_v60 = vpop.f32.mrb[205].mxu0  ;;  %v4980_v33 = vadd.f32 %v4979_v8, %v4978_v7 }
 0x43d   : > { %v5089_v16 = vadd.f32 %v5088_v60, %v5087_v9  ;;  %v5090_v45 = vpop.f32.mrb[206].mxu0  ;;  %5454 = vmatmul.mubr.bf16.gmra.mrb[24].mxu1 %v7842_v0 }
 0x43e   : > { %v5091_v28 = vpop.f32.mrb[207].mxu0  ;;  %5457 = vmatprep.mubr.bf16.mxu1 %v8563_v11 }
 0x43f   : > { %v7969_v52 = vadd.f32 %v5089_v16, %v4977_v37  ;;  %v5092_v18 = vadd.f32 %v5091_v28, %v5090_v45 }
 0x440   : > { %v4981_v61 = vpop.f32.mrb[176].mxu1 }
 0x441   : > { %v7971_v58 = vadd.f32 %v5092_v18, %v4980_v33  ;;  %v4982_v41 = vpop.f32.mrb[177].mxu1 }
 0x442   : > { %v4983_v36 = vadd.f32 %v4982_v41, %v4981_v61  ;;  %v4984_v24 = vpop.f32.mrb[178].mxu1 }
 0x443   : > { %v5093_v31 = vpop.f32.mrb[208].mxu0  ;;  %v4985_v14 = vpop.f32.mrb[179].mxu1 }
 0x444   : > { %v5094_v30 = vpop.f32.mrb[209].mxu0  ;;  %v4986_v38 = vadd.f32 %v4985_v14, %v4984_v24 }
 0x445   : > { %v5095_v57 = vadd.f32 %v5094_v30, %v5093_v31  ;;  %v5096_v22 = vpop.f32.mrb[210].mxu0  ;;  %5458 = vmatmul.mubr.bf16.gmra.mrb[28].mxu1 %v7842_v0 }
 0x446   : > { %v5097_v35 = vpop.f32.mrb[211].mxu0 }
 0x447   : > { %v7974_v40 = vadd.f32 %v5095_v57, %v4983_v36  ;;  %v5098_v11 = vadd.f32 %v5097_v35, %v5096_v22 }
 0x448   : > { %v4987_v32 = vpop.f32.mrb[180].mxu1 }
 0x449   : > { %v7976_v17 = vadd.f32 %v5098_v11, %v4986_v38  ;;  %v4988_v62 = vpop.f32.mrb[181].mxu1 }
 0x44a   : > { %v4989_v46 = vadd.f32 %v4988_v62, %v4987_v32  ;;  %v4990_v42 = vpop.f32.mrb[182].mxu1 }
 0x44b   : > { %v5099_v12 = vpop.f32.mrb[212].mxu0  ;;  %v4991_v34 = vpop.f32.mrb[183].mxu1 }
 0x44c   : > { %v5100_v15 = vpop.f32.mrb[213].mxu0  ;;  %v4992_v48 = vadd.f32 %v4991_v34, %v4990_v42 }
 0x44d   : > { %v5101_v13 = vadd.f32 %v5100_v15, %v5099_v12  ;;  %v5102_v3 = vpop.f32.mrb[214].mxu0 }
 0x44e   : > { %v5103_v49 = vpop.f32.mrb[215].mxu0 }
 0x44f   : > { %v7978_v43 = vadd.f32 %v5101_v13, %v4989_v46  ;;  %v5104_v0 = vadd.f32 %v5103_v49, %v5102_v3 }
 0x450   : > { %v4993_v29 = vpop.f32.mrb[184].mxu1 }
 0x451   : > { %v7980_v25 = vadd.f32 %v5104_v0, %v4992_v48  ;;  %v4994_v54 = vpop.f32.mrb[185].mxu1 }
 0x452   : > { %v4995_v37 = vadd.f32 %v4994_v54, %v4993_v29  ;;  %v4996_v7 = vpop.f32.mrb[186].mxu1 }
 0x453   : > { %v5105_v9 = vpop.f32.mrb[216].mxu0  ;;  %v4997_v8 = vpop.f32.mrb[187].mxu1 }
 0x454   : > { %v5106_v60 = vpop.f32.mrb[217].mxu0  ;;  %v4998_v33 = vadd.f32 %v4997_v8, %v4996_v7 }
 0x455   : > { %v5107_v16 = vadd.f32 %v5106_v60, %v5105_v9  ;;  %v5108_v45 = vpop.f32.mrb[218].mxu0 }
 0x456   : > { %v5109_v28 = vpop.f32.mrb[219].mxu0 }
 0x457   : > { %v7982_v18 = vadd.f32 %v5107_v16, %v4995_v37  ;;  %v5110_v61 = vadd.f32 %v5109_v28, %v5108_v45 }
 0x458   : > { %v4999_v41 = vpop.f32.mrb[188].mxu1 }
 0x459   : > { %v7984_v36 = vadd.f32 %v5110_v61, %v4998_v33  ;;  %v5000_v24 = vpop.f32.mrb[189].mxu1 }
 0x45a   : > { %v5001_v31 = vadd.f32 %v5000_v24, %v4999_v41  ;;  %v5002_v14 = vpop.f32.mrb[190].mxu1 }
 0x45b   : > { %v5111_v30 = vpop.f32.mrb[220].mxu0  ;;  %v5003_v38 = vpop.f32.mrb[191].mxu1 }
 0x45c   : > { %v5112_v57 = vpop.f32.mrb[221].mxu0  ;;  %v5004_v22 = vadd.f32 %v5003_v38, %v5002_v14 }
 0x45d   : > { %v5113_v35 = vadd.f32 %v5112_v57, %v5111_v30  ;;  %v5114_v11 = vpop.f32.mrb[222].mxu0 }
 0x45e   : > { %v5115_v32 = vpop.f32.mrb[223].mxu0 }
 0x45f   : > { %v7986_v62 = vadd.f32 %v5113_v35, %v5001_v31  ;;  %v5116_v46 = vadd.f32 %v5115_v32, %v5114_v11 }
 0x460   : > { %v5133_v42 = vpop.f32.mrb[192].mxu1 }
 0x461   : > { %v7988_v12 = vadd.f32 %v5116_v46, %v5004_v22  ;;  %v5134_v34 = vpop.f32.mrb[193].mxu1 }
 0x462   : > { %v5135_v15 = vadd.f32 %v5134_v34, %v5133_v42  ;;  %v5136_v48 = vpop.f32.mrb[194].mxu1 }
 0x463   : > { %v5245_v13 = vpop.f32.mrb[224].mxu0  ;;  %v5137_v3 = vpop.f32.mrb[195].mxu1 }
 0x464   : > { %v3476_v49 = vadd.f32 %v5135_v15, %v7894_v10  ;;  %v5246_v0 = vpop.f32.mrb[225].mxu0  ;;  %v5138_v29 = vadd.f32 %v5137_v3, %v5136_v48 }
 0x465   : > { %v5247_v54 = vadd.f32 %v5246_v0, %v5245_v13  ;;  %v5248_v37 = vpop.f32.mrb[226].mxu0 }
 0x466   : > { %v3479_v7 = vadd.f32 %v5138_v29, %v7897_v51  ;;  %v5249_v9 = vpop.f32.mrb[227].mxu0 }
 0x467   : > { %v5250_v8 = vadd.f32 %v5249_v9, %v5248_v37  ;;  %v7992_v60 = vadd.f32 %v5247_v54, %v3476_v49 }
 0x468   : > { %v5139_v33 = vpop.f32.mrb[196].mxu1 }
 0x469   : > { %v5140_v16 = vpop.f32.mrb[197].mxu1  ;;  %v7994_v45 = vadd.f32 %v5250_v8, %v3479_v7 }
 0x46a   : > { %v5141_v28 = vadd.f32 %v5140_v16, %v5139_v33  ;;  %v5142_v61 = vpop.f32.mrb[198].mxu1 }
 0x46b   : > { %v5251_v41 = vpop.f32.mrb[228].mxu0  ;;  %v5143_v24 = vpop.f32.mrb[199].mxu1 }
 0x46c   : > { %v3484_v10 = vadd.f32 %v5141_v28, %v7902_v53  ;;  %v5252_v31 = vpop.f32.mrb[229].mxu0  ;;  %v5144_v14 = vadd.f32 %v5143_v24, %v5142_v61 }
 0x46d   : > { %v5253_v30 = vadd.f32 %v5252_v31, %v5251_v41  ;;  %v5254_v38 = vpop.f32.mrb[230].mxu0 }
 0x46e   : > { %v3487_v51 = vadd.f32 %v5144_v14, %v7905_v20  ;;  %v5255_v57 = vpop.f32.mrb[231].mxu0 }
 0x46f   : > { %v5256_v22 = vadd.f32 %v5255_v57, %v5254_v38  ;;  %v7998_v35 = vadd.f32 %v5253_v30, %v3484_v10 }
 0x470   : > { %v5145_v11 = vpop.f32.mrb[200].mxu1 }
 0x471   : > { %v5146_v32 = vpop.f32.mrb[201].mxu1  ;;  %v8000_v46 = vadd.f32 %v5256_v22, %v3487_v51 }
 0x472   : > { %v5147_v42 = vadd.f32 %v5146_v32, %v5145_v11  ;;  %v5148_v34 = vpop.f32.mrb[202].mxu1 }
 0x473   : > { %v5257_v15 = vpop.f32.mrb[232].mxu0  ;;  %v5149_v48 = vpop.f32.mrb[203].mxu1 }
 0x474   : > { %v3492_v53 = vadd.f32 %v5147_v42, %v7910_v47  ;;  %v5258_v13 = vpop.f32.mrb[233].mxu0  ;;  %v5150_v3 = vadd.f32 %v5149_v48, %v5148_v34 }
 0x475   : > { %v5259_v49 = vadd.f32 %v5258_v13, %v5257_v15  ;;  %v5260_v0 = vpop.f32.mrb[234].mxu0 }
 0x476   : > { %v3495_v20 = vadd.f32 %v5150_v3, %v7913_v21  ;;  %v5261_v29 = vpop.f32.mrb[235].mxu0 }
 0x477   : > { %v5262_v54 = vadd.f32 %v5261_v29, %v5260_v0  ;;  %v8004_v37 = vadd.f32 %v5259_v49, %v3492_v53 }
 0x478   : > { %v5151_v7 = vpop.f32.mrb[204].mxu1 }
 0x479   : > { %v5152_v9 = vpop.f32.mrb[205].mxu1  ;;  %v8006_v8 = vadd.f32 %v5262_v54, %v3495_v20 }
 0x47a   : > { %v5153_v33 = vadd.f32 %v5152_v9, %v5151_v7  ;;  %v5154_v16 = vpop.f32.mrb[206].mxu1 }
 0x47b   : > { %v5263_v28 = vpop.f32.mrb[236].mxu0  ;;  %v5155_v61 = vpop.f32.mrb[207].mxu1 }
 0x47c   : > { %v3500_v47 = vadd.f32 %v5153_v33, %v7918_v63  ;;  %v5264_v41 = vpop.f32.mrb[237].mxu0  ;;  %v5156_v24 = vadd.f32 %v5155_v61, %v5154_v16 }
 0x47d   : > { %v5265_v10 = vadd.f32 %v5264_v41, %v5263_v28  ;;  %v5266_v31 = vpop.f32.mrb[238].mxu0 }
 0x47e   : > { %v3503_v21 = vadd.f32 %v5156_v24, %v7921_v19  ;;  %v5267_v14 = vpop.f32.mrb[239].mxu0 }
 0x47f   : > { %v5268_v30 = vadd.f32 %v5267_v14, %v5266_v31  ;;  %v8010_v38 = vadd.f32 %v5265_v10, %v3500_v47 }
 0x480   : > { %v5157_v51 = vpop.f32.mrb[208].mxu1 }
 0x481   : > { %v5158_v57 = vpop.f32.mrb[209].mxu1  ;;  %v8012_v22 = vadd.f32 %v5268_v30, %v3503_v21 }
 0x482   : > { %v5159_v11 = vadd.f32 %v5158_v57, %v5157_v51  ;;  %v5160_v32 = vpop.f32.mrb[210].mxu1 }
 0x483   : > { %v5269_v42 = vpop.f32.mrb[240].mxu0  ;;  %v5161_v34 = vpop.f32.mrb[211].mxu1 }
 0x484   : > { %v3508_v63 = vadd.f32 %v5159_v11, %v7926_v5  ;;  %v5270_v15 = vpop.f32.mrb[241].mxu0  ;;  %v5162_v48 = vadd.f32 %v5161_v34, %v5160_v32 }
 0x485   : > { %v5271_v53 = vadd.f32 %v5270_v15, %v5269_v42  ;;  %v5272_v13 = vpop.f32.mrb[242].mxu0 }
 0x486   : > { %v3511_v19 = vadd.f32 %v5162_v48, %v7929_v2  ;;  %v5273_v3 = vpop.f32.mrb[243].mxu0 }
 0x487   : > { %v5274_v49 = vadd.f32 %v5273_v3, %v5272_v13  ;;  %v8016_v0 = vadd.f32 %v5271_v53, %v3508_v63 }
 0x488   : > { %v5163_v20 = vpop.f32.mrb[212].mxu1 }
 0x489   : > { %v5164_v29 = vpop.f32.mrb[213].mxu1  ;;  %v8018_v54 = vadd.f32 %v5274_v49, %v3511_v19 }
 0x48a   : > { %v5165_v7 = vadd.f32 %v5164_v29, %v5163_v20  ;;  %v5166_v9 = vpop.f32.mrb[214].mxu1 }
 0x48b   : > { %v5275_v33 = vpop.f32.mrb[244].mxu0  ;;  %v5167_v16 = vpop.f32.mrb[215].mxu1 }
 0x48c   : > { %v3516_v5 = vadd.f32 %v5165_v7, %v7933_v27  ;;  %v5276_v28 = vpop.f32.mrb[245].mxu0  ;;  %v5168_v61 = vadd.f32 %v5167_v16, %v5166_v9 }
 0x48d   : > { %v5277_v47 = vadd.f32 %v5276_v28, %v5275_v33  ;;  %v5278_v41 = vpop.f32.mrb[246].mxu0 }
 0x48e   : > { %v3519_v2 = vadd.f32 %v5168_v61, %v7935_v4  ;;  %v5279_v24 = vpop.f32.mrb[247].mxu0 }
 0x48f   : > { %v5280_v10 = vadd.f32 %v5279_v24, %v5278_v41  ;;  %v8022_v31 = vadd.f32 %v5277_v47, %v3516_v5 }
 0x490   : > { %v5169_v21 = vpop.f32.mrb[216].mxu1 }
 0x491   : > { %v5170_v14 = vpop.f32.mrb[217].mxu1  ;;  %v8024_v30 = vadd.f32 %v5280_v10, %v3519_v2 }
 0x492   : > { %v5171_v51 = vadd.f32 %v5170_v14, %v5169_v21  ;;  %v5172_v57 = vpop.f32.mrb[218].mxu1 }
 0x493   : > { %v5281_v11 = vpop.f32.mrb[248].mxu0  ;;  %v5173_v32 = vpop.f32.mrb[219].mxu1 }
 0x494   : > { %v3524_v27 = vadd.f32 %v5171_v51, %v7939_v55  ;;  %v5282_v42 = vpop.f32.mrb[249].mxu0  ;;  %v5174_v34 = vadd.f32 %v5173_v32, %v5172_v57 }
 0x495   : > { %v5283_v63 = vadd.f32 %v5282_v42, %v5281_v11  ;;  %v5284_v15 = vpop.f32.mrb[250].mxu0 }
 0x496   : > { %v3527_v4 = vadd.f32 %v5174_v34, %v7941_v56  ;;  %v5285_v48 = vpop.f32.mrb[251].mxu0 }
 0x497   : > { %v5286_v53 = vadd.f32 %v5285_v48, %v5284_v15  ;;  %v8028_v13 = vadd.f32 %v5283_v63, %v3524_v27 }
 0x498   : > { %v5175_v19 = vpop.f32.mrb[220].mxu1 }
 0x499   : > { %v5176_v3 = vpop.f32.mrb[221].mxu1  ;;  %v8030_v49 = vadd.f32 %v5286_v53, %v3527_v4 }
 0x49a   : > { %v5177_v20 = vadd.f32 %v5176_v3, %v5175_v19  ;;  %v5178_v29 = vpop.f32.mrb[222].mxu1 }
 0x49b   : > { %v5287_v7 = vpop.f32.mrb[252].mxu0  ;;  %v5179_v9 = vpop.f32.mrb[223].mxu1 }
 0x49c   : > { %v3532_v55 = vadd.f32 %v5177_v20, %v7945_v1  ;;  %v5288_v33 = vpop.f32.mrb[253].mxu0  ;;  %v5180_v16 = vadd.f32 %v5179_v9, %v5178_v29 }
 0x49d   : > { %v5289_v5 = vadd.f32 %v5288_v33, %v5287_v7  ;;  %v5290_v28 = vpop.f32.mrb[254].mxu0 }
 0x49e   : > { %v3535_v56 = vadd.f32 %v5180_v16, %v7947_v59  ;;  %v5291_v61 = vpop.f32.mrb[255].mxu0 }
 0x49f   : > { %v5292_v47 = vadd.f32 %v5291_v61, %v5290_v28  ;;  %v8034_v41 = vadd.f32 %v5289_v5, %v3532_v55 }
 0x4a0   : > { %v5181_v2 = vpop.f32.mrb[224].mxu1 }
 0x4a1   : > { %v5182_v24 = vpop.f32.mrb[225].mxu1  ;;  %v8036_v10 = vadd.f32 %v5292_v47, %v3535_v56 }
 0x4a2   : > { %v5183_v21 = vadd.f32 %v5182_v24, %v5181_v2  ;;  %v5184_v14 = vpop.f32.mrb[226].mxu1 }
 0x4a3   : > { %v5293_v51 = vpop.f32.mrb[0].mxu0  ;;  %v5185_v57 = vpop.f32.mrb[227].mxu1 }
 0x4a4   : > { %v3540_v1 = vadd.f32 %v5183_v21, %v7951_v23  ;;  %v5294_v11 = vpop.f32.mrb[1].mxu0  ;;  %v5186_v32 = vadd.f32 %v5185_v57, %v5184_v14 }
 0x4a5   : > { %v5295_v27 = vadd.f32 %v5294_v11, %v5293_v51  ;;  %v5296_v42 = vpop.f32.mrb[2].mxu0 }
 0x4a6   : > { %v3543_v59 = vadd.f32 %v5186_v32, %v7953_v39  ;;  %v5297_v34 = vpop.f32.mrb[3].mxu0 }
 0x4a7   : > { %v5298_v63 = vadd.f32 %v5297_v34, %v5296_v42  ;;  %v8040_v15 = vadd.f32 %v5295_v27, %v3540_v1 }
 0x4a8   : > { %v5187_v4 = vpop.f32.mrb[228].mxu1 }
 0x4a9   : > { %v5188_v48 = vpop.f32.mrb[229].mxu1  ;;  %v8042_v53 = vadd.f32 %v5298_v63, %v3543_v59 }
 0x4aa   : > { %v5189_v19 = vadd.f32 %v5188_v48, %v5187_v4  ;;  %v5190_v3 = vpop.f32.mrb[230].mxu1 }
 0x4ab   : > { %v5299_v20 = vpop.f32.mrb[4].mxu0  ;;  %v5191_v29 = vpop.f32.mrb[231].mxu1 }
 0x4ac   : > { %v3548_v23 = vadd.f32 %v5189_v19, %v7957_v6  ;;  %v5300_v7 = vpop.f32.mrb[5].mxu0  ;;  %v5192_v9 = vadd.f32 %v5191_v29, %v5190_v3 }
 0x4ad   : > { %v5301_v55 = vadd.f32 %v5300_v7, %v5299_v20  ;;  %v5302_v33 = vpop.f32.mrb[6].mxu0 }
 0x4ae   : > { %v3551_v39 = vadd.f32 %v5192_v9, %v7959_v50  ;;  %v5303_v16 = vpop.f32.mrb[7].mxu0 }
 0x4af   : > { %v5304_v5 = vadd.f32 %v5303_v16, %v5302_v33  ;;  %v8046_v28 = vadd.f32 %v5301_v55, %v3548_v23 }
 0x4b0   : > { %v5193_v56 = vpop.f32.mrb[232].mxu1 }
 0x4b1   : > { %v5194_v61 = vpop.f32.mrb[233].mxu1  ;;  %v8048_v47 = vadd.f32 %v5304_v5, %v3551_v39 }
 0x4b2   : > { %v5195_v2 = vadd.f32 %v5194_v61, %v5193_v56  ;;  %v5196_v24 = vpop.f32.mrb[234].mxu1 }
 0x4b3   : > { %v5305_v21 = vpop.f32.mrb[8].mxu0  ;;  %v5197_v14 = vpop.f32.mrb[235].mxu1 }
 0x4b4   : > { %v3556_v6 = vadd.f32 %v5195_v2, %v7963_v26  ;;  %v5306_v51 = vpop.f32.mrb[9].mxu0  ;;  %v5198_v57 = vadd.f32 %v5197_v14, %v5196_v24 }
 0x4b5   : > { %v5307_v1 = vadd.f32 %v5306_v51, %v5305_v21  ;;  %v5308_v11 = vpop.f32.mrb[10].mxu0 }
 0x4b6   : > { %v3559_v50 = vadd.f32 %v5198_v57, %v7965_v44  ;;  %v5309_v32 = vpop.f32.mrb[11].mxu0 }
 0x4b7   : > { %v5310_v27 = vadd.f32 %v5309_v32, %v5308_v11  ;;  %v8052_v42 = vadd.f32 %v5307_v1, %v3556_v6 }
 0x4b8   : > { %v5199_v59 = vpop.f32.mrb[236].mxu1 }
 0x4b9   : > { %v5200_v34 = vpop.f32.mrb[237].mxu1  ;;  %v8054_v63 = vadd.f32 %v5310_v27, %v3559_v50 }
 0x4ba   : > { %v5201_v4 = vadd.f32 %v5200_v34, %v5199_v59  ;;  %v5202_v48 = vpop.f32.mrb[238].mxu1 }
 0x4bb   : > { %v5311_v19 = vpop.f32.mrb[12].mxu0  ;;  %v5203_v3 = vpop.f32.mrb[239].mxu1 }
 0x4bc   : > { %v3564_v26 = vadd.f32 %v5201_v4, %v7969_v52  ;;  %v5312_v20 = vpop.f32.mrb[13].mxu0  ;;  %v5204_v29 = vadd.f32 %v5203_v3, %v5202_v48 }
 0x4bd   : > { %v5313_v23 = vadd.f32 %v5312_v20, %v5311_v19  ;;  %v5314_v7 = vpop.f32.mrb[14].mxu0 }
 0x4be   : > { %v3567_v44 = vadd.f32 %v5204_v29, %v7971_v58  ;;  %v5315_v9 = vpop.f32.mrb[15].mxu0 }
 0x4bf   : > { %v5316_v55 = vadd.f32 %v5315_v9, %v5314_v7  ;;  %v8058_v33 = vadd.f32 %v5313_v23, %v3564_v26 }
 0x4c0   : > { %v5205_v39 = vpop.f32.mrb[240].mxu1 }
 0x4c1   : > { %v5206_v16 = vpop.f32.mrb[241].mxu1  ;;  %v8060_v5 = vadd.f32 %v5316_v55, %v3567_v44 }
 0x4c2   : > { %v5207_v56 = vadd.f32 %v5206_v16, %v5205_v39  ;;  %v5208_v61 = vpop.f32.mrb[242].mxu1 }
 0x4c3   : > { %v5317_v2 = vpop.f32.mrb[16].mxu0  ;;  %v5209_v24 = vpop.f32.mrb[243].mxu1 }
 0x4c4   : > { %v3572_v52 = vadd.f32 %v5207_v56, %v7974_v40  ;;  %v5318_v21 = vpop.f32.mrb[17].mxu0  ;;  %v5210_v14 = vadd.f32 %v5209_v24, %v5208_v61 }
 0x4c5   : > { %v5319_v6 = vadd.f32 %v5318_v21, %v5317_v2  ;;  %v5320_v51 = vpop.f32.mrb[18].mxu0 }
 0x4c6   : > { %v3575_v58 = vadd.f32 %v5210_v14, %v7976_v17  ;;  %v5321_v57 = vpop.f32.mrb[19].mxu0 }
 0x4c7   : > { %v5322_v1 = vadd.f32 %v5321_v57, %v5320_v51  ;;  %v8064_v11 = vadd.f32 %v5319_v6, %v3572_v52 }
 0x4c8   : > { %v5211_v50 = vpop.f32.mrb[244].mxu1 }
 0x4c9   : > { %v5212_v32 = vpop.f32.mrb[245].mxu1  ;;  %v8066_v27 = vadd.f32 %v5322_v1, %v3575_v58 }
 0x4ca   : > { %v5213_v59 = vadd.f32 %v5212_v32, %v5211_v50  ;;  %v5214_v34 = vpop.f32.mrb[246].mxu1 }
 0x4cb   : > { %v5323_v4 = vpop.f32.mrb[20].mxu0  ;;  %v5215_v48 = vpop.f32.mrb[247].mxu1 }
 0x4cc   : > { %v3580_v40 = vadd.f32 %v5213_v59, %v7978_v43  ;;  %v5324_v19 = vpop.f32.mrb[21].mxu0  ;;  %v5216_v3 = vadd.f32 %v5215_v48, %v5214_v34 }
 0x4cd   : > { %v5325_v26 = vadd.f32 %v5324_v19, %v5323_v4  ;;  %v5326_v20 = vpop.f32.mrb[22].mxu0 }
 0x4ce   : > { %v3583_v17 = vadd.f32 %v5216_v3, %v7980_v25  ;;  %v5327_v29 = vpop.f32.mrb[23].mxu0 }
 0x4cf   : > { %v5328_v23 = vadd.f32 %v5327_v29, %v5326_v20  ;;  %v8070_v7 = vadd.f32 %v5325_v26, %v3580_v40 }
 0x4d0   : > { %v5217_v44 = vpop.f32.mrb[248].mxu1 }
 0x4d1   : > { %v5218_v9 = vpop.f32.mrb[249].mxu1  ;;  %v8072_v55 = vadd.f32 %v5328_v23, %v3583_v17 }
 0x4d2   : > { %v5219_v39 = vadd.f32 %v5218_v9, %v5217_v44  ;;  %v5220_v16 = vpop.f32.mrb[250].mxu1 }
 0x4d3   : > { %v5329_v56 = vpop.f32.mrb[24].mxu0  ;;  %v5221_v61 = vpop.f32.mrb[251].mxu1 }
 0x4d4   : > { %v3588_v43 = vadd.f32 %v5219_v39, %v7982_v18  ;;  %v5330_v2 = vpop.f32.mrb[25].mxu0  ;;  %v5222_v24 = vadd.f32 %v5221_v61, %v5220_v16 }
 0x4d5   : > { %v5331_v52 = vadd.f32 %v5330_v2, %v5329_v56  ;;  %v5332_v21 = vpop.f32.mrb[26].mxu0 }
 0x4d6   : > { %v3591_v25 = vadd.f32 %v5222_v24, %v7984_v36  ;;  %v5333_v14 = vpop.f32.mrb[27].mxu0 }
 0x4d7   : > { %v5334_v6 = vadd.f32 %v5333_v14, %v5332_v21  ;;  %v8076_v51 = vadd.f32 %v5331_v52, %v3588_v43 }
 0x4d8   : > { %v5223_v58 = vpop.f32.mrb[252].mxu1 }
 0x4d9   : > { %v5224_v57 = vpop.f32.mrb[253].mxu1  ;;  %v8078_v1 = vadd.f32 %v5334_v6, %v3591_v25 }
 0x4da   : > { %v5225_v50 = vadd.f32 %v5224_v57, %v5223_v58  ;;  %v5226_v32 = vpop.f32.mrb[254].mxu1 }
 0x4db   : > { %v5335_v59 = vpop.f32.mrb[28].mxu0  ;;  %v5227_v34 = vpop.f32.mrb[255].mxu1 }
 0x4dc   : > { %v3596_v18 = vadd.f32 %v5225_v50, %v7986_v62  ;;  %v5336_v4 = vpop.f32.mrb[29].mxu0  ;;  %v5228_v48 = vadd.f32 %v5227_v34, %v5226_v32 }
 0x4dd   : > { %v5337_v40 = vadd.f32 %v5336_v4, %v5335_v59  ;;  %v5338_v19 = vpop.f32.mrb[30].mxu0 }
 0x4de   : > { %v3599_v36 = vadd.f32 %v5228_v48, %v7988_v12  ;;  %v5339_v3 = vpop.f32.mrb[31].mxu0 }
 0x4df   : > { %v5340_v26 = vadd.f32 %v5339_v3, %v5338_v19  ;;  %v8082_v20 = vadd.f32 %v5337_v40, %v3596_v18 }
 0x4e0   : > { %v5431_v17 = vpop.f32.mrb[0].mxu1 }
 0x4e1   : > { %v8085_v29 = vadd.f32 %v5431_v17, %v7998_v35  ;;  %v3797_v23 = vpop.f32.mrb[1].mxu1  ;;  %v8087_v44 = vadd.f32 %v5340_v26, %v3599_v36 }
 0x4e2   : > { %v8090_v9 = vadd.f32 %v3797_v23, %v7992_v60  ;;  %v5432_v62 = vpop.f32.mrb[2].mxu1 }
 0x4e3   : > { %v8093_v39 = vadd.f32 %v5432_v62, %v8000_v46  ;;  %v3800_v16 = vpop.f32.mrb[3].mxu1 }
 0x4e4   : > { %v8096_v12 = vadd.f32 %v3800_v16, %v7994_v45 }
 0x4e6   : > { %v3924_v56 = vadd.f32 %v8096_v12, %v8090_v9 }
 0x4e8   : > { %v3925_v35 = vadd.f32 %v3924_v56, %v8085_v29  ;;  %v5435_v61 = vpop.f32.mrb[4].mxu1 }
 0x4e9   : > { %v8102_v43 = vadd.f32 %v5435_v61, %v8010_v38  ;;  %v3813_v2 = vpop.f32.mrb[5].mxu1 }
 0x4ea   : > { %v8105_v60 = vadd.f32 %v3813_v2, %v8004_v37  ;;  %v3926_v46 = vadd.f32 %v3925_v35, %v8093_v39  ;;  %v5436_v24 = vpop.f32.mrb[6].mxu1 }
 0x4eb   : > { %v8109_v52 = vadd.f32 %v5436_v24, %v8012_v22  ;;  %v3816_v45 = vpop.f32.mrb[7].mxu1 }
 0x4ec   : > { %v3927_v21 = vadd.f32 %v3926_v46, %v8105_v60  ;;  %v8113_v25 = vadd.f32 %v3816_v45, %v8006_v8 }
 0x4ee   : > { %v3928_v14 = vadd.f32 %v3927_v21, %v8113_v25 }
 0x4f0   : > { %v3929_v38 = vadd.f32 %v3928_v14, %v8102_v43  ;;  %v5439_v6 = vpop.f32.mrb[8].mxu1 }
 0x4f1   : > { %v8118_v37 = vadd.f32 %v5439_v6, %v8022_v31  ;;  %v3829_v58 = vpop.f32.mrb[9].mxu1 }
 0x4f2   : > { %v8121_v57 = vadd.f32 %v3829_v58, %v8016_v0  ;;  %v3930_v22 = vadd.f32 %v3929_v38, %v8109_v52  ;;  %v5440_v50 = vpop.f32.mrb[10].mxu1 }
 0x4f3   : > { %v8125_v32 = vadd.f32 %v5440_v50, %v8024_v30  ;;  %v3832_v8 = vpop.f32.mrb[11].mxu1 }
 0x4f4   : > { %v3931_v59 = vadd.f32 %v3930_v22, %v8121_v57  ;;  %v8129_v34 = vadd.f32 %v3832_v8, %v8018_v54 }
 0x4f6   : > { %v3932_v18 = vadd.f32 %v3931_v59, %v8129_v34 }
 0x4f8   : > { %v3933_v31 = vadd.f32 %v3932_v18, %v8118_v37  ;;  %v5443_v4 = vpop.f32.mrb[12].mxu1 }
 0x4f9   : > { %v8134_v0 = vadd.f32 %v5443_v4, %v8034_v41  ;;  %v3845_v48 = vpop.f32.mrb[13].mxu1 }
 0x4fa   : > { %v8137_v40 = vadd.f32 %v3845_v48, %v8028_v13  ;;  %v3934_v30 = vadd.f32 %v3933_v31, %v8125_v32  ;;  %v5444_v19 = vpop.f32.mrb[14].mxu1 }
 0x4fb   : > { %v8141_v36 = vadd.f32 %v5444_v19, %v8036_v10  ;;  %v3848_v54 = vpop.f32.mrb[15].mxu1 }
 0x4fc   : > { %v3935_v3 = vadd.f32 %v3934_v30, %v8137_v40  ;;  %v8145_v26 = vadd.f32 %v3848_v54, %v8030_v49 }
 0x4fe   : > { %v3936_v17 = vadd.f32 %v3935_v3, %v8145_v26 }
 0x500   : > { %v3937_v41 = vadd.f32 %v3936_v17, %v8134_v0  ;;  %v5447_v23 = vpop.f32.mrb[16].mxu1 }
 0x501   : > { %v8150_v13 = vadd.f32 %v5447_v23, %v8046_v28  ;;  %v3861_v62 = vpop.f32.mrb[17].mxu1 }
 0x502   : > { %v3862_v16 = vadd.f32 %v3861_v62, %v8040_v15  ;;  %v3938_v10 = vadd.f32 %v3937_v41, %v8141_v36  ;;  %v5448_v56 = vpop.f32.mrb[18].mxu1 }
 0x503   : > { %v3873_v35 = vadd.f32 %v5448_v56, %v8048_v47  ;;  %v3864_v61 = vpop.f32.mrb[19].mxu1 }
 0x504   : > { %v3939_v2 = vadd.f32 %v3938_v10, %v3862_v16  ;;  %v3865_v49 = vadd.f32 %v3864_v61, %v8042_v53 }
 0x506   : > { %v3940_v46 = vadd.f32 %v3939_v2, %v3865_v49 }
 0x508   : > { %v3941_v24 = vadd.f32 %v3940_v46, %v8150_v13  ;;  %v5451_v45 = vpop.f32.mrb[20].mxu1 }
 0x509   : > { %v3886_v21 = vadd.f32 %v5451_v45, %v8058_v33  ;;  %v3877_v28 = vpop.f32.mrb[21].mxu1 }
 0x50a   : > { %v3878_v14 = vadd.f32 %v3877_v28, %v8052_v42  ;;  %v3942_v38 = vadd.f32 %v3941_v24, %v3873_v35  ;;  %v5452_v15 = vpop.f32.mrb[22].mxu1 }
 0x50b   : > { %v3889_v6 = vadd.f32 %v5452_v15, %v8060_v5  ;;  %v3880_v58 = vpop.f32.mrb[23].mxu1 }
 0x50c   : > { %v3943_v22 = vadd.f32 %v3942_v38, %v3878_v14  ;;  %v3881_v47 = vadd.f32 %v3880_v58, %v8054_v63 }
 0x50e   : > { %v3944_v50 = vadd.f32 %v3943_v22, %v3881_v47 }
 0x510   : > { %v3945_v8 = vadd.f32 %v3944_v50, %v3886_v21  ;;  %v5455_v53 = vpop.f32.mrb[24].mxu1 }
 0x511   : > { %v3902_v59 = vadd.f32 %v5455_v53, %v8070_v7  ;;  %v3893_v18 = vpop.f32.mrb[25].mxu1 }
 0x512   : > { %v3894_v31 = vadd.f32 %v3893_v18, %v8064_v11  ;;  %v3946_v33 = vadd.f32 %v3945_v8, %v3889_v6  ;;  %v5456_v4 = vpop.f32.mrb[26].mxu1 }
 0x513   : > { %v3905_v42 = vadd.f32 %v5456_v4, %v8072_v55  ;;  %v3896_v48 = vpop.f32.mrb[27].mxu1 }
 0x514   : > { %v3947_v30 = vadd.f32 %v3946_v33, %v3894_v31  ;;  %v3897_v5 = vadd.f32 %v3896_v48, %v8066_v27 }
 0x516   : > { %v3948_v19 = vadd.f32 %v3947_v30, %v3897_v5 }
 0x518   : > { %v3949_v54 = vadd.f32 %v3948_v19, %v3902_v59  ;;  %v5459_v3 = vpop.f32.mrb[28].mxu1 }
 0x519   : > { %v3918_v63 = vadd.f32 %v5459_v3, %v8082_v20  ;;  %v3909_v17 = vpop.f32.mrb[29].mxu1 }
 0x51a   : > { %v3910_v41 = vadd.f32 %v3909_v17, %v8076_v51  ;;  %v3950_v7 = vadd.f32 %v3949_v54, %v3905_v42  ;;  %v5460_v23 = vpop.f32.mrb[30].mxu1 }
 0x51b   : > { %v3921_v11 = vadd.f32 %v5460_v23, %v8087_v44  ;;  %v3912_v62 = vpop.f32.mrb[31].mxu1 }
 0x51c   : > { %v3951_v10 = vadd.f32 %v3950_v7, %v3910_v41  ;;  %v3913_v55 = vadd.f32 %v3912_v62, %v8078_v1 }
 0x51e   : > { %v3952_v56 = vadd.f32 %v3951_v10, %v3913_v55 }
 0x520   : > { %v3953_v61 = vadd.f32 %v3952_v56, %v3918_v63 }
 0x522   : > { %v3954_v2 = vadd.f32 %v3953_v61, %v3921_v11 }
 0x524   : > { %v3955_v27 = vrot.slane %v3954_v2, 4 }
 0x526   : > { %v3956_v46 = vadd.f32 %v3955_v27, %v3954_v2 }
 0x528   : > { %v3957_v24 = vrot.slane %v3956_v46, 2 }
 0x52a   : > { %v3958_v45 = vadd.f32 %v3957_v24, %v3956_v46 }
 0x52c   : > { %v3959_v28 = vrot.slane %v3958_v45, 1 }
 0x52e   : > { %v3960_v20 = vadd.f32 %v3959_v28, %v3958_v45 }
 0x530   : > { %v3961_v38 = vmul.f32 0.00390625, %v3960_v20 }
 0x532   : > { %v8170_v51 = vsub.f32 %v8121_v57, %v3961_v38  ;;  %v8173_v15 = vsub.f32 %v8129_v34, %v3961_v38  ;;  %v8176_v44 = vsub.f32 %v8118_v37, %v3961_v38  ;;  %v8179_v1 = vsub.f32 %v8125_v32, %v3961_v38 }
 0x533   : > { %v8182_v58 = vsub.f32 %v8137_v40, %v3961_v38  ;;  %v8185_v22 = vsub.f32 %v8145_v26, %v3961_v38  ;;  %v8188_v50 = vsub.f32 %v8134_v0, %v3961_v38  ;;  %v8191_v57 = vsub.f32 %v8141_v36, %v3961_v38 }
 0x534   : > { %v8193_v34 = vsub.f32 %v3862_v16, %v3961_v38  ;;  %v8195_v8 = vsub.f32 %v3865_v49, %v3961_v38  ;;  %v8198_v37 = vsub.f32 %v8150_v13, %v3961_v38  ;;  %v8200_v32 = vsub.f32 %v3873_v35, %v3961_v38 }
 0x535   : > { %v8202_v40 = vsub.f32 %v3878_v14, %v3961_v38  ;;  %v8204_v53 = vsub.f32 %v3881_v47, %v3961_v38  ;;  %v8206_v26 = vsub.f32 %v3886_v21, %v3961_v38  ;;  %v8208_v0 = vsub.f32 %v3889_v6, %v3961_v38 }
 0x536   : > { %v8210_v18 = vsub.f32 %v3894_v31, %v3961_v38  ;;  %v8212_v36 = vsub.f32 %v3897_v5, %v3961_v38  ;;  %v8214_v16 = vsub.f32 %v3902_v59, %v3961_v38  ;;  %v8216_v49 = vsub.f32 %v3905_v42, %v3961_v38 }
 0x537   : > { %v8218_v13 = vsub.f32 %v3910_v41, %v3961_v38  ;;  %v8220_v35 = vsub.f32 %v3913_v55, %v3961_v38  ;;  %v8222_v14 = vsub.f32 %v3918_v63, %v3961_v38  ;;  %v8224_v47 = vsub.f32 %v3921_v11, %v3961_v38 }
 0x538   : > { %v8227_v21 = vsub.f32 %v8090_v9, %v3961_v38  ;;  %v8230_v6 = vsub.f32 %v8096_v12, %v3961_v38  ;;  %v8233_v31 = vsub.f32 %v8085_v29, %v3961_v38  ;;  %v8240_v4 = vsub.f32 %v8093_v39, %v3961_v38 }
 0x539   : > { %v8243_v42 = vsub.f32 %v8105_v60, %v3961_v38  ;;  %v8248_v48 = vsub.f32 %v8113_v25, %v3961_v38  ;;  %v8253_v5 = vsub.f32 %v8102_v43, %v3961_v38  ;;  %v8258_v60 = vsub.f32 %v8109_v52, %v3961_v38 }
 0x53a   : > { %v3994_v59 = vmul.f32 %v8227_v21, %v8227_v21  ;;  %v3995_v33 = vmul.f32 %v8230_v6, %v8230_v6  ;;  %v3996_v9 = vmul.f32 %v8233_v31, %v8233_v31  ;;  %v3997_v29 = vmul.f32 %v8240_v4, %v8240_v4 }
 0x53b   : > { %v3998_v39 = vmul.f32 %v8243_v42, %v8243_v42  ;;  %v3999_v54 = vmul.f32 %v8248_v48, %v8248_v48  ;;  %v4000_v25 = vmul.f32 %v8253_v5, %v8253_v5  ;;  %v4001_v17 = vmul.f32 %v8258_v60, %v8258_v60 }
 0x53c   : > { %v4026_v12 = vadd.f32 %v3995_v33, %v3994_v59  ;;  %v4002_v41 = vmul.f32 %v8170_v51, %v8170_v51  ;;  %v4003_v52 = vmul.f32 %v8173_v15, %v8173_v15  ;;  %v4004_v11 = vmul.f32 %v8176_v44, %v8176_v44 }
 0x53d   : > { %v4005_v10 = vmul.f32 %v8179_v1, %v8179_v1  ;;  %v4006_v56 = vmul.f32 %v8182_v58, %v8182_v58  ;;  %v4007_v2 = vmul.f32 %v8185_v22, %v8185_v22  ;;  %v4008_v46 = vmul.f32 %v8188_v50, %v8188_v50 }
 0x53e   : > { %v4027_v30 = vadd.f32 %v4026_v12, %v3996_v9  ;;  %v4009_v45 = vmul.f32 %v8191_v57, %v8191_v57  ;;  %v4010_v20 = vmul.f32 %v8193_v34, %v8193_v34  ;;  %v4011_v59 = vmul.f32 %v8195_v8, %v8195_v8 }
 0x53f   : > { %v4012_v9 = vmul.f32 %v8198_v37, %v8198_v37 }
 0x540   : > { %v4028_v19 = vadd.f32 %v4027_v30, %v3997_v29  ;;  %v4013_v29 = vmul.f32 %v8200_v32, %v8200_v32 }
 0x542   : > { %v4029_v3 = vadd.f32 %v4028_v19, %v3998_v39  ;;  %v4014_v39 = vmul.f32 %v8202_v40, %v8202_v40 }
 0x544   : > { %v4030_v63 = vadd.f32 %v4029_v3, %v3999_v54  ;;  %v4015_v54 = vmul.f32 %v8204_v53, %v8204_v53 }
 0x546   : > { %v4031_v43 = vadd.f32 %v4030_v63, %v4000_v25  ;;  %v4016_v25 = vmul.f32 %v8206_v26, %v8206_v26 }
 0x548   : > { %v4032_v7 = vadd.f32 %v4031_v43, %v4001_v17  ;;  %v4017_v17 = vmul.f32 %v8208_v0, %v8208_v0 }
 0x54a   : > { %v4033_v23 = vadd.f32 %v4032_v7, %v4002_v41  ;;  %v4018_v41 = vmul.f32 %v8210_v18, %v8210_v18 }
 0x54c   : > { %v4034_v62 = vadd.f32 %v4033_v23, %v4003_v52  ;;  %v4019_v52 = vmul.f32 %v8212_v36, %v8212_v36 }
 0x54e   : > { %v4035_v55 = vadd.f32 %v4034_v62, %v4004_v11  ;;  %v4020_v11 = vmul.f32 %v8214_v16, %v8214_v16 }
 0x550   : > { %v4036_v61 = vadd.f32 %v4035_v55, %v4005_v10  ;;  %v4021_v10 = vmul.f32 %v8216_v49, %v8216_v49 }
 0x552   : > { %v4037_v27 = vadd.f32 %v4036_v61, %v4006_v56  ;;  %v4022_v56 = vmul.f32 %v8218_v13, %v8218_v13 }
 0x554   : > { %v4038_v24 = vadd.f32 %v4037_v27, %v4007_v2  ;;  %v4023_v2 = vmul.f32 %v8220_v35, %v8220_v35 }
 0x556   : > { %v4039_v28 = vadd.f32 %v4038_v24, %v4008_v46  ;;  %v4024_v46 = vmul.f32 %v8222_v14, %v8222_v14 }
 0x558   : > { %v4040_v38 = vadd.f32 %v4039_v28, %v4009_v45  ;;  %v4025_v45 = vmul.f32 %v8224_v47, %v8224_v47 }
 0x55a   : > { %v4041_v33 = vadd.f32 %v4040_v38, %v4010_v20 }
 0x55c   : > { %v4042_v12 = vadd.f32 %v4041_v33, %v4011_v59 }
 0x55e   : > { %v4043_v30 = vadd.f32 %v4042_v12, %v4012_v9 }
 0x560   : > { %v4044_v19 = vadd.f32 %v4043_v30, %v4013_v29 }
 0x562   : > { %v4045_v3 = vadd.f32 %v4044_v19, %v4014_v39 }
 0x564   : > { %v4046_v63 = vadd.f32 %v4045_v3, %v4015_v54 }
 0x566   : > { %v4047_v43 = vadd.f32 %v4046_v63, %v4016_v25 }
 0x568   : > { %v4048_v7 = vadd.f32 %v4047_v43, %v4017_v17 }
 0x56a   : > { %v4049_v23 = vadd.f32 %v4048_v7, %v4018_v41 }
 0x56c   : > { %v4050_v62 = vadd.f32 %v4049_v23, %v4019_v52  ;;  %v5672_v52 = vld [vmem:[%s6003_s3 + $0xe8] sm:$0xff] }
 0x56e   : > { %v4051_v55 = vadd.f32 %v4050_v62, %v4020_v11  ;;  %v5676_v62 = vld [vmem:[%s6003_s3 + $0x18] sm:$0xff] }
 0x570   : > { %v4052_v61 = vadd.f32 %v4051_v55, %v4021_v10  ;;  %v5677_v10 = vld [vmem:[%s6003_s3 + $0x20] sm:$0xff]  ;;  %v5678_v55 = vld [vmem:[%s6003_s3 + $0x28] sm:$0xff] }
 0x572   : > { %v4053_v27 = vadd.f32 %v4052_v61, %v4022_v56  ;;  %v5679_v56 = vld [vmem:[%s6003_s3 + $0x30] sm:$0xff] }
 0x574   : > { %v4054_v24 = vadd.f32 %v4053_v27, %v4023_v2  ;;  %v5680_v2 = vld [vmem:[%s6003_s3 + $0x38] sm:$0xff] }
 0x576   : > { %v4055_v28 = vadd.f32 %v4054_v24, %v4024_v46  ;;  %v5681_v46 = vld [vmem:[%s6003_s3 + $0x40] sm:$0xff] }
 0x578   : > { %v4056_v20 = vadd.f32 %v4055_v28, %v4025_v45  ;;  %v5682_v45 = vld [vmem:[%s6003_s3 + $0x48] sm:$0xff] }
 0x57a   : > { %v4057_v38 = vrot.slane %v4056_v20, 4 }
 0x57c   : > { %v4058_v59 = vadd.f32 %v4057_v38, %v4056_v20  ;;  %v5683_v20 = vld [vmem:[%s6003_s3 + $0x50] sm:$0xff] }
 0x57e   : > { %v4059_v33 = vrot.slane %v4058_v59, 2 }
 0x580   : > { %v4060_v9 = vadd.f32 %v4059_v33, %v4058_v59  ;;  %v5684_v59 = vld [vmem:[%s6003_s3 + $0x58] sm:$0xff] }
 0x582   : > { %v4061_v12 = vrot.slane %v4060_v9, 1 }
 0x584   : > { %v4062_v29 = vadd.f32 %v4061_v12, %v4060_v9  ;;  %v5685_v9 = vld [vmem:[%s6003_s3 + $0x60] sm:$0xff] }
 0x586   : > { %v4063_v30 = vmul.f32 0.00390625, %v4062_v29  ;;  %v5686_v29 = vld [vmem:[%s6003_s3 + $0x68] sm:$0xff] }
 0x588   : > { %v4064_v39 = vadd.f32 1e-05, %v4063_v30 }
 0x58a   : > { %5670 = vrsqrt.f32 %v4064_v39  ;;  %v5687_v39 = vld [vmem:[%s6003_s3 + $0x70] sm:$0xff] }
 0x594   : > { %v5671_v19 = vpop.eup %5670 }
 0x595   : > { %v4095_v54 = vmul.f32 %v5671_v19, %v8220_v35  ;;  %v4066_v3 = vmul.f32 %v5671_v19, %v8227_v21  ;;  %v4067_v25 = vmul.f32 %v5671_v19, %v8230_v6  ;;  %v4068_v63 = vmul.f32 %v5671_v19, %v8233_v31 }
 0x596   : > { %v4069_v17 = vmul.f32 %v5671_v19, %v8240_v4  ;;  %v4070_v43 = vmul.f32 %v5671_v19, %v8243_v42  ;;  %v4071_v41 = vmul.f32 %v5671_v19, %v8248_v48  ;;  %v4072_v7 = vmul.f32 %v5671_v19, %v8253_v5 }
 0x597   : > { %v4127_v23 = vadd.f32 %v5672_v52, %v4095_v54  ;;  %v4073_v11 = vmul.f32 %v5671_v19, %v8258_v60  ;;  %v4074_v35 = vmul.f32 %v5671_v19, %v8170_v51  ;;  %v4075_v21 = vmul.f32 %v5671_v19, %v8173_v15  ;;  %v5675_v60 = vld [vmem:[%s6003_s3 + $0x10] sm:$0xff]  ;;  %v5688_v54 = vld [vmem:[%s6003_s3 + $0x78] sm:$0xff] }
 0x598   : > { %v4076_v6 = vmul.f32 %v5671_v19, %v8176_v44  ;;  %v4077_v31 = vmul.f32 %v5671_v19, %v8179_v1  ;;  %v4078_v4 = vmul.f32 %v5671_v19, %v8182_v58  ;;  %v4079_v42 = vmul.f32 %v5671_v19, %v8185_v22  ;;  %v5692_v52 = vld [vmem:[%s6003_s3 + $0x98] sm:$0xff] }
 0x599   : > { %4159 = vst [vmem:[%s8332_s15 + $0xe8] sm:$0xff] %v4127_v23  ;;  %v4080_v48 = vmul.f32 %v5671_v19, %v8188_v50  ;;  %v4081_v5 = vmul.f32 %v5671_v19, %v8191_v57  ;;  %v4082_v51 = vmul.f32 %v5671_v19, %v8193_v34  ;;  %v4083_v15 = vmul.f32 %v5671_v19, %v8195_v8 }
 0x59a   : > { %v4084_v44 = vmul.f32 %v5671_v19, %v8198_v37  ;;  %v8341_v1 = vmul.f32 %v5671_v19, %v8200_v32  ;;  %v8344_v58 = vmul.f32 %v5671_v19, %v8202_v40  ;;  %v8347_v22 = vmul.f32 %v5671_v19, %v8204_v53 }
 0x59b   : > { %v8350_v50 = vmul.f32 %v5671_v19, %v8206_v26  ;;  %v8353_v57 = vmul.f32 %v5671_v19, %v8208_v0  ;;  %v8356_v34 = vmul.f32 %v5671_v19, %v8210_v18  ;;  %v8359_v8 = vmul.f32 %v5671_v19, %v8212_v36  ;;  %v5673_v0 = vld [vmem:[%s6003_s3] sm:$0xff]  ;;  %v5674_v36 = vld [vmem:[%s6003_s3 + $0x8] sm:$0xff] }
 0x59c   : > { %v8362_v37 = vmul.f32 %v5671_v19, %v8214_v16  ;;  %v8365_v32 = vmul.f32 %v5671_v19, %v8216_v49  ;;  %v8368_v40 = vmul.f32 %v5671_v19, %v8218_v13  ;;  %v8371_v53 = vmul.f32 %v5671_v19, %v8222_v14 }
 0x59d   : > { %v8374_v26 = vmul.f32 %v5671_v19, %v8224_v47  ;;  %v4098_v18 = vadd.f32 %v5673_v0, %v4066_v3  ;;  %v4099_v16 = vadd.f32 %v5674_v36, %v4067_v25  ;;  %v4100_v49 = vadd.f32 %v5675_v60, %v4068_v63  ;;  %v5689_v25 = vld [vmem:[%s6003_s3 + $0x80] sm:$0xff]  ;;  %v5703_v0 = vld [vmem:[%s6003_s3 + $0xf8] sm:$0xff] }
 0x59e   : > { %v4101_v13 = vadd.f32 %v5676_v62, %v4069_v17  ;;  %v4102_v14 = vadd.f32 %v5677_v10, %v4070_v43  ;;  %v4103_v47 = vadd.f32 %v5678_v55, %v4071_v41  ;;  %v4104_v61 = vadd.f32 %v5679_v56, %v4072_v7  ;;  %v5690_v17 = vld [vmem:[%s6003_s3 + $0x88] sm:$0xff]  ;;  %v5691_v41 = vld [vmem:[%s6003_s3 + $0x90] sm:$0xff] }
 0x59f   : > { %v4105_v27 = vadd.f32 %v5680_v2, %v4073_v11  ;;  %v4106_v24 = vadd.f32 %v5681_v46, %v4074_v35  ;;  %v4107_v28 = vadd.f32 %v5682_v45, %v4075_v21  ;;  %v4108_v38 = vadd.f32 %v5683_v20, %v4076_v6  ;;  %4130 = vst [vmem:[%s8332_s15] sm:$0xff] %v4098_v18  ;;  %v5693_v11 = vld [vmem:[%s6003_s3 + $0xa0] sm:$0xff]  ;;  %v5694_v21 = vld [vmem:[%s6003_s3 + $0xa8] sm:$0xff] }
 0x5a0   : > { %4131 = vst [vmem:[%s8332_s15 + $0x8] sm:$0xff] %v4099_v16  ;;  %4132 = vst [vmem:[%s8332_s15 + $0x10] sm:$0xff] %v4100_v49  ;;  %v4109_v33 = vadd.f32 %v5684_v59, %v4077_v31  ;;  %v4110_v12 = vadd.f32 %v5685_v9, %v4078_v4  ;;  %v4111_v30 = vadd.f32 %v5686_v29, %v4079_v42  ;;  %v5695_v31 = vld [vmem:[%s6003_s3 + $0xb0] sm:$0xff]  ;;  %v5696_v42 = vld [vmem:[%s6003_s3 + $0xb8] sm:$0xff] }
 0x5a1   : > { %v4112_v19 = vadd.f32 %v5687_v39, %v4080_v48  ;;  %4133 = vst [vmem:[%s8332_s15 + $0x18] sm:$0xff] %v4101_v13  ;;  %4134 = vst [vmem:[%s8332_s15 + $0x20] sm:$0xff] %v4102_v14  ;;  %v4113_v3 = vadd.f32 %v5688_v54, %v4081_v5  ;;  %v4114_v63 = vadd.f32 %v5689_v25, %v4082_v51  ;;  %v5697_v5 = vld [vmem:[%s6003_s3 + $0xc0] sm:$0xff] }
 0x5a2   : > { %4135 = vst [vmem:[%s8332_s15 + $0x28] sm:$0xff] %v4103_v47  ;;  %4136 = vst [vmem:[%s8332_s15 + $0x30] sm:$0xff] %v4104_v61  ;;  %v4115_v43 = vadd.f32 %v5690_v17, %v4083_v15  ;;  %v4116_v7 = vadd.f32 %v5691_v41, %v4084_v44  ;;  %v4117_v23 = vadd.f32 %v5692_v52, %v8341_v1  ;;  %v5698_v15 = vld [vmem:[%s6003_s3 + $0xc8] sm:$0xff]  ;;  %v5699_v1 = vld [vmem:[%s6003_s3 + $0xd0] sm:$0xff] }
 0x5a3   : > { %4137 = vst [vmem:[%s8332_s15 + $0x38] sm:$0xff] %v4105_v27  ;;  %4138 = vst [vmem:[%s8332_s15 + $0x40] sm:$0xff] %v4106_v24  ;;  %v4118_v35 = vadd.f32 %v5693_v11, %v8344_v58  ;;  %v4119_v6 = vadd.f32 %v5694_v21, %v8347_v22  ;;  %v4120_v4 = vadd.f32 %v5695_v31, %v8350_v50  ;;  %v5700_v22 = vld [vmem:[%s6003_s3 + $0xd8] sm:$0xff] }
 0x5a4   : > { %4139 = vst [vmem:[%s8332_s15 + $0x48] sm:$0xff] %v4107_v28  ;;  %4140 = vst [vmem:[%s8332_s15 + $0x50] sm:$0xff] %v4108_v38  ;;  %v4121_v48 = vadd.f32 %v5696_v42, %v8353_v57  ;;  %v4122_v51 = vadd.f32 %v5697_v5, %v8356_v34  ;;  %v4123_v44 = vadd.f32 %v5698_v15, %v8359_v8  ;;  %v5701_v57 = vld [vmem:[%s6003_s3 + $0xe0] sm:$0xff]  ;;  %v5702_v8 = vld [vmem:[%s6003_s3 + $0xf0] sm:$0xff] }
 0x5a5   : > { %4141 = vst [vmem:[%s8332_s15 + $0x58] sm:$0xff] %v4109_v33  ;;  %4142 = vst [vmem:[%s8332_s15 + $0x60] sm:$0xff] %v4110_v12  ;;  %v4124_v58 = vadd.f32 %v5699_v1, %v8362_v37  ;;  %v4125_v50 = vadd.f32 %v5700_v22, %v8365_v32  ;;  %v4126_v34 = vadd.f32 %v5701_v57, %v8368_v40 }
 0x5a6   : > { %4143 = vst [vmem:[%s8332_s15 + $0x68] sm:$0xff] %v4111_v30  ;;  %4144 = vst [vmem:[%s8332_s15 + $0x70] sm:$0xff] %v4112_v19  ;;  %v4128_v37 = vadd.f32 %v5702_v8, %v8371_v53  ;;  %v4129_v18 = vadd.f32 %v5703_v0, %v8374_v26 }
 0x5a7   : > { %4145 = vst [vmem:[%s8332_s15 + $0x78] sm:$0xff] %v4113_v3  ;;  %4146 = vst [vmem:[%s8332_s15 + $0x80] sm:$0xff] %v4114_v63 }
 0x5a8   : > { %4147 = vst [vmem:[%s8332_s15 + $0x88] sm:$0xff] %v4115_v43  ;;  %4148 = vst [vmem:[%s8332_s15 + $0x90] sm:$0xff] %v4116_v7 }
 0x5a9   : > { %4149 = vst [vmem:[%s8332_s15 + $0x98] sm:$0xff] %v4117_v23  ;;  %4150 = vst [vmem:[%s8332_s15 + $0xa0] sm:$0xff] %v4118_v35 }
 0x5aa   : > { %4151 = vst [vmem:[%s8332_s15 + $0xa8] sm:$0xff] %v4119_v6  ;;  %4152 = vst [vmem:[%s8332_s15 + $0xb0] sm:$0xff] %v4120_v4 }
 0x5ab   : > { %4153 = vst [vmem:[%s8332_s15 + $0xb8] sm:$0xff] %v4121_v48  ;;  %4154 = vst [vmem:[%s8332_s15 + $0xc0] sm:$0xff] %v4122_v51 }
 0x5ac   : > { %4155 = vst [vmem:[%s8332_s15 + $0xc8] sm:$0xff] %v4123_v44  ;;  %4156 = vst [vmem:[%s8332_s15 + $0xd0] sm:$0xff] %v4124_v58 }
 0x5ad   : > { %4157 = vst [vmem:[%s8332_s15 + $0xd8] sm:$0xff] %v4125_v50  ;;  %4158 = vst [vmem:[%s8332_s15 + $0xe0] sm:$0xff] %v4126_v34 }
 0x5ae   : > { %4160 = vst [vmem:[%s8332_s15 + $0xf0] sm:$0xff] %v4128_v37  ;;  %4161 = vst [vmem:[%s8332_s15 + $0xf8] sm:$0xff] %v4129_v18 }
 0x5af   : > { %5775 = shalt.err (!%p5772_p7)
}
 0x5b0   : > { %s5776_s18 = scalar_lea.hbm %s8437_s28, 4096  ;;  %s5780_s20 = scalar_lea.hbm %s8507_s2, 8192 }
 0x5b1   : > { %p5777_p9 = scmp.ne.s32.totalorder %s8437_s28, %s5776_s18  ;;  %p5781_p5 = scmp.lt.u32.totalorder %s8437_s28, %s8507_s2 }
 0x5b2   : > { %p5782_p11 = scmp.lt.u32.totalorder %s5780_s20, %s5776_s18  ;;  %p5784_p4 = scmp.lt.u32.totalorder %s5776_s18, %s8437_s28 }
 0x5b3   : > { %p5778_p2 = pnand %p5777_p9, %p5949_p12 }
 0x5b4   : > { %p5783_p1 = por %p5782_p11, %p5781_p5 }
 0x5b5   : > { %p5779_p0 = pneg %p5778_p2 }
 0x5b6   : > { %p5785_p6 = por %p5784_p4, %p5783_p1 }
 0x5b8   : > { %p5786_p8 = pnand %p5785_p6, %p5779_p0 }
 0x5ba   : > { %5789 = shalt.err (!%p5786_p8)
}
 0x5bb   : > { %s5841_s30 = smov 128   ;;  %s5842_s3 = smov 8  }
 0x5bc   : > { %5467 = dma.vmem_to_hbm [thread:$0]  (%p5949_p12), %s8441_s27, 4096, %s8437_s28, %s4163_s13, %s5841_s30, %s5841_s30, %s5842_s3  }
 0x5bd PF: > { %s4191_s15 = sand.u32 1, %s5820_s9   ;;  %p8564_p10 = scmp.ne.s32.totalorder %s8522_s16, 0 }
 0x5be   : > { %p8565_p13 = scmp.ge.s32.totalorder %s5832_s12, 2  ;;  %s4192_s17 = scalar_lea.sflag [#allocation4], %s4191_s15 }
 0x5c0   : > { %p5478_p3 = pnand %p8565_p13, %p8564_p10 }
 0x5c2   : > { %5815 = dma.done.wait (!%p5478_p3), %s4192_s17, 4096  }
 0x5c3   : > { %5817 = vsyncadd (!%p5478_p3), %s4192_s17, 4294963200  ;;  %p16_p7 = scmp.ge.s32.totalorder %s5914_s21, 4   ;;  %s8566_s9 = smov %s5824_s10 }
 0x5c4   : > { %s8567_s10 = smov %s5828_s11  ;;  %s8568_s11 = smov %s5945_s8 }
 0x5c5   : > { %s8569_s12 = smov %s5914_s21  ;;  %18 = sbr.rel (!%p16_p7) target bundleno = 6 (0x6), region = 78 }
 0x5cc   :  { %4197 = vsyncpa [#allocation3], 1 }
 0x5cd   :  { %4199 = vsyncpa [#allocation3 + $0x1], 1 }
 0x5ce   :  { %4200 = vsyncpa [#allocation6], 1 }
 0x5cf   :  { %4201 = vsyncpa [#allocation4], 1 }
 0x5d0   :  { %4203 = vsyncpa [#allocation4 + $0x1], 1 }

</bundles_post_ra>
